<compile_context>
chip_gen: v6e
topology: v6e:2x2x1
jax: 0.10.0
libtpu: 0.0.40
codegen_flags: <defaults>
</compile_context>

<pallas_src>
import jax
import jax.numpy as jnp
from jax.experimental import pallas as pl
from jax.experimental.pallas import tpu as pltpu

IN_DIM = 32 * 32 * 3          # 3072
H1, H1_PAD = 500, 512         # fc1 out, padded to lane-friendly 512
H2, H2_PAD = 100, 128         # fc2 out, padded to lane-friendly 128
OUT_DIM, OUT_PAD = 10, 128    # logits padded to a lane-dense 128-wide output
NEG_BIG = -1e30               # bias padding value -> exp() underflows to exactly 0


def _round_up(x, m):
    return ((x + m - 1) // m) * m


def _pick_tile(B):
    """Batch tile size: 16-multiples for tiny B, 2 steps for mid B, 512 for huge B."""
    if B <= 32:
        return max(16, _round_up(B, 16))          # tiny-batch latency path (1 step)
    if B <= 1024:
        return _round_up((B + 1) // 2, 16)        # exactly 2 steps -> both v7x TCs busy
    return 512                                    # large batch: amortize per-step overhead


def mlp_kernel(x_ref, w1_ref, b1_ref, w2_ref, b2_ref, w3_ref, b3_ref, out_ref):
    # x_ref: (TB, 3072) f32; w*_ref: (in, out) bf16; b*_ref: (1, out) f32
    # Cast to bf16 in-kernel (saves a separate HBM round-trip in the wrapper).
    x = x_ref[...].astype(jnp.bfloat16)

    # fc1 + ReLU (f32 accumulation on the MXU)
    h1 = jnp.dot(x, w1_ref[...], preferred_element_type=jnp.float32) + b1_ref[...]
    h1 = jnp.maximum(h1, 0.0).astype(jnp.bfloat16)

    # fc2 + ReLU
    h2 = jnp.dot(h1, w2_ref[...], preferred_element_type=jnp.float32) + b2_ref[...]
    h2 = jnp.maximum(h2, 0.0).astype(jnp.bfloat16)

    # fc3: 128-lane-dense logits; padded lanes carry bias -1e30 (weights are 0),
    # so they add zero probability mass and log_softmax over 128 lanes equals
    # log_softmax over the real 10 lanes.
    logits = jnp.dot(h2, w3_ref[...], preferred_element_type=jnp.float32) + b3_ref[...]

    # log_softmax along dim=1 (numerically stable shifted form)
    m = jnp.max(logits, axis=1, keepdims=True)
    shifted = logits - m
    lse = jnp.log(jnp.sum(jnp.exp(shifted), axis=1, keepdims=True))
    out_ref[...] = shifted - lse


def prepare_params(params):
    """One-time conversion of PyTorch-style (out,in) params into kernel-ready form."""
    w1, b1, w2, b2, w3, b3 = params
    w1p = jnp.zeros((IN_DIM, H1_PAD), jnp.bfloat16).at[:, :H1].set(
        w1.T.astype(jnp.bfloat16))
    b1p = jnp.zeros((1, H1_PAD), jnp.float32).at[0, :H1].set(b1)
    w2p = jnp.zeros((H1_PAD, H2_PAD), jnp.bfloat16).at[:H1, :H2].set(
        w2.T.astype(jnp.bfloat16))
    b2p = jnp.zeros((1, H2_PAD), jnp.float32).at[0, :H2].set(b2)
    w3p = jnp.zeros((H2_PAD, OUT_PAD), jnp.bfloat16).at[:H2, :OUT_DIM].set(
        w3.T.astype(jnp.bfloat16))
    # padded logit lanes must get a huge NEGATIVE bias (NOT zero) so exp() == 0
    b3p = jnp.full((1, OUT_PAD), NEG_BIG, jnp.float32).at[0, :OUT_DIM].set(b3)
    return (w1p, b1p, w2p, b2p, w3p, b3p)


@jax.jit
def net_forward(x_nchw, prepared):
    """Forward pass of Net. x_nchw: (B, 3, 32, 32) float32. Returns (B, 10) log-probs."""
    w1p, b1p, w2p, b2p, w3p, b3p = prepared
    B = x_nchw.shape[0]
    x = x_nchw.reshape(B, IN_DIM)                 # stays f32 -> single HBM read in-kernel

    TB = _pick_tile(B)
    Bp = _round_up(B, TB)
    if Bp != B:
        x = jnp.pad(x, ((0, Bp - B), (0, 0)))
    grid = (Bp // TB,)

    cost = pl.CostEstimate(
        flops=2 * Bp * (IN_DIM * H1_PAD + H1_PAD * H2_PAD + H2_PAD * OUT_PAD),
        transcendentals=Bp * OUT_PAD,
        bytes_accessed=(w1p.size + w2p.size + w3p.size) * 2
        + (b1p.size + b2p.size + b3p.size) * 4
        + Bp * IN_DIM * 4 + Bp * OUT_PAD * 4,
    )

    out = pl.pallas_call(
        mlp_kernel,
        out_shape=jax.ShapeDtypeStruct((Bp, OUT_PAD), jnp.float32),
        grid=grid,
        in_specs=[
            pl.BlockSpec((TB, IN_DIM), lambda i: (i, 0)),       # x: streamed per batch tile (f32)
            pl.BlockSpec((IN_DIM, H1_PAD), lambda i: (0, 0)),   # weights/biases: VMEM-resident
            pl.BlockSpec((1, H1_PAD), lambda i: (0, 0)),
            pl.BlockSpec((H1_PAD, H2_PAD), lambda i: (0, 0)),
            pl.BlockSpec((1, H2_PAD), lambda i: (0, 0)),
            pl.BlockSpec((H2_PAD, OUT_PAD), lambda i: (0, 0)),
            pl.BlockSpec((1, OUT_PAD), lambda i: (0, 0)),
        ],
        out_specs=pl.BlockSpec((TB, OUT_PAD), lambda i: (i, 0)),  # lane-dense (128) output
        compiler_params=pltpu.CompilerParams(
            dimension_semantics=("parallel",),   # batch tiles shard across TCs (v7x megacore)
            vmem_limit_bytes=32 << 20,           # ~20 MB worst-case footprint at TB=512
        ),
        cost_estimate=cost,
    )(x, w1p, b1p, w2p, b2p, w3p, b3p)
    return out[:B, :OUT_DIM]


def net_forward_ref(x_nchw, params):
    """Pure-JAX f32 reference (matches the PyTorch module exactly)."""
    w1, b1, w2, b2, w3, b3 = params
    x = x_nchw.reshape(x_nchw.shape[0], IN_DIM)
    h1 = jnp.maximum(x @ w1.T + b1, 0.0)
    h2 = jnp.maximum(h1 @ w2.T + b2, 0.0)
    logits = h2 @ w3.T + b3
    return jax.nn.log_softmax(logits, axis=1)


def init_params(key):
    """Deterministic PyTorch-Linear-style init: U(-1/sqrt(fan_in), 1/sqrt(fan_in))."""
    dims = [(H1, IN_DIM), (H2, H1), (OUT_DIM, H2)]
    params = []
    for (out_f, in_f) in dims:
        key, kw, kb = jax.random.split(key, 3)
        bound = 1.0 / jnp.sqrt(jnp.float32(in_f))
        w = jax.random.uniform(kw, (out_f, in_f), jnp.float32, -bound, bound)
        b = jax.random.uniform(kb, (out_f,), jnp.float32, -bound, bound)
        params += [w, b]
    return tuple(params)


if __name__ == "__main__":
    key = jax.random.PRNGKey(0)
    key, kx = jax.random.split(key)
    params = init_params(key)
    prepared = prepare_params(params)   # one-time: transpose + pad + bf16 cast

    # CIFAR-like small batch: (B=2, C=3, H=32, W=32)
    x = jax.random.normal(kx, (2, 3, 32, 32), jnp.float32)

    out = net_forward(x, prepared)
    out = jax.block_until_ready(out)

    # sanity: shape + log-probs sum (in exp) to 1 per row
    assert out.shape == (2, 10)
    rowsum = jnp.sum(jnp.exp(out), axis=1)
    assert bool(jnp.all(jnp.abs(rowsum - 1.0) < 1e-4))

    # correctness vs f32 reference (tolerance accounts for bf16 weights)
    ref = net_forward_ref(x, params)
    assert bool(jnp.max(jnp.abs(out - ref)) < 5e-2)

    # TODO(synk): the PyTorch module also stashes intermediate activations in Python
    # lists (fc1_outputs, ...); that stateful side-effect has no Pallas equivalent and
    # is omitted (forward output is unchanged).
    print("KERNEL_OK")
</pallas_src>

<mosaic_0001>
module attributes {stable_mosaic.version = 11 : i64} {
  func.func @mlp_kernel(%arg0: i32, %arg1: memref<16x3072xf32, #tpu.memory_space<vmem>>, %arg2: memref<3072x512xbf16, #tpu.memory_space<vmem>>, %arg3: memref<1x512xf32, #tpu.memory_space<vmem>>, %arg4: memref<512x128xbf16, #tpu.memory_space<vmem>>, %arg5: memref<1x128xf32, #tpu.memory_space<vmem>>, %arg6: memref<128x128xbf16, #tpu.memory_space<vmem>>, %arg7: memref<1x128xf32, #tpu.memory_space<vmem>>, %arg8: memref<16x128xf32, #tpu.memory_space<vmem>>) attributes {dimension_semantics = [#tpu.dimension_semantics<parallel>], iteration_bounds = array<i64: 1>, scalar_prefetch = 0 : i64, scratch_operands = 0 : i64, tpu.core_type = #tpu.core_type<tc>, window_params = [{transform_indices = @transform_0, window_bounds = array<i64: 16, 3072>}, {pipeline_mode = #tpu.pipeline_mode<synchronous>, transform_indices = @transform_1, window_bounds = array<i64: 3072, 512>}, {pipeline_mode = #tpu.pipeline_mode<synchronous>, transform_indices = @transform_2, window_bounds = array<i64: 1, 512>}, {pipeline_mode = #tpu.pipeline_mode<synchronous>, transform_indices = @transform_3, window_bounds = array<i64: 512, 128>}, {pipeline_mode = #tpu.pipeline_mode<synchronous>, transform_indices = @transform_4, window_bounds = array<i64: 1, 128>}, {pipeline_mode = #tpu.pipeline_mode<synchronous>, transform_indices = @transform_5, window_bounds = array<i64: 128, 128>}, {pipeline_mode = #tpu.pipeline_mode<synchronous>, transform_indices = @transform_6, window_bounds = array<i64: 1, 128>}, {transform_indices = @transform_7, window_bounds = array<i64: 16, 128>}]} {
    %c0 = arith.constant 0 : index
    %c0_0 = arith.constant 0 : index
    %0 = vector.load %arg1[%c0, %c0_0] : memref<16x3072xf32, #tpu.memory_space<vmem>>, vector<16x3072xf32>
    %1 = arith.truncf %0 : vector<16x3072xf32> to vector<16x3072xbf16>
    %c0_1 = arith.constant 0 : index
    %c0_2 = arith.constant 0 : index
    %2 = vector.load %arg2[%c0_1, %c0_2] : memref<3072x512xbf16, #tpu.memory_space<vmem>>, vector<3072x512xbf16>
    %cst = arith.constant dense<0.000000e+00> : vector<16x512xf32>
    %3 = tpu.matmul %1, %2, %cst {dimension_numbers = #tpu.dot_dimension_numbers<[1], [0], [0], [1], [0, 0, 1, 1], [], []>} : vector<16x3072xbf16>, vector<3072x512xbf16>, vector<16x512xf32> -> vector<16x512xf32>
    %c0_3 = arith.constant 0 : index
    %c0_4 = arith.constant 0 : index
    %4 = vector.load %arg3[%c0_3, %c0_4] : memref<1x512xf32, #tpu.memory_space<vmem>>, vector<1x512xf32>
    %5 = vector.broadcast %4 : vector<1x512xf32> to vector<16x512xf32>
    %6 = arith.addf %3, %5 : vector<16x512xf32>
    %cst_5 = arith.constant 0.000000e+00 : f32
    %7 = vector.broadcast %cst_5 : f32 to vector<16x512xf32>
    %8 = arith.maximumf %6, %7 : vector<16x512xf32>
    %9 = arith.truncf %8 : vector<16x512xf32> to vector<16x512xbf16>
    %c0_6 = arith.constant 0 : index
    %c0_7 = arith.constant 0 : index
    %10 = vector.load %arg4[%c0_6, %c0_7] : memref<512x128xbf16, #tpu.memory_space<vmem>>, vector<512x128xbf16>
    %cst_8 = arith.constant dense<0.000000e+00> : vector<16x128xf32>
    %11 = tpu.matmul %9, %10, %cst_8 {dimension_numbers = #tpu.dot_dimension_numbers<[1], [0], [0], [1], [0, 0, 1, 1], [], []>} : vector<16x512xbf16>, vector<512x128xbf16>, vector<16x128xf32> -> vector<16x128xf32>
    %c0_9 = arith.constant 0 : index
    %c0_10 = arith.constant 0 : index
    %12 = vector.load %arg5[%c0_9, %c0_10] : memref<1x128xf32, #tpu.memory_space<vmem>>, vector<1x128xf32>
    %13 = vector.broadcast %12 : vector<1x128xf32> to vector<16x128xf32>
    %14 = arith.addf %11, %13 : vector<16x128xf32>
    %cst_11 = arith.constant 0.000000e+00 : f32
    %15 = vector.broadcast %cst_11 : f32 to vector<16x128xf32>
    %16 = arith.maximumf %14, %15 : vector<16x128xf32>
    %17 = arith.truncf %16 : vector<16x128xf32> to vector<16x128xbf16>
    %c0_12 = arith.constant 0 : index
    %c0_13 = arith.constant 0 : index
    %18 = vector.load %arg6[%c0_12, %c0_13] : memref<128x128xbf16, #tpu.memory_space<vmem>>, vector<128x128xbf16>
    %cst_14 = arith.constant dense<0.000000e+00> : vector<16x128xf32>
    %19 = tpu.matmul %17, %18, %cst_14 {dimension_numbers = #tpu.dot_dimension_numbers<[1], [0], [0], [1], [0, 0, 1, 1], [], []>} : vector<16x128xbf16>, vector<128x128xbf16>, vector<16x128xf32> -> vector<16x128xf32>
    %c0_15 = arith.constant 0 : index
    %c0_16 = arith.constant 0 : index
    %20 = vector.load %arg7[%c0_15, %c0_16] : memref<1x128xf32, #tpu.memory_space<vmem>>, vector<1x128xf32>
    %21 = vector.broadcast %20 : vector<1x128xf32> to vector<16x128xf32>
    %22 = arith.addf %19, %21 : vector<16x128xf32>
    %cst_17 = arith.constant dense<0xFF800000> : vector<16xf32>
    %23 = vector.multi_reduction <maximumf>, %22, %cst_17 [1] : vector<16x128xf32> to vector<16xf32>
    %24 = vector.shape_cast %23 : vector<16xf32> to vector<16x1xf32>
    %25 = vector.broadcast %24 : vector<16x1xf32> to vector<16x128xf32>
    %26 = arith.subf %22, %25 : vector<16x128xf32>
    %27 = math.exp %26 : vector<16x128xf32>
    %cst_18 = arith.constant dense<0.000000e+00> : vector<16xf32>
    %28 = vector.multi_reduction <add>, %27, %cst_18 [1] : vector<16x128xf32> to vector<16xf32>
    %29 = vector.shape_cast %28 : vector<16xf32> to vector<16x1xf32>
    %30 = math.log %29 : vector<16x1xf32>
    %31 = vector.broadcast %30 : vector<16x1xf32> to vector<16x128xf32>
    %32 = arith.subf %26, %31 : vector<16x128xf32>
    %c0_19 = arith.constant 0 : index
    %c0_20 = arith.constant 0 : index
    %33 = vector.load %arg8[%c0_19, %c0_20] : memref<16x128xf32, #tpu.memory_space<vmem>>, vector<16x128xf32>
    tpu.vector_store %arg8[%c0_19, %c0_20], %32 {strides = array<i32>} : memref<16x128xf32, #tpu.memory_space<vmem>>, vector<16x128xf32>,
    return
  }
  func.func @transform_0(%arg0: i32) -> (i32, i32) {
    %c0_i32 = arith.constant 0 : i32
    %c0_i32_0 = arith.constant 0 : i32
    return %arg0, %c0_i32 : i32, i32
  }
  func.func @transform_1(%arg0: i32) -> (i32, i32) {
    %c0_i32 = arith.constant 0 : i32
    %c0_i32_0 = arith.constant 0 : i32
    %c0_i32_1 = arith.constant 0 : i32
    return %c0_i32, %c0_i32_0 : i32, i32
  }
  func.func @transform_2(%arg0: i32) -> (i32, i32) {
    %c0_i32 = arith.constant 0 : i32
    %c0_i32_0 = arith.constant 0 : i32
    %c0_i32_1 = arith.constant 0 : i32
    return %c0_i32, %c0_i32_0 : i32, i32
  }
  func.func @transform_3(%arg0: i32) -> (i32, i32) {
    %c0_i32 = arith.constant 0 : i32
    %c0_i32_0 = arith.constant 0 : i32
    %c0_i32_1 = arith.constant 0 : i32
    return %c0_i32, %c0_i32_0 : i32, i32
  }
  func.func @transform_4(%arg0: i32) -> (i32, i32) {
    %c0_i32 = arith.constant 0 : i32
    %c0_i32_0 = arith.constant 0 : i32
    %c0_i32_1 = arith.constant 0 : i32
    return %c0_i32, %c0_i32_0 : i32, i32
  }
  func.func @transform_5(%arg0: i32) -> (i32, i32) {
    %c0_i32 = arith.constant 0 : i32
    %c0_i32_0 = arith.constant 0 : i32
    %c0_i32_1 = arith.constant 0 : i32
    return %c0_i32, %c0_i32_0 : i32, i32
  }
  func.func @transform_6(%arg0: i32) -> (i32, i32) {
    %c0_i32 = arith.constant 0 : i32
    %c0_i32_0 = arith.constant 0 : i32
    %c0_i32_1 = arith.constant 0 : i32
    return %c0_i32, %c0_i32_0 : i32, i32
  }
  func.func @transform_7(%arg0: i32) -> (i32, i32) {
    %c0_i32 = arith.constant 0 : i32
    %c0_i32_0 = arith.constant 0 : i32
    return %arg0, %c0_i32 : i32, i32
  }
}

</mosaic_0001>

<bundles_post_ra>
// kernel: net_forward.1
= control target key start
LH: loop header
LB: loop body
LE: loop exit
PB: predicated region body
PF: predicated region fallthrough
CT: control target
= control target key end

     0   :  { %12 = vsyncpa [#allocation3], 0  ;;  %s9022_s0 = inlined_call_operand.vmem [shape: f32[16,3072], index: 0, kind: input, shape index: {}]   ;;  %s9023_s1 = inlined_call_operand.hbm [shape: bf16[3072,512], index: 1, kind: input, shape index: {}]   ;;  %s9024_s2 = inlined_call_operand.hbm [shape: f32[1,512], index: 2, kind: input, shape index: {}]   ;;  %s9025_s3 = inlined_call_operand.hbm [shape: bf16[512,128], index: 3, kind: input, shape index: {}]   ;;  %s9026_s4 = inlined_call_operand.hbm [shape: f32[1,128], index: 4, kind: input, shape index: {}]   ;;  %s9027_s5 = inlined_call_operand.hbm [shape: bf16[128,128], index: 5, kind: input, shape index: {}]   ;;  %s9028_s6 = inlined_call_operand.hbm [shape: f32[1,128], index: 6, kind: input, shape index: {}]   ;;  %s9029_s7 = inlined_call_operand.vmem [shape: f32[16,128], index: 7, kind: output, shape index: {}]  }
   0x1   :  { %13 = vsyncpa [#allocation5], 0 }
   0x2   :  { %14 = vsyncpa [#allocation8], 0 }
   0x3   :  { %15 = vsyncpa [#allocation11], 0  ;;  %s8562_s24 = smov [#allocation4]   ;;  %s8563_s26 = smov [#allocation7]  }
   0x4   :  { %s36_s25 = sshll.u32 %s8562_s24, 4  ;;  %s58_s27 = sshll.u32 %s8563_s26, 4  ;;  %s37_s25 = int_to_ptr.vmem [resolvable:$true] %s36_s25  ;;  %s59_s27 = int_to_ptr.vmem [resolvable:$true] %s58_s27 }
   0x5   :  { %s8442_s28 = scalar_lea.vmem %s37_s25, 64  ;;  %p8447_p1 = scmp.lt.s32.totalorder %s37_s25, %s37_s25 }
   0x6   :  { %p8443_p0 = scmp.ne.s32.totalorder %s37_s25, %s8442_s28  ;;  %p8448_p2 = scmp.lt.s32.totalorder %s8442_s28, %s8442_s28 }
   0x8   :  { %p8449_p3 = por %p8448_p2, %p8447_p1 }
   0xa   :  { %p8450_p4 = pnand %p8449_p3, %p8443_p0 }
   0xc   :  { %8453 = shalt.err (!%p8450_p4)
}
   0xd   :  { %39 = dma.hbm_to_vmem [thread:$0]  %s9024_s2, 64, %s37_s25, [#allocation5]  }
   0xe   :  { %s8462_s8 = scalar_lea.vmem %s59_s27, 16  ;;  %s8466_s9 = scalar_lea.vmem %s59_s27, 32 }
   0xf   :  { %p8463_p5 = scmp.ne.s32.totalorder %s59_s27, %s8462_s8  ;;  %p8467_p6 = scmp.lt.s32.totalorder %s59_s27, %s59_s27 }
  0x10   :  { %p8468_p7 = scmp.lt.s32.totalorder %s8466_s9, %s8462_s8 }
  0x12   :  { %p8469_p8 = por %p8468_p7, %p8467_p6 }
  0x14   :  { %p8470_p9 = pnand %p8469_p8, %p8463_p5 }
  0x16   :  { %8473 = shalt.err (!%p8470_p9)
}
  0x17   :  { %61 = dma.hbm_to_vmem [thread:$0]  %s9026_s4, 16, %s59_s27, [#allocation8]  }
  0x18   :  { %s8564_s12 = smov [#allocation2]  }
  0x19   :  { %s23_s13 = sshll.u32 %s8564_s12, 4  ;;  %s24_s13 = int_to_ptr.vmem [resolvable:$true] %s23_s13 }
  0x1a   :  { %s8482_s14 = scalar_lea.vmem %s24_s13, 98304  ;;  %p8487_p11 = scmp.lt.s32.totalorder %s24_s13, %s24_s13 }
  0x1b   :  { %p8483_p10 = scmp.ne.s32.totalorder %s24_s13, %s8482_s14  ;;  %p8488_p12 = scmp.lt.s32.totalorder %s8482_s14, %s8482_s14 }
  0x1d   :  { %p8489_p13 = por %p8488_p12, %p8487_p11 }
  0x1f   :  { %p8490_p0 = pnand %p8489_p13, %p8483_p10 }
  0x21   :  { %8493 = shalt.err (!%p8490_p0)
}
  0x22   :  { %s8565_s2 = smov 256   ;;  %s8566_s15 = smov 16  }
  0x23   :  { %29 = dma.hbm_to_vmem [thread:$0]  %s9023_s1, 98304, %s24_s13, [#allocation3], %s8565_s2, %s8565_s2, %s8566_s15  }
  0x24   :  { %s8567_s18 = smov [#allocation6]  }
  0x25   :  { %s45_s19 = sshll.u32 %s8567_s18, 4  ;;  %s46_s19 = int_to_ptr.vmem [resolvable:$true] %s45_s19 }
  0x26   :  { %s8502_s4 = scalar_lea.vmem %s46_s19, 4096  ;;  %p8507_p2 = scmp.lt.s32.totalorder %s46_s19, %s46_s19 }
  0x27   :  { %p8503_p1 = scmp.ne.s32.totalorder %s46_s19, %s8502_s4  ;;  %p8508_p3 = scmp.lt.s32.totalorder %s8502_s4, %s8502_s4 }
  0x29   :  { %p8509_p4 = por %p8508_p3, %p8507_p2 }
  0x2b   :  { %p8510_p5 = pnand %p8509_p4, %p8503_p1 }
  0x2d   :  { %8513 = shalt.err (!%p8510_p5)
}
  0x2e   :  { %s8568_s20 = smov 64   ;;  %s8569_s21 = smov 4  }
  0x2f   :  { %51 = dma.hbm_to_vmem [thread:$0]  %s9025_s3, 4096, %s46_s19, [#allocation5], %s8568_s20, %s8568_s20, %s8569_s21  }
  0x30   :  { %s8570_s24 = smov [#allocation9]   ;;  %s8571_s26 = smov [#allocation10]  }
  0x31   :  { %s67_s25 = sshll.u32 %s8570_s24, 4  ;;  %s80_s1 = sshll.u32 %s8571_s26, 4  ;;  %s68_s25 = int_to_ptr.vmem [resolvable:$true] %s67_s25  ;;  %s81_s1 = int_to_ptr.vmem [resolvable:$true] %s80_s1 }
  0x32   :  { %s8522_s27 = scalar_lea.vmem %s68_s25, 1024  ;;  %p8527_p7 = scmp.lt.s32.totalorder %s68_s25, %s68_s25 }
  0x33   :  { %p8523_p6 = scmp.ne.s32.totalorder %s68_s25, %s8522_s27  ;;  %p8528_p8 = scmp.lt.s32.totalorder %s8522_s27, %s8522_s27 }
  0x35   :  { %p8529_p9 = por %p8528_p8, %p8527_p7 }
  0x37   :  { %p8530_p10 = pnand %p8529_p9, %p8523_p6 }
  0x39   :  { %8533 = shalt.err (!%p8530_p10)
}
  0x3a   :  { %73 = dma.hbm_to_vmem [thread:$0]  %s9027_s5, 1024, %s68_s25, [#allocation8], %s8568_s20, %s8568_s20, %s8569_s21  }
  0x3b   :  { %s8542_s30 = scalar_lea.vmem %s81_s1, 16  ;;  %s8546_s3 = scalar_lea.vmem %s81_s1, 32 }
  0x3c   :  { %p8543_p11 = scmp.ne.s32.totalorder %s81_s1, %s8542_s30  ;;  %p8547_p12 = scmp.lt.s32.totalorder %s81_s1, %s81_s1 }
  0x3d   :  { %p8548_p13 = scmp.lt.s32.totalorder %s8546_s3, %s8542_s30 }
  0x3f   :  { %p8549_p0 = por %p8548_p13, %p8547_p12 }
  0x41   :  { %p8550_p1 = pnand %p8549_p0, %p8543_p11 }
  0x43   :  { %8553 = shalt.err (!%p8550_p1)
}
  0x44   :  { %83 = dma.hbm_to_vmem [thread:$0]  %s9028_s6, 16, %s81_s1, [#allocation11]  }
  0x45   :  { %8554 = dma.done.wait [#allocation3], 98304  }
  0x46   :  { %8555 = vsyncadd [#allocation3], 4294868992 }
  0x47   :  { %8556 = dma.done.wait [#allocation5], 4160  }
  0x48   :  { %8557 = vsyncadd [#allocation5], 4294963136 }
  0x49   :  { %8558 = dma.done.wait [#allocation8], 1040  }
  0x4a   :  { %8559 = vsyncadd [#allocation8], 4294966256 }
  0x4b   :  { %8560 = dma.done.wait [#allocation11], 16  }
  0x4c   :  { %8561 = vsyncadd [#allocation11], 4294967280  ;;  %v7234_v0 = vld [vmem:[#allocation2 + $0xe4] ss:$16 sps:$4 sm:$0xff]   ;;  %v7238_v2 = vld [vmem:[#allocation2 + $0xe0] ss:$16 sps:$4 sm:$0xff]  }
  0x4d   :  { %v7236_v1 = vld [vmem:[#allocation2 + $0x2e4] ss:$16 sps:$4 sm:$0xff]   ;;  %4805 = vmatprep.subr.bf16.mxu0 %v7234_v0  ;;  %v7239_v3 = vld [vmem:[#allocation2 + $0x2e0] ss:$16 sps:$4 sm:$0xff]   ;;  %v104_v46 = vld [vmem:[%s9022_s0 + $0x8] sm:$0xff]  ;;  %vm8573_vm0 = vmmov 0  }
  0x4e   :  { %4848 = vmatprep.subr.bf16.mxu1 %v7236_v1  ;;  %v7240_v4 = vld [vmem:[#allocation2 + $0xc4] ss:$16 sps:$4 sm:$0xff]   ;;  %4806 = vmatpush1.bf16.msra.mxu0 %v7238_v2  ;;  %v7244_v6 = vld [vmem:[#allocation2 + $0xc0] ss:$16 sps:$4 sm:$0xff]   ;;  %v128_v47 = vld [vmem:[%s9022_s0 + $0xc8] sm:$0xff] }
  0x4f   :  { %4849 = vmatpush1.bf16.msra.mxu1 %v7239_v3  ;;  %v7242_v5 = vld [vmem:[#allocation2 + $0x2c4] ss:$16 sps:$4 sm:$0xff]   ;;  %4807 = vmatprep.subr.bf16.mxu0 %v7240_v4  ;;  %v7245_v7 = vld [vmem:[#allocation2 + $0x2c0] ss:$16 sps:$4 sm:$0xff]   ;;  %v106_v48 = vld [vmem:[%s9022_s0 + $0x18] sm:$0xff]  ;;  %v8644_v53 = vpack.c.bf16 %v128_v47, %v104_v46 }
  0x50   :  { %4850 = vmatprep.subr.bf16.mxu1 %v7242_v5  ;;  %v7246_v8 = vld [vmem:[#allocation2 + $0xa4] ss:$16 sps:$4 sm:$0xff]   ;;  %v7250_v10 = vld [vmem:[#allocation2 + $0xa0] ss:$16 sps:$4 sm:$0xff]   ;;  %v130_v49 = vld [vmem:[%s9022_s0 + $0xd8] sm:$0xff] }
  0x51   :  { %v7248_v9 = vld [vmem:[#allocation2 + $0x2a4] ss:$16 sps:$4 sm:$0xff]   ;;  %v7251_v11 = vld [vmem:[#allocation2 + $0x2a0] ss:$16 sps:$4 sm:$0xff]   ;;  %v8646_v54 = vpack.c.bf16 %v130_v49, %v106_v48  ;;  %4837 = vmatprep.mubr.bf16.mxu0 %v8644_v53  ;;  %v134_v46 = vld [vmem:[%s9022_s0 + $0xf8] sm:$0xff] }
  0x52   :  { %4808 = vmatpush1.bf16.msra.mxu0 %v7244_v6  ;;  %v7252_v12 = vld [vmem:[#allocation2 + $0x84] ss:$16 sps:$4 sm:$0xff]   ;;  %v7256_v14 = vld [vmem:[#allocation2 + $0x80] ss:$16 sps:$4 sm:$0xff]  }
  0x53   :  { %4851 = vmatpush1.bf16.msra.mxu1 %v7245_v7  ;;  %4809 = vmatprep.subr.bf16.mxu0 %v7246_v8  ;;  %v7254_v13 = vld [vmem:[#allocation2 + $0x284] ss:$16 sps:$4 sm:$0xff]   ;;  %v7257_v15 = vld [vmem:[#allocation2 + $0x280] ss:$16 sps:$4 sm:$0xff]  }
  0x54   :  { %4852 = vmatprep.subr.bf16.mxu1 %v7248_v9  ;;  %v7258_v16 = vld [vmem:[#allocation2 + $0x64] ss:$16 sps:$4 sm:$0xff]   ;;  %v7262_v18 = vld [vmem:[#allocation2 + $0x60] ss:$16 sps:$4 sm:$0xff]   ;;  %4880 = vmatprep.mubr.bf16.mxu1 %v8646_v54 }
  0x55   :  { %v7260_v17 = vld [vmem:[#allocation2 + $0x264] ss:$16 sps:$4 sm:$0xff]   ;;  %v7263_v19 = vld [vmem:[#allocation2 + $0x260] ss:$16 sps:$4 sm:$0xff]  }
  0x56   :  { %4810 = vmatpush1.bf16.msra.mxu0 %v7250_v10  ;;  %v7264_v20 = vld [vmem:[#allocation2 + $0x44] ss:$16 sps:$4 sm:$0xff]   ;;  %v7268_v22 = vld [vmem:[#allocation2 + $0x40] ss:$16 sps:$4 sm:$0xff]  }
  0x57   :  { %4853 = vmatpush1.bf16.msra.mxu1 %v7251_v11  ;;  %4811 = vmatprep.subr.bf16.mxu0 %v7252_v12  ;;  %v7266_v21 = vld [vmem:[#allocation2 + $0x244] ss:$16 sps:$4 sm:$0xff]   ;;  %v7269_v23 = vld [vmem:[#allocation2 + $0x240] ss:$16 sps:$4 sm:$0xff]  }
  0x58   :  { %4854 = vmatprep.subr.bf16.mxu1 %v7254_v13  ;;  %v7270_v24 = vld [vmem:[#allocation2 + $0x24] ss:$16 sps:$4 sm:$0xff]   ;;  %v7274_v26 = vld [vmem:[#allocation2 + $0x20] ss:$16 sps:$4 sm:$0xff]  }
  0x59   :  { %v7272_v25 = vld [vmem:[#allocation2 + $0x224] ss:$16 sps:$4 sm:$0xff]   ;;  %v7275_v27 = vld [vmem:[#allocation2 + $0x220] ss:$16 sps:$4 sm:$0xff]  }
  0x5a   :  { %4812 = vmatpush1.bf16.msra.mxu0 %v7256_v14  ;;  %v7276_v28 = vld [vmem:[#allocation2 + $0x4] ss:$16 sps:$4 sm:$0xff]   ;;  %v7280_v30 = vld [vmem:[#allocation2] ss:$16 sps:$4 sm:$0xff]  }
  0x5b   :  { %4855 = vmatpush1.bf16.msra.mxu1 %v7257_v15  ;;  %4813 = vmatprep.subr.bf16.mxu0 %v7258_v16  ;;  %v7278_v29 = vld [vmem:[#allocation2 + $0x204] ss:$16 sps:$4 sm:$0xff]   ;;  %v7281_v31 = vld [vmem:[#allocation2 + $0x200] ss:$16 sps:$4 sm:$0xff]  }
  0x5c   :  { %4856 = vmatprep.subr.bf16.mxu1 %v7260_v17  ;;  %v7282_v32 = vld [vmem:[#allocation2 + $0x1e4] ss:$16 sps:$4 sm:$0xff]   ;;  %v7286_v34 = vld [vmem:[#allocation2 + $0x1e0] ss:$16 sps:$4 sm:$0xff]  }
  0x5d   :  { %v7284_v33 = vld [vmem:[#allocation2 + $0x3e4] ss:$16 sps:$4 sm:$0xff]   ;;  %v7287_v35 = vld [vmem:[#allocation2 + $0x3e0] ss:$16 sps:$4 sm:$0xff]  }
  0x5e   :  { %4814 = vmatpush1.bf16.msra.mxu0 %v7262_v18  ;;  %v7288_v36 = vld [vmem:[#allocation2 + $0x1c4] ss:$16 sps:$4 sm:$0xff]   ;;  %v7292_v38 = vld [vmem:[#allocation2 + $0x1c0] ss:$16 sps:$4 sm:$0xff]  }
  0x5f   :  { %4857 = vmatpush1.bf16.msra.mxu1 %v7263_v19  ;;  %4815 = vmatprep.subr.bf16.mxu0 %v7264_v20  ;;  %v7290_v37 = vld [vmem:[#allocation2 + $0x3c4] ss:$16 sps:$4 sm:$0xff]   ;;  %v7293_v39 = vld [vmem:[#allocation2 + $0x3c0] ss:$16 sps:$4 sm:$0xff]  }
  0x60   :  { %4858 = vmatprep.subr.bf16.mxu1 %v7266_v21  ;;  %v7294_v40 = vld [vmem:[#allocation2 + $0x1a4] ss:$16 sps:$4 sm:$0xff]   ;;  %v7298_v42 = vld [vmem:[#allocation2 + $0x1a0] ss:$16 sps:$4 sm:$0xff]  }
  0x61   :  { %v7296_v41 = vld [vmem:[#allocation2 + $0x3a4] ss:$16 sps:$4 sm:$0xff]   ;;  %v7299_v43 = vld [vmem:[#allocation2 + $0x3a0] ss:$16 sps:$4 sm:$0xff]  }
  0x62   :  { %4816 = vmatpush1.bf16.msra.mxu0 %v7268_v22  ;;  %v7300_v44 = vld [vmem:[#allocation2 + $0x184] ss:$16 sps:$4 sm:$0xff]   ;;  %v7304_v50 = vld [vmem:[#allocation2 + $0x180] ss:$16 sps:$4 sm:$0xff]  }
  0x63   :  { %4859 = vmatpush1.bf16.msra.mxu1 %v7269_v23  ;;  %4817 = vmatprep.subr.bf16.mxu0 %v7270_v24  ;;  %v7302_v45 = vld [vmem:[#allocation2 + $0x384] ss:$16 sps:$4 sm:$0xff]   ;;  %v7305_v51 = vld [vmem:[#allocation2 + $0x380] ss:$16 sps:$4 sm:$0xff]  }
  0x64   :  { %4860 = vmatprep.subr.bf16.mxu1 %v7272_v25  ;;  %v7306_v52 = vld [vmem:[#allocation2 + $0x164] ss:$16 sps:$4 sm:$0xff]   ;;  %v7310_v56 = vld [vmem:[#allocation2 + $0x160] ss:$16 sps:$4 sm:$0xff]  }
  0x65   :  { %v7308_v55 = vld [vmem:[#allocation2 + $0x364] ss:$16 sps:$4 sm:$0xff]   ;;  %v7311_v57 = vld [vmem:[#allocation2 + $0x360] ss:$16 sps:$4 sm:$0xff]  }
  0x66   :  { %4818 = vmatpush1.bf16.msra.mxu0 %v7274_v26  ;;  %v7312_v58 = vld [vmem:[#allocation2 + $0x144] ss:$16 sps:$4 sm:$0xff]   ;;  %v7316_v60 = vld [vmem:[#allocation2 + $0x140] ss:$16 sps:$4 sm:$0xff]  }
  0x67   :  { %4861 = vmatpush1.bf16.msra.mxu1 %v7275_v27  ;;  %4819 = vmatprep.subr.bf16.mxu0 %v7276_v28  ;;  %v7314_v59 = vld [vmem:[#allocation2 + $0x344] ss:$16 sps:$4 sm:$0xff]   ;;  %v7317_v61 = vld [vmem:[#allocation2 + $0x340] ss:$16 sps:$4 sm:$0xff]  }
  0x68   :  { %4862 = vmatprep.subr.bf16.mxu1 %v7278_v29  ;;  %v7318_v62 = vld [vmem:[#allocation2 + $0x124] ss:$16 sps:$4 sm:$0xff]   ;;  %v7322_v0 = vld [vmem:[#allocation2 + $0x120] ss:$16 sps:$4 sm:$0xff]  }
  0x69   :  { %v7320_v63 = vld [vmem:[#allocation2 + $0x324] ss:$16 sps:$4 sm:$0xff]   ;;  %v7323_v1 = vld [vmem:[#allocation2 + $0x320] ss:$16 sps:$4 sm:$0xff]  }
  0x6a   :  { %4820 = vmatpush1.bf16.msra.mxu0 %v7280_v30  ;;  %v7324_v2 = vld [vmem:[#allocation2 + $0x104] ss:$16 sps:$4 sm:$0xff]   ;;  %v7328_v4 = vld [vmem:[#allocation2 + $0x100] ss:$16 sps:$4 sm:$0xff]  }
  0x6b   :  { %4863 = vmatpush1.bf16.msra.mxu1 %v7281_v31  ;;  %4821 = vmatprep.subr.bf16.mxu0 %v7282_v32  ;;  %v7326_v3 = vld [vmem:[#allocation2 + $0x304] ss:$16 sps:$4 sm:$0xff]   ;;  %v7329_v5 = vld [vmem:[#allocation2 + $0x300] ss:$16 sps:$4 sm:$0xff]  }
  0x6c   :  { %4864 = vmatprep.subr.bf16.mxu1 %v7284_v33  ;;  %v103_v6 = vld [vmem:[%s9022_s0] sm:$0xff]  ;;  %v105_v8 = vld [vmem:[%s9022_s0 + $0x10] sm:$0xff] }
  0x6d   :  { %v127_v7 = vld [vmem:[%s9022_s0 + $0xc0] sm:$0xff]  ;;  %v129_v9 = vld [vmem:[%s9022_s0 + $0xd0] sm:$0xff] }
  0x6e   :  { %4822 = vmatpush2.bf16.msra.mxu0 %v7286_v34  ;;  %v7332_v10 = vld [vmem:[#allocation2 + $0x4e4] ss:$16 sps:$4 sm:$0xff]   ;;  %v8662_v12 = vpack.c.bf16 %v127_v7, %v103_v6  ;;  %v8664_v13 = vpack.c.bf16 %v129_v9, %v105_v8  ;;  %v7330_v14 = vld [vmem:[#allocation2 + $0x4e0] ss:$16 sps:$4 sm:$0xff]  }
  0x6f   :  { %4865 = vmatpush2.bf16.msra.mxu1 %v7287_v35  ;;  %4823 = vmatprep.subr.bf16.mxu0 %v7288_v36  ;;  %v7335_v11 = vld [vmem:[#allocation2 + $0x6e4] ss:$16 sps:$4 sm:$0xff]   ;;  %v7333_v15 = vld [vmem:[#allocation2 + $0x6e0] ss:$16 sps:$4 sm:$0xff]  }
  0x70   :  { %4866 = vmatprep.subr.bf16.mxu1 %v7290_v37  ;;  %v7338_v16 = vld [vmem:[#allocation2 + $0x4c4] ss:$16 sps:$4 sm:$0xff]   ;;  %v7336_v18 = vld [vmem:[#allocation2 + $0x4c0] ss:$16 sps:$4 sm:$0xff]  }
  0x71   :  { %v7341_v17 = vld [vmem:[#allocation2 + $0x6c4] ss:$16 sps:$4 sm:$0xff]   ;;  %v7339_v19 = vld [vmem:[#allocation2 + $0x6c0] ss:$16 sps:$4 sm:$0xff]  }
  0x72   :  { %4824 = vmatpush2.bf16.msra.mxu0 %v7292_v38  ;;  %v7344_v20 = vld [vmem:[#allocation2 + $0x4a4] ss:$16 sps:$4 sm:$0xff]   ;;  %v7342_v22 = vld [vmem:[#allocation2 + $0x4a0] ss:$16 sps:$4 sm:$0xff]  }
  0x73   :  { %4867 = vmatpush2.bf16.msra.mxu1 %v7293_v39  ;;  %4825 = vmatprep.subr.bf16.mxu0 %v7294_v40  ;;  %v7347_v21 = vld [vmem:[#allocation2 + $0x6a4] ss:$16 sps:$4 sm:$0xff]   ;;  %v7345_v23 = vld [vmem:[#allocation2 + $0x6a0] ss:$16 sps:$4 sm:$0xff]   ;;  %v108_v40 = vld [vmem:[%s9022_s0 + $0x28] sm:$0xff] }
  0x74   :  { %4868 = vmatprep.subr.bf16.mxu1 %v7296_v41  ;;  %v7350_v24 = vld [vmem:[#allocation2 + $0x484] ss:$16 sps:$4 sm:$0xff]   ;;  %v7348_v26 = vld [vmem:[#allocation2 + $0x480] ss:$16 sps:$4 sm:$0xff]   ;;  %v132_v41 = vld [vmem:[%s9022_s0 + $0xe8] sm:$0xff] }
  0x75   :  { %v7353_v25 = vld [vmem:[#allocation2 + $0x684] ss:$16 sps:$4 sm:$0xff]   ;;  %v7351_v27 = vld [vmem:[#allocation2 + $0x680] ss:$16 sps:$4 sm:$0xff]  }
  0x76   :  { %4826 = vmatpush2.bf16.msra.mxu0 %v7298_v42  ;;  %v7356_v28 = vld [vmem:[#allocation2 + $0x464] ss:$16 sps:$4 sm:$0xff]   ;;  %v7354_v30 = vld [vmem:[#allocation2 + $0x460] ss:$16 sps:$4 sm:$0xff]   ;;  %v110_v42 = vld [vmem:[%s9022_s0 + $0x38] sm:$0xff] }
  0x77   :  { %4869 = vmatpush2.bf16.msra.mxu1 %v7299_v43  ;;  %4827 = vmatprep.subr.bf16.mxu0 %v7300_v44  ;;  %v7359_v29 = vld [vmem:[#allocation2 + $0x664] ss:$16 sps:$4 sm:$0xff]   ;;  %v7357_v31 = vld [vmem:[#allocation2 + $0x660] ss:$16 sps:$4 sm:$0xff]   ;;  %v8682_v47 = vpack.c.bf16 %v134_v46, %v110_v42  ;;  %v138_v42 = vld [vmem:[%s9022_s0 + $0x118] sm:$0xff] }
  0x78   :  { %4870 = vmatprep.subr.bf16.mxu1 %v7302_v45  ;;  %v7362_v32 = vld [vmem:[#allocation2 + $0x444] ss:$16 sps:$4 sm:$0xff]   ;;  %v7360_v34 = vld [vmem:[#allocation2 + $0x440] ss:$16 sps:$4 sm:$0xff]   ;;  %v8677_v45 = vpack.c.bf16 %v132_v41, %v108_v40  ;;  %v114_v41 = vld [vmem:[%s9022_s0 + $0x58] sm:$0xff] }
  0x79   :  { %v7365_v33 = vld [vmem:[#allocation2 + $0x644] ss:$16 sps:$4 sm:$0xff]   ;;  %v7363_v35 = vld [vmem:[#allocation2 + $0x640] ss:$16 sps:$4 sm:$0xff]   ;;  %v8718_v46 = vpack.c.bf16 %v138_v42, %v114_v41 }
  0x7a   :  { %4828 = vmatpush2.bf16.msra.mxu0 %v7304_v50  ;;  %v7368_v36 = vld [vmem:[#allocation2 + $0x424] ss:$16 sps:$4 sm:$0xff]   ;;  %v7366_v38 = vld [vmem:[#allocation2 + $0x420] ss:$16 sps:$4 sm:$0xff]  }
  0x7b   :  { %4871 = vmatpush2.bf16.msra.mxu1 %v7305_v51  ;;  %4829 = vmatprep.subr.bf16.mxu0 %v7306_v52  ;;  %v7371_v37 = vld [vmem:[#allocation2 + $0x624] ss:$16 sps:$4 sm:$0xff]   ;;  %v7369_v39 = vld [vmem:[#allocation2 + $0x620] ss:$16 sps:$4 sm:$0xff]  }
  0x7c   :  { %4872 = vmatprep.subr.bf16.mxu1 %v7308_v55  ;;  %v7374_v43 = vld [vmem:[#allocation2 + $0x404] ss:$16 sps:$4 sm:$0xff]   ;;  %v7372_v48 = vld [vmem:[#allocation2 + $0x400] ss:$16 sps:$4 sm:$0xff]  }
  0x7d   :  { %v7377_v44 = vld [vmem:[#allocation2 + $0x604] ss:$16 sps:$4 sm:$0xff]   ;;  %v7375_v49 = vld [vmem:[#allocation2 + $0x600] ss:$16 sps:$4 sm:$0xff]  }
  0x7e   :  { %4830 = vmatpush2.bf16.msra.mxu0 %v7310_v56  ;;  %v7380_v50 = vld [vmem:[#allocation2 + $0x5e4] ss:$16 sps:$4 sm:$0xff]   ;;  %v7378_v52 = vld [vmem:[#allocation2 + $0x5e0] ss:$16 sps:$4 sm:$0xff]  }
  0x7f   :  { %4873 = vmatpush2.bf16.msra.mxu1 %v7311_v57  ;;  %4831 = vmatprep.subr.bf16.mxu0 %v7312_v58  ;;  %v7383_v51 = vld [vmem:[#allocation2 + $0x7e4] ss:$16 sps:$4 sm:$0xff]   ;;  %v7381_v55 = vld [vmem:[#allocation2 + $0x7e0] ss:$16 sps:$4 sm:$0xff]  }
  0x80   :  { %4874 = vmatprep.subr.bf16.mxu1 %v7314_v59  ;;  %v7386_v56 = vld [vmem:[#allocation2 + $0x5c4] ss:$16 sps:$4 sm:$0xff]   ;;  %v7384_v58 = vld [vmem:[#allocation2 + $0x5c0] ss:$16 sps:$4 sm:$0xff]  }
  0x81   :  { %v7389_v57 = vld [vmem:[#allocation2 + $0x7c4] ss:$16 sps:$4 sm:$0xff]   ;;  %v7387_v59 = vld [vmem:[#allocation2 + $0x7c0] ss:$16 sps:$4 sm:$0xff]  }
  0x82   :  { %4832 = vmatpush2.bf16.msra.mxu0 %v7316_v60  ;;  %v7392_v60 = vld [vmem:[#allocation2 + $0x5a4] ss:$16 sps:$4 sm:$0xff]   ;;  %v7402_v6 = vld [vmem:[#allocation2 + $0x560] ss:$16 sps:$4 sm:$0xff]  }
  0x83   :  { %4875 = vmatpush2.bf16.msra.mxu1 %v7317_v61  ;;  %4833 = vmatprep.subr.bf16.mxu0 %v7318_v62  ;;  %v7395_v61 = vld [vmem:[#allocation2 + $0x7a4] ss:$16 sps:$4 sm:$0xff]   ;;  %v7390_v62 = vld [vmem:[#allocation2 + $0x5a0] ss:$16 sps:$4 sm:$0xff]  }
  0x84   :  { %4876 = vmatprep.subr.bf16.mxu1 %v7320_v63  ;;  %v7393_v63 = vld [vmem:[#allocation2 + $0x7a0] ss:$16 sps:$4 sm:$0xff]   ;;  %v7410_v8 = vld [vmem:[#allocation2 + $0x544] ss:$16 sps:$4 sm:$0xff]  }
  0x85   :  { %v7405_v7 = vld [vmem:[#allocation2 + $0x760] ss:$16 sps:$4 sm:$0xff]   ;;  %v7413_v9 = vld [vmem:[#allocation2 + $0x744] ss:$16 sps:$4 sm:$0xff]  }
  0x86   :  { %4834 = vmatpush2.bf16.msra.mxu0 %v7322_v0  ;;  %v7398_v0 = vld [vmem:[#allocation2 + $0x584] ss:$16 sps:$4 sm:$0xff]   ;;  %v7516_v41 = vld [vmem:[#allocation2 + $0x900] ss:$16 sps:$4 sm:$0xff]  }
  0x87   :  { %4877 = vmatpush2.bf16.msra.mxu1 %v7323_v1  ;;  %4835 = vmatprep.subr.bf16.mxu0 %v7324_v2  ;;  %v7401_v1 = vld [vmem:[#allocation2 + $0x784] ss:$16 sps:$4 sm:$0xff]   ;;  %v7396_v2 = vld [vmem:[#allocation2 + $0x580] ss:$16 sps:$4 sm:$0xff]  }
  0x88   :  { %4878 = vmatprep.subr.bf16.mxu1 %v7326_v3  ;;  %v7399_v3 = vld [vmem:[#allocation2 + $0x780] ss:$16 sps:$4 sm:$0xff]  }
  0x89   :  { %v7519_v42 = vld [vmem:[#allocation2 + $0xb00] ss:$16 sps:$4 sm:$0xff]  }
  0x8a   :  { %4836 = vmatpush2.bf16.msra.mxu0 %v7328_v4  ;;  %v7404_v4 = vld [vmem:[#allocation2 + $0x564] ss:$16 sps:$4 sm:$0xff]  }
  0x8b   :  { %4879 = vmatpush2.bf16.msra.mxu1 %v7329_v5  ;;  %4891 = vmatprep.subr.bf16.mxu0 %v7332_v10  ;;  %v7407_v5 = vld [vmem:[#allocation2 + $0x764] ss:$16 sps:$4 sm:$0xff]   ;;  %v7408_v10 = vld [vmem:[#allocation2 + $0x540] ss:$16 sps:$4 sm:$0xff]  }
  0x8c   :  { %4934 = vmatprep.subr.bf16.mxu1 %v7335_v11  ;;  %v7411_v11 = vld [vmem:[#allocation2 + $0x740] ss:$16 sps:$4 sm:$0xff]  }
  0x8d   :  { %4838 = vmatmul.mubr.bf16.vlgmr.msra.gmra.mxu0 %v8662_v12 }
  0x8e   :  { %4881 = vmatmul.mubr.bf16.vlgmr.msra.gmra.mxu1 %v8664_v13  ;;  %4892 = vmatpush1.bf16.msra.mxu0 %v7330_v14  ;;  %v7416_v14 = vld [vmem:[#allocation2 + $0x524] ss:$16 sps:$4 sm:$0xff]  }
  0x8f   :  { %4935 = vmatpush1.bf16.msra.mxu1 %v7333_v15  ;;  %4893 = vmatprep.subr.bf16.mxu0 %v7338_v16  ;;  %v7419_v15 = vld [vmem:[#allocation2 + $0x724] ss:$16 sps:$4 sm:$0xff]   ;;  %v7414_v16 = vld [vmem:[#allocation2 + $0x520] ss:$16 sps:$4 sm:$0xff]  }
  0x90   :  { %4936 = vmatprep.subr.bf16.mxu1 %v7341_v17  ;;  %4923 = vmatprep.mubr.bf16.mxu0 %v8677_v45  ;;  %v7417_v17 = vld [vmem:[#allocation2 + $0x720] ss:$16 sps:$4 sm:$0xff]  }
  0x91   :  { %4966 = vmatprep.mubr.bf16.mxu1 %v8682_v47 }
  0x92   :  { %4894 = vmatpush1.bf16.msra.mxu0 %v7336_v18  ;;  %v7422_v18 = vld [vmem:[#allocation2 + $0x504] ss:$16 sps:$4 sm:$0xff]  }
  0x93   :  { %4937 = vmatpush1.bf16.msra.mxu1 %v7339_v19  ;;  %4895 = vmatprep.subr.bf16.mxu0 %v7344_v20  ;;  %v7425_v19 = vld [vmem:[#allocation2 + $0x704] ss:$16 sps:$4 sm:$0xff]   ;;  %v7420_v20 = vld [vmem:[#allocation2 + $0x500] ss:$16 sps:$4 sm:$0xff]  }
  0x94   :  { %4938 = vmatprep.subr.bf16.mxu1 %v7347_v21  ;;  %v7423_v21 = vld [vmem:[#allocation2 + $0x700] ss:$16 sps:$4 sm:$0xff]  }
  0x96   :  { %4896 = vmatpush1.bf16.msra.mxu0 %v7342_v22  ;;  %v107_v22 = vld [vmem:[%s9022_s0 + $0x20] sm:$0xff] }
  0x97   :  { %4939 = vmatpush1.bf16.msra.mxu1 %v7345_v23  ;;  %4897 = vmatprep.subr.bf16.mxu0 %v7350_v24  ;;  %v131_v23 = vld [vmem:[%s9022_s0 + $0xe0] sm:$0xff]  ;;  %v109_v24 = vld [vmem:[%s9022_s0 + $0x30] sm:$0xff] }
  0x98   :  { %4940 = vmatprep.subr.bf16.mxu1 %v7353_v25  ;;  %v133_v25 = vld [vmem:[%s9022_s0 + $0xf0] sm:$0xff] }
  0x9a   :  { %4898 = vmatpush1.bf16.msra.mxu0 %v7348_v26  ;;  %v7428_v26 = vld [vmem:[#allocation2 + $0x8e4] ss:$16 sps:$4 sm:$0xff]  }
  0x9b   :  { %4941 = vmatpush1.bf16.msra.mxu1 %v7351_v27  ;;  %4899 = vmatprep.subr.bf16.mxu0 %v7356_v28  ;;  %v7431_v27 = vld [vmem:[#allocation2 + $0xae4] ss:$16 sps:$4 sm:$0xff]   ;;  %v8698_v28 = vpack.c.bf16 %v131_v23, %v107_v22  ;;  %v7492_v22 = vld [vmem:[#allocation2 + $0x980] ss:$16 sps:$4 sm:$0xff]  }
  0x9c   :  { %4942 = vmatprep.subr.bf16.mxu1 %v7359_v29  ;;  %v8700_v29 = vpack.c.bf16 %v133_v25, %v109_v24  ;;  %v7495_v23 = vld [vmem:[#allocation2 + $0xb80] ss:$16 sps:$4 sm:$0xff]   ;;  %v7500_v24 = vld [vmem:[#allocation2 + $0x964] ss:$16 sps:$4 sm:$0xff]  }
  0x9d   :  { %v7503_v25 = vld [vmem:[#allocation2 + $0xb64] ss:$16 sps:$4 sm:$0xff]  }
  0x9e   :  { %4900 = vmatpush1.bf16.msra.mxu0 %v7354_v30  ;;  %v7426_v30 = vld [vmem:[#allocation2 + $0x8e0] ss:$16 sps:$4 sm:$0xff]  }
  0x9f   :  { %4943 = vmatpush1.bf16.msra.mxu1 %v7357_v31  ;;  %4901 = vmatprep.subr.bf16.mxu0 %v7362_v32  ;;  %v7429_v31 = vld [vmem:[#allocation2 + $0xae0] ss:$16 sps:$4 sm:$0xff]   ;;  %v7434_v32 = vld [vmem:[#allocation2 + $0x8c4] ss:$16 sps:$4 sm:$0xff]  }
  0xa0   :  { %4944 = vmatprep.subr.bf16.mxu1 %v7365_v33  ;;  %v7437_v33 = vld [vmem:[#allocation2 + $0xac4] ss:$16 sps:$4 sm:$0xff]  }
  0xa2   :  { %4902 = vmatpush1.bf16.msra.mxu0 %v7360_v34  ;;  %v7432_v34 = vld [vmem:[#allocation2 + $0x8c0] ss:$16 sps:$4 sm:$0xff]  }
  0xa3   :  { %4945 = vmatpush1.bf16.msra.mxu1 %v7363_v35  ;;  %4903 = vmatprep.subr.bf16.mxu0 %v7368_v36  ;;  %v7435_v35 = vld [vmem:[#allocation2 + $0xac0] ss:$16 sps:$4 sm:$0xff]   ;;  %v7440_v36 = vld [vmem:[#allocation2 + $0x8a4] ss:$16 sps:$4 sm:$0xff]  }
  0xa4   :  { %4946 = vmatprep.subr.bf16.mxu1 %v7371_v37  ;;  %v7443_v37 = vld [vmem:[#allocation2 + $0xaa4] ss:$16 sps:$4 sm:$0xff]  }
  0xa6   :  { %4904 = vmatpush1.bf16.msra.mxu0 %v7366_v38  ;;  %v112_v38 = vld [vmem:[%s9022_s0 + $0x48] sm:$0xff] }
  0xa7   :  { %4947 = vmatpush1.bf16.msra.mxu1 %v7369_v39  ;;  %4905 = vmatprep.subr.bf16.mxu0 %v7374_v43  ;;  %v136_v39 = vld [vmem:[%s9022_s0 + $0x108] sm:$0xff]  ;;  %v7438_v43 = vld [vmem:[#allocation2 + $0x8a0] ss:$16 sps:$4 sm:$0xff]  }
  0xa8   :  { %4948 = vmatprep.subr.bf16.mxu1 %v7377_v44  ;;  %v8710_v40 = vpack.c.bf16 %v136_v39, %v112_v38  ;;  %v7441_v44 = vld [vmem:[#allocation2 + $0xaa0] ss:$16 sps:$4 sm:$0xff]   ;;  %v7518_v38 = vld [vmem:[#allocation2 + $0x904] ss:$16 sps:$4 sm:$0xff]  }
  0xa9   :  { %v7521_v39 = vld [vmem:[#allocation2 + $0xb04] ss:$16 sps:$4 sm:$0xff]  }
  0xaa   :  { %4906 = vmatpush1.bf16.msra.mxu0 %v7372_v48  ;;  %v7446_v48 = vld [vmem:[#allocation2 + $0x884] ss:$16 sps:$4 sm:$0xff]  }
  0xab   :  { %4949 = vmatpush1.bf16.msra.mxu1 %v7375_v49  ;;  %4907 = vmatprep.subr.bf16.mxu0 %v7380_v50  ;;  %v7449_v49 = vld [vmem:[#allocation2 + $0xa84] ss:$16 sps:$4 sm:$0xff]   ;;  %v7444_v50 = vld [vmem:[#allocation2 + $0x880] ss:$16 sps:$4 sm:$0xff]  }
  0xac   :  { %4950 = vmatprep.subr.bf16.mxu1 %v7383_v51  ;;  %v7447_v51 = vld [vmem:[#allocation2 + $0xa80] ss:$16 sps:$4 sm:$0xff]  }
  0xae   :  { %4908 = vmatpush2.bf16.msra.mxu0 %v7378_v52  ;;  %v7452_v52 = vld [vmem:[#allocation2 + $0x864] ss:$16 sps:$4 sm:$0xff]  }
  0xaf   :  { %4951 = vmatpush2.bf16.msra.mxu1 %v7381_v55  ;;  %4909 = vmatprep.subr.bf16.mxu0 %v7386_v56  ;;  %v7455_v55 = vld [vmem:[#allocation2 + $0xa64] ss:$16 sps:$4 sm:$0xff]   ;;  %v7450_v56 = vld [vmem:[#allocation2 + $0x860] ss:$16 sps:$4 sm:$0xff]  }
  0xb0   :  { %4952 = vmatprep.subr.bf16.mxu1 %v7389_v57  ;;  %v7453_v57 = vld [vmem:[#allocation2 + $0xa60] ss:$16 sps:$4 sm:$0xff]  }
  0xb2   :  { %4910 = vmatpush2.bf16.msra.mxu0 %v7384_v58  ;;  %v7458_v58 = vld [vmem:[#allocation2 + $0x844] ss:$16 sps:$4 sm:$0xff]  }
  0xb3   :  { %4953 = vmatpush2.bf16.msra.mxu1 %v7387_v59  ;;  %4911 = vmatprep.subr.bf16.mxu0 %v7392_v60  ;;  %v7461_v59 = vld [vmem:[#allocation2 + $0xa44] ss:$16 sps:$4 sm:$0xff]   ;;  %v7456_v60 = vld [vmem:[#allocation2 + $0x840] ss:$16 sps:$4 sm:$0xff]  }
  0xb4   :  { %4954 = vmatprep.subr.bf16.mxu1 %v7395_v61  ;;  %v7459_v61 = vld [vmem:[#allocation2 + $0xa40] ss:$16 sps:$4 sm:$0xff]  }
  0xb6   :  { %4912 = vmatpush2.bf16.msra.mxu0 %v7390_v62  ;;  %v7464_v62 = vld [vmem:[#allocation2 + $0x824] ss:$16 sps:$4 sm:$0xff]  }
  0xb7   :  { %4955 = vmatpush2.bf16.msra.mxu1 %v7393_v63  ;;  %4913 = vmatprep.subr.bf16.mxu0 %v7398_v0  ;;  %v7467_v63 = vld [vmem:[#allocation2 + $0xa24] ss:$16 sps:$4 sm:$0xff]   ;;  %v7462_v0 = vld [vmem:[#allocation2 + $0x820] ss:$16 sps:$4 sm:$0xff]  }
  0xb8   :  { %4956 = vmatprep.subr.bf16.mxu1 %v7401_v1  ;;  %v7465_v1 = vld [vmem:[#allocation2 + $0xa20] ss:$16 sps:$4 sm:$0xff]  }
  0xba   :  { %4914 = vmatpush2.bf16.msra.mxu0 %v7396_v2  ;;  %v7470_v2 = vld [vmem:[#allocation2 + $0x804] ss:$16 sps:$4 sm:$0xff]  }
  0xbb   :  { %4957 = vmatpush2.bf16.msra.mxu1 %v7399_v3  ;;  %4915 = vmatprep.subr.bf16.mxu0 %v7404_v4  ;;  %v7473_v3 = vld [vmem:[#allocation2 + $0xa04] ss:$16 sps:$4 sm:$0xff]   ;;  %v7468_v4 = vld [vmem:[#allocation2 + $0x800] ss:$16 sps:$4 sm:$0xff]  }
  0xbc   :  { %4958 = vmatprep.subr.bf16.mxu1 %v7407_v5  ;;  %v7471_v5 = vld [vmem:[#allocation2 + $0xa00] ss:$16 sps:$4 sm:$0xff]  }
  0xbe   :  { %4916 = vmatpush2.bf16.msra.mxu0 %v7402_v6  ;;  %v7476_v6 = vld [vmem:[#allocation2 + $0x9e4] ss:$16 sps:$4 sm:$0xff]  }
  0xbf   :  { %4959 = vmatpush2.bf16.msra.mxu1 %v7405_v7  ;;  %4917 = vmatprep.subr.bf16.mxu0 %v7410_v8  ;;  %v7479_v7 = vld [vmem:[#allocation2 + $0xbe4] ss:$16 sps:$4 sm:$0xff]   ;;  %v7474_v8 = vld [vmem:[#allocation2 + $0x9e0] ss:$16 sps:$4 sm:$0xff]  }
  0xc0   :  { %4960 = vmatprep.subr.bf16.mxu1 %v7413_v9  ;;  %v7477_v9 = vld [vmem:[#allocation2 + $0xbe0] ss:$16 sps:$4 sm:$0xff]  }
  0xc2   :  { %4918 = vmatpush2.bf16.msra.mxu0 %v7408_v10  ;;  %v7482_v10 = vld [vmem:[#allocation2 + $0x9c4] ss:$16 sps:$4 sm:$0xff]  }
  0xc3   :  { %4961 = vmatpush2.bf16.msra.mxu1 %v7411_v11  ;;  %4919 = vmatprep.subr.bf16.mxu0 %v7416_v14  ;;  %v7485_v11 = vld [vmem:[#allocation2 + $0xbc4] ss:$16 sps:$4 sm:$0xff]   ;;  %v7480_v14 = vld [vmem:[#allocation2 + $0x9c0] ss:$16 sps:$4 sm:$0xff]  }
  0xc4   :  { %4962 = vmatprep.subr.bf16.mxu1 %v7419_v15  ;;  %v7483_v15 = vld [vmem:[#allocation2 + $0xbc0] ss:$16 sps:$4 sm:$0xff]  }
  0xc6   :  { %4920 = vmatpush2.bf16.msra.mxu0 %v7414_v16  ;;  %v7488_v16 = vld [vmem:[#allocation2 + $0x9a4] ss:$16 sps:$4 sm:$0xff]  }
  0xc7   :  { %4963 = vmatpush2.bf16.msra.mxu1 %v7417_v17  ;;  %4921 = vmatprep.subr.bf16.mxu0 %v7422_v18  ;;  %v7491_v17 = vld [vmem:[#allocation2 + $0xba4] ss:$16 sps:$4 sm:$0xff]   ;;  %v7486_v18 = vld [vmem:[#allocation2 + $0x9a0] ss:$16 sps:$4 sm:$0xff]  }
  0xc8   :  { %4964 = vmatprep.subr.bf16.mxu1 %v7425_v19  ;;  %v7489_v19 = vld [vmem:[#allocation2 + $0xba0] ss:$16 sps:$4 sm:$0xff]  }
  0xca   :  { %4922 = vmatpush2.bf16.msra.mxu0 %v7420_v20  ;;  %v7494_v20 = vld [vmem:[#allocation2 + $0x984] ss:$16 sps:$4 sm:$0xff]  }
  0xcb   :  { %4965 = vmatpush2.bf16.msra.mxu1 %v7423_v21  ;;  %4977 = vmatprep.subr.bf16.mxu0 %v7428_v26  ;;  %v7497_v21 = vld [vmem:[#allocation2 + $0xb84] ss:$16 sps:$4 sm:$0xff]   ;;  %v7498_v26 = vld [vmem:[#allocation2 + $0x960] ss:$16 sps:$4 sm:$0xff]  }
  0xcc   :  { %5020 = vmatprep.subr.bf16.mxu1 %v7431_v27  ;;  %v7501_v27 = vld [vmem:[#allocation2 + $0xb60] ss:$16 sps:$4 sm:$0xff]  }
  0xcd   :  { %4924 = vmatmul.mubr.bf16.vlgmr.msra.gmra.mxu0 %v8698_v28 }
  0xce   :  { %4967 = vmatmul.mubr.bf16.vlgmr.msra.gmra.mxu1 %v8700_v29  ;;  %4978 = vmatpush1.bf16.msra.mxu0 %v7426_v30  ;;  %v7506_v30 = vld [vmem:[#allocation2 + $0x944] ss:$16 sps:$4 sm:$0xff]  }
  0xcf   :  { %5021 = vmatpush1.bf16.msra.mxu1 %v7429_v31  ;;  %4979 = vmatprep.subr.bf16.mxu0 %v7434_v32  ;;  %v7509_v31 = vld [vmem:[#allocation2 + $0xb44] ss:$16 sps:$4 sm:$0xff]   ;;  %v7504_v32 = vld [vmem:[#allocation2 + $0x940] ss:$16 sps:$4 sm:$0xff]  }
  0xd0   :  { %5022 = vmatprep.subr.bf16.mxu1 %v7437_v33  ;;  %5009 = vmatprep.mubr.bf16.mxu0 %v8710_v40  ;;  %v7507_v33 = vld [vmem:[#allocation2 + $0xb40] ss:$16 sps:$4 sm:$0xff]  }
  0xd1   :  { %5052 = vmatprep.mubr.bf16.mxu1 %v8718_v46 }
  0xd2   :  { %4980 = vmatpush1.bf16.msra.mxu0 %v7432_v34  ;;  %v7512_v34 = vld [vmem:[#allocation2 + $0x924] ss:$16 sps:$4 sm:$0xff]  }
  0xd3   :  { %5023 = vmatpush1.bf16.msra.mxu1 %v7435_v35  ;;  %4981 = vmatprep.subr.bf16.mxu0 %v7440_v36  ;;  %v7515_v35 = vld [vmem:[#allocation2 + $0xb24] ss:$16 sps:$4 sm:$0xff]   ;;  %v7510_v36 = vld [vmem:[#allocation2 + $0x920] ss:$16 sps:$4 sm:$0xff]  }
  0xd4   :  { %5024 = vmatprep.subr.bf16.mxu1 %v7443_v37  ;;  %v7513_v37 = vld [vmem:[#allocation2 + $0xb20] ss:$16 sps:$4 sm:$0xff]  }
  0xd6   :  { %4982 = vmatpush1.bf16.msra.mxu0 %v7438_v43  ;;  %v111_v43 = vld [vmem:[%s9022_s0 + $0x40] sm:$0xff] }
  0xd7   :  { %5025 = vmatpush1.bf16.msra.mxu1 %v7441_v44  ;;  %4983 = vmatprep.subr.bf16.mxu0 %v7446_v48  ;;  %v135_v44 = vld [vmem:[%s9022_s0 + $0x100] sm:$0xff]  ;;  %v113_v48 = vld [vmem:[%s9022_s0 + $0x50] sm:$0xff] }
  0xd8   :  { %5026 = vmatprep.subr.bf16.mxu1 %v7449_v49  ;;  %v137_v49 = vld [vmem:[%s9022_s0 + $0x110] sm:$0xff] }
  0xda   :  { %4984 = vmatpush1.bf16.msra.mxu0 %v7444_v50  ;;  %v7524_v50 = vld [vmem:[#allocation2 + $0xce4] ss:$16 sps:$4 sm:$0xff]  }
  0xdb   :  { %5027 = vmatpush1.bf16.msra.mxu1 %v7447_v51  ;;  %4985 = vmatprep.subr.bf16.mxu0 %v7452_v52  ;;  %v7527_v51 = vld [vmem:[#allocation2 + $0xee4] ss:$16 sps:$4 sm:$0xff]   ;;  %v116_v52 = vld [vmem:[%s9022_s0 + $0x68] sm:$0xff] }
  0xdc   :  { %5028 = vmatprep.subr.bf16.mxu1 %v7455_v55  ;;  %v7522_v55 = vld [vmem:[#allocation2 + $0xce0] ss:$16 sps:$4 sm:$0xff]  }
  0xde   :  { %4986 = vmatpush1.bf16.msra.mxu0 %v7450_v56  ;;  %v140_v56 = vld [vmem:[%s9022_s0 + $0x128] sm:$0xff] }
  0xdf   :  { %5029 = vmatpush1.bf16.msra.mxu1 %v7453_v57  ;;  %4987 = vmatprep.subr.bf16.mxu0 %v7458_v58  ;;  %v118_v57 = vld [vmem:[%s9022_s0 + $0x78] sm:$0xff]  ;;  %v8743_v58 = vpack.c.bf16 %v135_v44, %v111_v43  ;;  %v7582_v43 = vld [vmem:[#allocation2 + $0xda0] ss:$16 sps:$4 sm:$0xff]  }
  0xe0   :  { %5030 = vmatprep.subr.bf16.mxu1 %v7461_v59  ;;  %v8745_v59 = vpack.c.bf16 %v137_v49, %v113_v48  ;;  %v7585_v44 = vld [vmem:[#allocation2 + $0xfa0] ss:$16 sps:$4 sm:$0xff]   ;;  %v7590_v48 = vld [vmem:[#allocation2 + $0xd84] ss:$16 sps:$4 sm:$0xff]  }
  0xe1   :  { %v7593_v49 = vld [vmem:[#allocation2 + $0xf84] ss:$16 sps:$4 sm:$0xff]  }
  0xe2   :  { %4988 = vmatpush1.bf16.msra.mxu0 %v7456_v60  ;;  %v142_v60 = vld [vmem:[%s9022_s0 + $0x138] sm:$0xff] }
  0xe3   :  { %5031 = vmatpush1.bf16.msra.mxu1 %v7459_v61  ;;  %4989 = vmatprep.subr.bf16.mxu0 %v7464_v62  ;;  %v7525_v61 = vld [vmem:[#allocation2 + $0xee0] ss:$16 sps:$4 sm:$0xff]   ;;  %v7530_v62 = vld [vmem:[#allocation2 + $0xcc4] ss:$16 sps:$4 sm:$0xff]  }
  0xe4   :  { %5032 = vmatprep.subr.bf16.mxu1 %v7467_v63  ;;  %v7533_v63 = vld [vmem:[#allocation2 + $0xec4] ss:$16 sps:$4 sm:$0xff]  }
  0xe6   :  { %4990 = vmatpush1.bf16.msra.mxu0 %v7462_v0  ;;  %v8750_v0 = vpack.c.bf16 %v140_v56, %v116_v52  ;;  %v7596_v52 = vld [vmem:[#allocation2 + $0xd64] ss:$16 sps:$4 sm:$0xff]   ;;  %v7594_v56 = vld [vmem:[#allocation2 + $0xd60] ss:$16 sps:$4 sm:$0xff]  }
  0xe7   :  { %5033 = vmatpush1.bf16.msra.mxu1 %v7465_v1  ;;  %4991 = vmatprep.subr.bf16.mxu0 %v7470_v2  ;;  %v8752_v1 = vpack.c.bf16 %v142_v60, %v118_v57  ;;  %v7528_v2 = vld [vmem:[#allocation2 + $0xcc0] ss:$16 sps:$4 sm:$0xff]   ;;  %v7602_v60 = vld [vmem:[#allocation2 + $0xd44] ss:$16 sps:$4 sm:$0xff]  }
  0xe8   :  { %5034 = vmatprep.subr.bf16.mxu1 %v7473_v3  ;;  %v7531_v3 = vld [vmem:[#allocation2 + $0xec0] ss:$16 sps:$4 sm:$0xff]  }
  0xe9   :  { %v7597_v57 = vld [vmem:[#allocation2 + $0xf60] ss:$16 sps:$4 sm:$0xff]  }
  0xea   :  { %4992 = vmatpush1.bf16.msra.mxu0 %v7468_v4  ;;  %v7536_v4 = vld [vmem:[#allocation2 + $0xca4] ss:$16 sps:$4 sm:$0xff]  }
  0xeb   :  { %5035 = vmatpush1.bf16.msra.mxu1 %v7471_v5  ;;  %4993 = vmatprep.subr.bf16.mxu0 %v7476_v6  ;;  %v7539_v5 = vld [vmem:[#allocation2 + $0xea4] ss:$16 sps:$4 sm:$0xff]   ;;  %v7534_v6 = vld [vmem:[#allocation2 + $0xca0] ss:$16 sps:$4 sm:$0xff]  }
  0xec   :  { %5036 = vmatprep.subr.bf16.mxu1 %v7479_v7  ;;  %v7537_v7 = vld [vmem:[#allocation2 + $0xea0] ss:$16 sps:$4 sm:$0xff]  }
  0xee   :  { %4994 = vmatpush2.bf16.msra.mxu0 %v7474_v8  ;;  %v7542_v8 = vld [vmem:[#allocation2 + $0xc84] ss:$16 sps:$4 sm:$0xff]  }
  0xef   :  { %5037 = vmatpush2.bf16.msra.mxu1 %v7477_v9  ;;  %4995 = vmatprep.subr.bf16.mxu0 %v7482_v10  ;;  %v7545_v9 = vld [vmem:[#allocation2 + $0xe84] ss:$16 sps:$4 sm:$0xff]   ;;  %v7540_v10 = vld [vmem:[#allocation2 + $0xc80] ss:$16 sps:$4 sm:$0xff]  }
  0xf0   :  { %5038 = vmatprep.subr.bf16.mxu1 %v7485_v11  ;;  %v7543_v11 = vld [vmem:[#allocation2 + $0xe80] ss:$16 sps:$4 sm:$0xff]  }
  0xf2   :  { %4996 = vmatpush2.bf16.msra.mxu0 %v7480_v14  ;;  %v7548_v14 = vld [vmem:[#allocation2 + $0xc64] ss:$16 sps:$4 sm:$0xff]  }
  0xf3   :  { %5039 = vmatpush2.bf16.msra.mxu1 %v7483_v15  ;;  %4997 = vmatprep.subr.bf16.mxu0 %v7488_v16  ;;  %v7551_v15 = vld [vmem:[#allocation2 + $0xe64] ss:$16 sps:$4 sm:$0xff]   ;;  %v7546_v16 = vld [vmem:[#allocation2 + $0xc60] ss:$16 sps:$4 sm:$0xff]  }
  0xf4   :  { %5040 = vmatprep.subr.bf16.mxu1 %v7491_v17  ;;  %v7549_v17 = vld [vmem:[#allocation2 + $0xe60] ss:$16 sps:$4 sm:$0xff]  }
  0xf6   :  { %4998 = vmatpush2.bf16.msra.mxu0 %v7486_v18  ;;  %v7554_v18 = vld [vmem:[#allocation2 + $0xc44] ss:$16 sps:$4 sm:$0xff]  }
  0xf7   :  { %5041 = vmatpush2.bf16.msra.mxu1 %v7489_v19  ;;  %4999 = vmatprep.subr.bf16.mxu0 %v7494_v20  ;;  %v7557_v19 = vld [vmem:[#allocation2 + $0xe44] ss:$16 sps:$4 sm:$0xff]   ;;  %v7552_v20 = vld [vmem:[#allocation2 + $0xc40] ss:$16 sps:$4 sm:$0xff]  }
  0xf8   :  { %5042 = vmatprep.subr.bf16.mxu1 %v7497_v21  ;;  %v7555_v21 = vld [vmem:[#allocation2 + $0xe40] ss:$16 sps:$4 sm:$0xff]  }
  0xfa   :  { %5000 = vmatpush2.bf16.msra.mxu0 %v7492_v22  ;;  %v7560_v22 = vld [vmem:[#allocation2 + $0xc24] ss:$16 sps:$4 sm:$0xff]  }
  0xfb   :  { %5043 = vmatpush2.bf16.msra.mxu1 %v7495_v23  ;;  %5001 = vmatprep.subr.bf16.mxu0 %v7500_v24  ;;  %v7563_v23 = vld [vmem:[#allocation2 + $0xe24] ss:$16 sps:$4 sm:$0xff]   ;;  %v7558_v24 = vld [vmem:[#allocation2 + $0xc20] ss:$16 sps:$4 sm:$0xff]  }
  0xfc   :  { %5044 = vmatprep.subr.bf16.mxu1 %v7503_v25  ;;  %v7561_v25 = vld [vmem:[#allocation2 + $0xe20] ss:$16 sps:$4 sm:$0xff]  }
  0xfe   :  { %5002 = vmatpush2.bf16.msra.mxu0 %v7498_v26  ;;  %v7566_v26 = vld [vmem:[#allocation2 + $0xc04] ss:$16 sps:$4 sm:$0xff]  }
  0xff   :  { %5045 = vmatpush2.bf16.msra.mxu1 %v7501_v27  ;;  %5003 = vmatprep.subr.bf16.mxu0 %v7506_v30  ;;  %v7569_v27 = vld [vmem:[#allocation2 + $0xe04] ss:$16 sps:$4 sm:$0xff]   ;;  %v7564_v30 = vld [vmem:[#allocation2 + $0xc00] ss:$16 sps:$4 sm:$0xff]  }
 0x100   :  { %5046 = vmatprep.subr.bf16.mxu1 %v7509_v31  ;;  %v7567_v31 = vld [vmem:[#allocation2 + $0xe00] ss:$16 sps:$4 sm:$0xff]  }
 0x102   :  { %5004 = vmatpush2.bf16.msra.mxu0 %v7504_v32  ;;  %v7572_v32 = vld [vmem:[#allocation2 + $0xde4] ss:$16 sps:$4 sm:$0xff]  }
 0x103   :  { %5047 = vmatpush2.bf16.msra.mxu1 %v7507_v33  ;;  %5005 = vmatprep.subr.bf16.mxu0 %v7512_v34  ;;  %v7575_v33 = vld [vmem:[#allocation2 + $0xfe4] ss:$16 sps:$4 sm:$0xff]   ;;  %v7570_v34 = vld [vmem:[#allocation2 + $0xde0] ss:$16 sps:$4 sm:$0xff]  }
 0x104   :  { %5048 = vmatprep.subr.bf16.mxu1 %v7515_v35  ;;  %v7573_v35 = vld [vmem:[#allocation2 + $0xfe0] ss:$16 sps:$4 sm:$0xff]  }
 0x106   :  { %5006 = vmatpush2.bf16.msra.mxu0 %v7510_v36  ;;  %v7578_v36 = vld [vmem:[#allocation2 + $0xdc4] ss:$16 sps:$4 sm:$0xff]  }
 0x107   :  { %5049 = vmatpush2.bf16.msra.mxu1 %v7513_v37  ;;  %5007 = vmatprep.subr.bf16.mxu0 %v7518_v38  ;;  %v7581_v37 = vld [vmem:[#allocation2 + $0xfc4] ss:$16 sps:$4 sm:$0xff]   ;;  %v7576_v38 = vld [vmem:[#allocation2 + $0xdc0] ss:$16 sps:$4 sm:$0xff]  }
 0x108   :  { %5050 = vmatprep.subr.bf16.mxu1 %v7521_v39  ;;  %v7579_v39 = vld [vmem:[#allocation2 + $0xfc0] ss:$16 sps:$4 sm:$0xff]  }
 0x10a   :  { %5008 = vmatpush2.bf16.msra.mxu0 %v7516_v41  ;;  %v7584_v41 = vld [vmem:[#allocation2 + $0xda4] ss:$16 sps:$4 sm:$0xff]  }
 0x10b   :  { %5051 = vmatpush2.bf16.msra.mxu1 %v7519_v42  ;;  %5063 = vmatprep.subr.bf16.mxu0 %v7524_v50  ;;  %v7587_v42 = vld [vmem:[#allocation2 + $0xfa4] ss:$16 sps:$4 sm:$0xff]   ;;  %v7588_v50 = vld [vmem:[#allocation2 + $0xd80] ss:$16 sps:$4 sm:$0xff]  }
 0x10c   :  { %5106 = vmatprep.subr.bf16.mxu1 %v7527_v51  ;;  %v7591_v51 = vld [vmem:[#allocation2 + $0xf80] ss:$16 sps:$4 sm:$0xff]  }
 0x10d   :  { %5010 = vmatmul.mubr.bf16.vlgmr.msra.gmra.mxu0 %v8743_v58 }
 0x10e   :  { %5053 = vmatmul.mubr.bf16.vlgmr.msra.gmra.mxu1 %v8745_v59  ;;  %5064 = vmatpush1.bf16.msra.mxu0 %v7522_v55  ;;  %v7599_v55 = vld [vmem:[#allocation2 + $0xf64] ss:$16 sps:$4 sm:$0xff]  }
 0x10f   :  { %5107 = vmatpush1.bf16.msra.mxu1 %v7525_v61  ;;  %5065 = vmatprep.subr.bf16.mxu0 %v7530_v62  ;;  %v7605_v61 = vld [vmem:[#allocation2 + $0xf44] ss:$16 sps:$4 sm:$0xff]   ;;  %v7600_v62 = vld [vmem:[#allocation2 + $0xd40] ss:$16 sps:$4 sm:$0xff]  }
 0x110   :  { %5108 = vmatprep.subr.bf16.mxu1 %v7533_v63  ;;  %5095 = vmatprep.mubr.bf16.mxu0 %v8750_v0  ;;  %v7603_v63 = vld [vmem:[#allocation2 + $0xf40] ss:$16 sps:$4 sm:$0xff]  }
 0x111   :  { %5138 = vmatprep.mubr.bf16.mxu1 %v8752_v1 }
 0x112   :  { %5066 = vmatpush1.bf16.msra.mxu0 %v7528_v2  ;;  %v7608_v2 = vld [vmem:[#allocation2 + $0xd24] ss:$16 sps:$4 sm:$0xff]  }
 0x113   :  { %5109 = vmatpush1.bf16.msra.mxu1 %v7531_v3  ;;  %5067 = vmatprep.subr.bf16.mxu0 %v7536_v4  ;;  %v7611_v3 = vld [vmem:[#allocation2 + $0xf24] ss:$16 sps:$4 sm:$0xff]   ;;  %v7606_v4 = vld [vmem:[#allocation2 + $0xd20] ss:$16 sps:$4 sm:$0xff]  }
 0x114   :  { %5110 = vmatprep.subr.bf16.mxu1 %v7539_v5  ;;  %v7609_v5 = vld [vmem:[#allocation2 + $0xf20] ss:$16 sps:$4 sm:$0xff]  }
 0x116   :  { %5068 = vmatpush1.bf16.msra.mxu0 %v7534_v6  ;;  %v7614_v6 = vld [vmem:[#allocation2 + $0xd04] ss:$16 sps:$4 sm:$0xff]  }
 0x117   :  { %5111 = vmatpush1.bf16.msra.mxu1 %v7537_v7  ;;  %5069 = vmatprep.subr.bf16.mxu0 %v7542_v8  ;;  %v7617_v7 = vld [vmem:[#allocation2 + $0xf04] ss:$16 sps:$4 sm:$0xff]   ;;  %v7612_v8 = vld [vmem:[#allocation2 + $0xd00] ss:$16 sps:$4 sm:$0xff]  }
 0x118   :  { %5112 = vmatprep.subr.bf16.mxu1 %v7545_v9  ;;  %v7615_v9 = vld [vmem:[#allocation2 + $0xf00] ss:$16 sps:$4 sm:$0xff]  }
 0x11a   :  { %5070 = vmatpush1.bf16.msra.mxu0 %v7540_v10  ;;  %v115_v10 = vld [vmem:[%s9022_s0 + $0x60] sm:$0xff] }
 0x11b   :  { %5113 = vmatpush1.bf16.msra.mxu1 %v7543_v11  ;;  %5071 = vmatprep.subr.bf16.mxu0 %v7548_v14  ;;  %v139_v11 = vld [vmem:[%s9022_s0 + $0x120] sm:$0xff]  ;;  %v117_v14 = vld [vmem:[%s9022_s0 + $0x70] sm:$0xff] }
 0x11c   :  { %5114 = vmatprep.subr.bf16.mxu1 %v7551_v15  ;;  %v141_v15 = vld [vmem:[%s9022_s0 + $0x130] sm:$0xff] }
 0x11e   :  { %5072 = vmatpush1.bf16.msra.mxu0 %v7546_v16  ;;  %v7620_v16 = vld [vmem:[#allocation2 + $0x10e4] ss:$16 sps:$4 sm:$0xff]  }
 0x11f   :  { %5115 = vmatpush1.bf16.msra.mxu1 %v7549_v17  ;;  %5073 = vmatprep.subr.bf16.mxu0 %v7554_v18  ;;  %v7623_v17 = vld [vmem:[#allocation2 + $0x12e4] ss:$16 sps:$4 sm:$0xff]   ;;  %v120_v18 = vld [vmem:[%s9022_s0 + $0x88] sm:$0xff] }
 0x120   :  { %5116 = vmatprep.subr.bf16.mxu1 %v7557_v19  ;;  %v7618_v19 = vld [vmem:[#allocation2 + $0x10e0] ss:$16 sps:$4 sm:$0xff]  }
 0x122   :  { %5074 = vmatpush1.bf16.msra.mxu0 %v7552_v20  ;;  %v144_v20 = vld [vmem:[%s9022_s0 + $0x148] sm:$0xff] }
 0x123   :  { %5117 = vmatpush1.bf16.msra.mxu1 %v7555_v21  ;;  %5075 = vmatprep.subr.bf16.mxu0 %v7560_v22  ;;  %v122_v21 = vld [vmem:[%s9022_s0 + $0x98] sm:$0xff]  ;;  %v8779_v22 = vpack.c.bf16 %v139_v11, %v115_v10  ;;  %v7672_v10 = vld [vmem:[#allocation2 + $0x11c0] ss:$16 sps:$4 sm:$0xff]  }
 0x124   :  { %5118 = vmatprep.subr.bf16.mxu1 %v7563_v23  ;;  %v8781_v23 = vpack.c.bf16 %v141_v15, %v117_v14  ;;  %v7675_v11 = vld [vmem:[#allocation2 + $0x13c0] ss:$16 sps:$4 sm:$0xff]   ;;  %v7680_v14 = vld [vmem:[#allocation2 + $0x11a4] ss:$16 sps:$4 sm:$0xff]  }
 0x125   :  { %v7683_v15 = vld [vmem:[#allocation2 + $0x13a4] ss:$16 sps:$4 sm:$0xff]  }
 0x126   :  { %5076 = vmatpush1.bf16.msra.mxu0 %v7558_v24  ;;  %v146_v24 = vld [vmem:[%s9022_s0 + $0x158] sm:$0xff] }
 0x127   :  { %5119 = vmatpush1.bf16.msra.mxu1 %v7561_v25  ;;  %5077 = vmatprep.subr.bf16.mxu0 %v7566_v26  ;;  %v7621_v25 = vld [vmem:[#allocation2 + $0x12e0] ss:$16 sps:$4 sm:$0xff]   ;;  %v7626_v26 = vld [vmem:[#allocation2 + $0x10c4] ss:$16 sps:$4 sm:$0xff]  }
 0x128   :  { %5120 = vmatprep.subr.bf16.mxu1 %v7569_v27  ;;  %v7629_v27 = vld [vmem:[#allocation2 + $0x12c4] ss:$16 sps:$4 sm:$0xff]  }
 0x12a   :  { %5078 = vmatpush1.bf16.msra.mxu0 %v7564_v30  ;;  %v8786_v30 = vpack.c.bf16 %v144_v20, %v120_v18  ;;  %v7686_v18 = vld [vmem:[#allocation2 + $0x1184] ss:$16 sps:$4 sm:$0xff]   ;;  %v7684_v20 = vld [vmem:[#allocation2 + $0x1180] ss:$16 sps:$4 sm:$0xff]  }
 0x12b   :  { %5121 = vmatpush1.bf16.msra.mxu1 %v7567_v31  ;;  %5079 = vmatprep.subr.bf16.mxu0 %v7572_v32  ;;  %v8788_v31 = vpack.c.bf16 %v146_v24, %v122_v21  ;;  %v7624_v32 = vld [vmem:[#allocation2 + $0x10c0] ss:$16 sps:$4 sm:$0xff]   ;;  %v7692_v24 = vld [vmem:[#allocation2 + $0x1164] ss:$16 sps:$4 sm:$0xff]  }
 0x12c   :  { %5122 = vmatprep.subr.bf16.mxu1 %v7575_v33  ;;  %v7627_v33 = vld [vmem:[#allocation2 + $0x12c0] ss:$16 sps:$4 sm:$0xff]  }
 0x12d   :  { %v7687_v21 = vld [vmem:[#allocation2 + $0x1380] ss:$16 sps:$4 sm:$0xff]  }
 0x12e   :  { %5080 = vmatpush2.bf16.msra.mxu0 %v7570_v34  ;;  %v7632_v34 = vld [vmem:[#allocation2 + $0x10a4] ss:$16 sps:$4 sm:$0xff]  }
 0x12f   :  { %5123 = vmatpush2.bf16.msra.mxu1 %v7573_v35  ;;  %5081 = vmatprep.subr.bf16.mxu0 %v7578_v36  ;;  %v7635_v35 = vld [vmem:[#allocation2 + $0x12a4] ss:$16 sps:$4 sm:$0xff]   ;;  %v7630_v36 = vld [vmem:[#allocation2 + $0x10a0] ss:$16 sps:$4 sm:$0xff]  }
 0x130   :  { %5124 = vmatprep.subr.bf16.mxu1 %v7581_v37  ;;  %v7633_v37 = vld [vmem:[#allocation2 + $0x12a0] ss:$16 sps:$4 sm:$0xff]  }
 0x132   :  { %5082 = vmatpush2.bf16.msra.mxu0 %v7576_v38  ;;  %v7638_v38 = vld [vmem:[#allocation2 + $0x1084] ss:$16 sps:$4 sm:$0xff]  }
 0x133   :  { %5125 = vmatpush2.bf16.msra.mxu1 %v7579_v39  ;;  %5083 = vmatprep.subr.bf16.mxu0 %v7584_v41  ;;  %v7641_v39 = vld [vmem:[#allocation2 + $0x1284] ss:$16 sps:$4 sm:$0xff]   ;;  %v7636_v41 = vld [vmem:[#allocation2 + $0x1080] ss:$16 sps:$4 sm:$0xff]  }
 0x134   :  { %5126 = vmatprep.subr.bf16.mxu1 %v7587_v42  ;;  %v7639_v42 = vld [vmem:[#allocation2 + $0x1280] ss:$16 sps:$4 sm:$0xff]  }
 0x136   :  { %5084 = vmatpush2.bf16.msra.mxu0 %v7582_v43  ;;  %v7644_v43 = vld [vmem:[#allocation2 + $0x1064] ss:$16 sps:$4 sm:$0xff]  }
 0x137   :  { %5127 = vmatpush2.bf16.msra.mxu1 %v7585_v44  ;;  %5085 = vmatprep.subr.bf16.mxu0 %v7590_v48  ;;  %v7647_v44 = vld [vmem:[#allocation2 + $0x1264] ss:$16 sps:$4 sm:$0xff]   ;;  %v7642_v48 = vld [vmem:[#allocation2 + $0x1060] ss:$16 sps:$4 sm:$0xff]  }
 0x138   :  { %5128 = vmatprep.subr.bf16.mxu1 %v7593_v49  ;;  %v7645_v49 = vld [vmem:[#allocation2 + $0x1260] ss:$16 sps:$4 sm:$0xff]  }
 0x13a   :  { %5086 = vmatpush2.bf16.msra.mxu0 %v7588_v50  ;;  %v7650_v50 = vld [vmem:[#allocation2 + $0x1044] ss:$16 sps:$4 sm:$0xff]  }
 0x13b   :  { %5129 = vmatpush2.bf16.msra.mxu1 %v7591_v51  ;;  %5087 = vmatprep.subr.bf16.mxu0 %v7596_v52  ;;  %v7653_v51 = vld [vmem:[#allocation2 + $0x1244] ss:$16 sps:$4 sm:$0xff]   ;;  %v7648_v52 = vld [vmem:[#allocation2 + $0x1040] ss:$16 sps:$4 sm:$0xff]  }
 0x13c   :  { %5130 = vmatprep.subr.bf16.mxu1 %v7599_v55  ;;  %v7651_v55 = vld [vmem:[#allocation2 + $0x1240] ss:$16 sps:$4 sm:$0xff]  }
 0x13e   :  { %5088 = vmatpush2.bf16.msra.mxu0 %v7594_v56  ;;  %v7656_v56 = vld [vmem:[#allocation2 + $0x1024] ss:$16 sps:$4 sm:$0xff]  }
 0x13f   :  { %5131 = vmatpush2.bf16.msra.mxu1 %v7597_v57  ;;  %5089 = vmatprep.subr.bf16.mxu0 %v7602_v60  ;;  %v7659_v57 = vld [vmem:[#allocation2 + $0x1224] ss:$16 sps:$4 sm:$0xff]   ;;  %v7654_v60 = vld [vmem:[#allocation2 + $0x1020] ss:$16 sps:$4 sm:$0xff]  }
 0x140   :  { %5132 = vmatprep.subr.bf16.mxu1 %v7605_v61  ;;  %v7657_v61 = vld [vmem:[#allocation2 + $0x1220] ss:$16 sps:$4 sm:$0xff]  }
 0x142   :  { %5090 = vmatpush2.bf16.msra.mxu0 %v7600_v62  ;;  %v7662_v62 = vld [vmem:[#allocation2 + $0x1004] ss:$16 sps:$4 sm:$0xff]  }
 0x143   :  { %5133 = vmatpush2.bf16.msra.mxu1 %v7603_v63  ;;  %5091 = vmatprep.subr.bf16.mxu0 %v7608_v2  ;;  %v7665_v63 = vld [vmem:[#allocation2 + $0x1204] ss:$16 sps:$4 sm:$0xff]   ;;  %v7660_v2 = vld [vmem:[#allocation2 + $0x1000] ss:$16 sps:$4 sm:$0xff]  }
 0x144   :  { %5134 = vmatprep.subr.bf16.mxu1 %v7611_v3  ;;  %v7663_v3 = vld [vmem:[#allocation2 + $0x1200] ss:$16 sps:$4 sm:$0xff]  }
 0x146   :  { %5092 = vmatpush2.bf16.msra.mxu0 %v7606_v4  ;;  %v7668_v4 = vld [vmem:[#allocation2 + $0x11e4] ss:$16 sps:$4 sm:$0xff]  }
 0x147   :  { %5135 = vmatpush2.bf16.msra.mxu1 %v7609_v5  ;;  %5093 = vmatprep.subr.bf16.mxu0 %v7614_v6  ;;  %v7671_v5 = vld [vmem:[#allocation2 + $0x13e4] ss:$16 sps:$4 sm:$0xff]   ;;  %v7666_v6 = vld [vmem:[#allocation2 + $0x11e0] ss:$16 sps:$4 sm:$0xff]  }
 0x148   :  { %5136 = vmatprep.subr.bf16.mxu1 %v7617_v7  ;;  %v7669_v7 = vld [vmem:[#allocation2 + $0x13e0] ss:$16 sps:$4 sm:$0xff]  }
 0x14a   :  { %5094 = vmatpush2.bf16.msra.mxu0 %v7612_v8  ;;  %v7674_v8 = vld [vmem:[#allocation2 + $0x11c4] ss:$16 sps:$4 sm:$0xff]  }
 0x14b   :  { %5137 = vmatpush2.bf16.msra.mxu1 %v7615_v9  ;;  %5149 = vmatprep.subr.bf16.mxu0 %v7620_v16  ;;  %v7677_v9 = vld [vmem:[#allocation2 + $0x13c4] ss:$16 sps:$4 sm:$0xff]   ;;  %v7678_v16 = vld [vmem:[#allocation2 + $0x11a0] ss:$16 sps:$4 sm:$0xff]  }
 0x14c   :  { %5192 = vmatprep.subr.bf16.mxu1 %v7623_v17  ;;  %v7681_v17 = vld [vmem:[#allocation2 + $0x13a0] ss:$16 sps:$4 sm:$0xff]  }
 0x14d   :  { %5096 = vmatmul.mubr.bf16.vlgmr.msra.gmra.mxu0 %v8779_v22 }
 0x14e   :  { %5139 = vmatmul.mubr.bf16.vlgmr.msra.gmra.mxu1 %v8781_v23  ;;  %5150 = vmatpush1.bf16.msra.mxu0 %v7618_v19  ;;  %v7689_v19 = vld [vmem:[#allocation2 + $0x1384] ss:$16 sps:$4 sm:$0xff]  }
 0x14f   :  { %5193 = vmatpush1.bf16.msra.mxu1 %v7621_v25  ;;  %5151 = vmatprep.subr.bf16.mxu0 %v7626_v26  ;;  %v7695_v25 = vld [vmem:[#allocation2 + $0x1364] ss:$16 sps:$4 sm:$0xff]   ;;  %v7690_v26 = vld [vmem:[#allocation2 + $0x1160] ss:$16 sps:$4 sm:$0xff]  }
 0x150   :  { %5194 = vmatprep.subr.bf16.mxu1 %v7629_v27  ;;  %5181 = vmatprep.mubr.bf16.mxu0 %v8786_v30  ;;  %v7693_v27 = vld [vmem:[#allocation2 + $0x1360] ss:$16 sps:$4 sm:$0xff]  }
 0x151   :  { %5224 = vmatprep.mubr.bf16.mxu1 %v8788_v31 }
 0x152   :  { %5152 = vmatpush1.bf16.msra.mxu0 %v7624_v32  ;;  %v7698_v32 = vld [vmem:[#allocation2 + $0x1144] ss:$16 sps:$4 sm:$0xff]  }
 0x153   :  { %5195 = vmatpush1.bf16.msra.mxu1 %v7627_v33  ;;  %5153 = vmatprep.subr.bf16.mxu0 %v7632_v34  ;;  %v7701_v33 = vld [vmem:[#allocation2 + $0x1344] ss:$16 sps:$4 sm:$0xff]   ;;  %v7696_v34 = vld [vmem:[#allocation2 + $0x1140] ss:$16 sps:$4 sm:$0xff]  }
 0x154   :  { %5196 = vmatprep.subr.bf16.mxu1 %v7635_v35  ;;  %v7699_v35 = vld [vmem:[#allocation2 + $0x1340] ss:$16 sps:$4 sm:$0xff]  }
 0x156   :  { %5154 = vmatpush1.bf16.msra.mxu0 %v7630_v36  ;;  %v7704_v36 = vld [vmem:[#allocation2 + $0x1124] ss:$16 sps:$4 sm:$0xff]  }
 0x157   :  { %5197 = vmatpush1.bf16.msra.mxu1 %v7633_v37  ;;  %5155 = vmatprep.subr.bf16.mxu0 %v7638_v38  ;;  %v7707_v37 = vld [vmem:[#allocation2 + $0x1324] ss:$16 sps:$4 sm:$0xff]   ;;  %v7702_v38 = vld [vmem:[#allocation2 + $0x1120] ss:$16 sps:$4 sm:$0xff]  }
 0x158   :  { %5198 = vmatprep.subr.bf16.mxu1 %v7641_v39  ;;  %v7705_v39 = vld [vmem:[#allocation2 + $0x1320] ss:$16 sps:$4 sm:$0xff]  }
 0x15a   :  { %5156 = vmatpush1.bf16.msra.mxu0 %v7636_v41  ;;  %v7710_v41 = vld [vmem:[#allocation2 + $0x1104] ss:$16 sps:$4 sm:$0xff]  }
 0x15b   :  { %5199 = vmatpush1.bf16.msra.mxu1 %v7639_v42  ;;  %5157 = vmatprep.subr.bf16.mxu0 %v7644_v43  ;;  %v7713_v42 = vld [vmem:[#allocation2 + $0x1304] ss:$16 sps:$4 sm:$0xff]   ;;  %v7708_v43 = vld [vmem:[#allocation2 + $0x1100] ss:$16 sps:$4 sm:$0xff]  }
 0x15c   :  { %5200 = vmatprep.subr.bf16.mxu1 %v7647_v44  ;;  %v7711_v44 = vld [vmem:[#allocation2 + $0x1300] ss:$16 sps:$4 sm:$0xff]  }
 0x15e   :  { %5158 = vmatpush1.bf16.msra.mxu0 %v7642_v48  ;;  %v119_v48 = vld [vmem:[%s9022_s0 + $0x80] sm:$0xff] }
 0x15f   :  { %5201 = vmatpush1.bf16.msra.mxu1 %v7645_v49  ;;  %5159 = vmatprep.subr.bf16.mxu0 %v7650_v50  ;;  %v143_v49 = vld [vmem:[%s9022_s0 + $0x140] sm:$0xff]  ;;  %v121_v50 = vld [vmem:[%s9022_s0 + $0x90] sm:$0xff] }
 0x160   :  { %5202 = vmatprep.subr.bf16.mxu1 %v7653_v51  ;;  %v145_v51 = vld [vmem:[%s9022_s0 + $0x150] sm:$0xff] }
 0x162   :  { %5160 = vmatpush1.bf16.msra.mxu0 %v7648_v52  ;;  %v7716_v52 = vld [vmem:[#allocation2 + $0x14e4] ss:$16 sps:$4 sm:$0xff]  }
 0x163   :  { %5203 = vmatpush1.bf16.msra.mxu1 %v7651_v55  ;;  %5161 = vmatprep.subr.bf16.mxu0 %v7656_v56  ;;  %v7719_v55 = vld [vmem:[#allocation2 + $0x16e4] ss:$16 sps:$4 sm:$0xff]   ;;  %v124_v56 = vld [vmem:[%s9022_s0 + $0xa8] sm:$0xff] }
 0x164   :  { %5204 = vmatprep.subr.bf16.mxu1 %v7659_v57  ;;  %v148_v57 = vld [vmem:[%s9022_s0 + $0x168] sm:$0xff] }
 0x166   :  { %5162 = vmatpush1.bf16.msra.mxu0 %v7654_v60  ;;  %v126_v60 = vld [vmem:[%s9022_s0 + $0xb8] sm:$0xff] }
 0x167   :  { %5205 = vmatpush1.bf16.msra.mxu1 %v7657_v61  ;;  %5163 = vmatprep.subr.bf16.mxu0 %v7662_v62  ;;  %v150_v61 = vld [vmem:[%s9022_s0 + $0x178] sm:$0xff]  ;;  %v7714_v62 = vld [vmem:[#allocation2 + $0x14e0] ss:$16 sps:$4 sm:$0xff]  }
 0x168   :  { %5206 = vmatprep.subr.bf16.mxu1 %v7665_v63  ;;  %v7717_v63 = vld [vmem:[#allocation2 + $0x16e0] ss:$16 sps:$4 sm:$0xff]  }
 0x16a   :  { %5164 = vmatpush1.bf16.msra.mxu0 %v7660_v2  ;;  %v8818_v2 = vpack.c.bf16 %v143_v49, %v119_v48  ;;  %v7762_v48 = vld [vmem:[#allocation2 + $0x15e0] ss:$16 sps:$4 sm:$0xff]  }
 0x16b   :  { %5207 = vmatpush1.bf16.msra.mxu1 %v7663_v3  ;;  %5165 = vmatprep.subr.bf16.mxu0 %v7668_v4  ;;  %v8820_v3 = vpack.c.bf16 %v145_v51, %v121_v50  ;;  %v7722_v4 = vld [vmem:[#allocation2 + $0x14c4] ss:$16 sps:$4 sm:$0xff]   ;;  %v7765_v49 = vld [vmem:[#allocation2 + $0x17e0] ss:$16 sps:$4 sm:$0xff]  }
 0x16c   :  { %5208 = vmatprep.subr.bf16.mxu1 %v7671_v5  ;;  %v7725_v5 = vld [vmem:[#allocation2 + $0x16c4] ss:$16 sps:$4 sm:$0xff]  }
 0x16d   :  { %v7770_v50 = vld [vmem:[#allocation2 + $0x15c4] ss:$16 sps:$4 sm:$0xff]  }
 0x16e   :  { %5166 = vmatpush2.bf16.msra.mxu0 %v7666_v6  ;;  %v7720_v6 = vld [vmem:[#allocation2 + $0x14c0] ss:$16 sps:$4 sm:$0xff]   ;;  %v7773_v51 = vld [vmem:[#allocation2 + $0x17c4] ss:$16 sps:$4 sm:$0xff]  }
 0x16f   :  { %5209 = vmatpush2.bf16.msra.mxu1 %v7669_v7  ;;  %5167 = vmatprep.subr.bf16.mxu0 %v7674_v8  ;;  %v7723_v7 = vld [vmem:[#allocation2 + $0x16c0] ss:$16 sps:$4 sm:$0xff]   ;;  %v8822_v8 = vpack.c.bf16 %v148_v57, %v124_v56  ;;  %v7776_v56 = vld [vmem:[#allocation2 + $0x15a4] ss:$16 sps:$4 sm:$0xff]  }
 0x170   :  { %5210 = vmatprep.subr.bf16.mxu1 %v7677_v9  ;;  %v8824_v9 = vpack.c.bf16 %v150_v61, %v126_v60  ;;  %v7779_v57 = vld [vmem:[#allocation2 + $0x17a4] ss:$16 sps:$4 sm:$0xff]   ;;  %v7774_v60 = vld [vmem:[#allocation2 + $0x15a0] ss:$16 sps:$4 sm:$0xff]  }
 0x171   :  { %v7777_v61 = vld [vmem:[#allocation2 + $0x17a0] ss:$16 sps:$4 sm:$0xff]  }
 0x172   :  { %5168 = vmatpush2.bf16.msra.mxu0 %v7672_v10  ;;  %v7728_v10 = vld [vmem:[#allocation2 + $0x14a4] ss:$16 sps:$4 sm:$0xff]  }
 0x173   :  { %5211 = vmatpush2.bf16.msra.mxu1 %v7675_v11  ;;  %5169 = vmatprep.subr.bf16.mxu0 %v7680_v14  ;;  %v7731_v11 = vld [vmem:[#allocation2 + $0x16a4] ss:$16 sps:$4 sm:$0xff]   ;;  %v7726_v14 = vld [vmem:[#allocation2 + $0x14a0] ss:$16 sps:$4 sm:$0xff]  }
 0x174   :  { %5212 = vmatprep.subr.bf16.mxu1 %v7683_v15  ;;  %v7729_v15 = vld [vmem:[#allocation2 + $0x16a0] ss:$16 sps:$4 sm:$0xff]  }
 0x176   :  { %5170 = vmatpush2.bf16.msra.mxu0 %v7678_v16  ;;  %v7734_v16 = vld [vmem:[#allocation2 + $0x1484] ss:$16 sps:$4 sm:$0xff]  }
 0x177   :  { %5213 = vmatpush2.bf16.msra.mxu1 %v7681_v17  ;;  %5171 = vmatprep.subr.bf16.mxu0 %v7686_v18  ;;  %v7737_v17 = vld [vmem:[#allocation2 + $0x1684] ss:$16 sps:$4 sm:$0xff]   ;;  %v7732_v18 = vld [vmem:[#allocation2 + $0x1480] ss:$16 sps:$4 sm:$0xff]  }
 0x178   :  { %5214 = vmatprep.subr.bf16.mxu1 %v7689_v19  ;;  %v7735_v19 = vld [vmem:[#allocation2 + $0x1680] ss:$16 sps:$4 sm:$0xff]  }
 0x17a   :  { %5172 = vmatpush2.bf16.msra.mxu0 %v7684_v20  ;;  %v7740_v20 = vld [vmem:[#allocation2 + $0x1464] ss:$16 sps:$4 sm:$0xff]  }
 0x17b   :  { %5215 = vmatpush2.bf16.msra.mxu1 %v7687_v21  ;;  %5173 = vmatprep.subr.bf16.mxu0 %v7692_v24  ;;  %v7743_v21 = vld [vmem:[#allocation2 + $0x1664] ss:$16 sps:$4 sm:$0xff]   ;;  %v7738_v24 = vld [vmem:[#allocation2 + $0x1460] ss:$16 sps:$4 sm:$0xff]  }
 0x17c   :  { %5216 = vmatprep.subr.bf16.mxu1 %v7695_v25  ;;  %v7741_v25 = vld [vmem:[#allocation2 + $0x1660] ss:$16 sps:$4 sm:$0xff]  }
 0x17e   :  { %5174 = vmatpush2.bf16.msra.mxu0 %v7690_v26  ;;  %v7746_v26 = vld [vmem:[#allocation2 + $0x1444] ss:$16 sps:$4 sm:$0xff]  }
 0x17f   :  { %5217 = vmatpush2.bf16.msra.mxu1 %v7693_v27  ;;  %5175 = vmatprep.subr.bf16.mxu0 %v7698_v32  ;;  %v7749_v27 = vld [vmem:[#allocation2 + $0x1644] ss:$16 sps:$4 sm:$0xff]   ;;  %v7744_v32 = vld [vmem:[#allocation2 + $0x1440] ss:$16 sps:$4 sm:$0xff]  }
 0x180   :  { %5218 = vmatprep.subr.bf16.mxu1 %v7701_v33  ;;  %v7747_v33 = vld [vmem:[#allocation2 + $0x1640] ss:$16 sps:$4 sm:$0xff]  }
 0x182   :  { %5176 = vmatpush2.bf16.msra.mxu0 %v7696_v34  ;;  %v7752_v34 = vld [vmem:[#allocation2 + $0x1424] ss:$16 sps:$4 sm:$0xff]  }
 0x183   :  { %5219 = vmatpush2.bf16.msra.mxu1 %v7699_v35  ;;  %5177 = vmatprep.subr.bf16.mxu0 %v7704_v36  ;;  %v7755_v35 = vld [vmem:[#allocation2 + $0x1624] ss:$16 sps:$4 sm:$0xff]   ;;  %v7750_v36 = vld [vmem:[#allocation2 + $0x1420] ss:$16 sps:$4 sm:$0xff]  }
 0x184   :  { %5220 = vmatprep.subr.bf16.mxu1 %v7707_v37  ;;  %v7753_v37 = vld [vmem:[#allocation2 + $0x1620] ss:$16 sps:$4 sm:$0xff]  }
 0x186   :  { %5178 = vmatpush2.bf16.msra.mxu0 %v7702_v38  ;;  %v7758_v38 = vld [vmem:[#allocation2 + $0x1404] ss:$16 sps:$4 sm:$0xff]  }
 0x187   :  { %5221 = vmatpush2.bf16.msra.mxu1 %v7705_v39  ;;  %5179 = vmatprep.subr.bf16.mxu0 %v7710_v41  ;;  %v7761_v39 = vld [vmem:[#allocation2 + $0x1604] ss:$16 sps:$4 sm:$0xff]   ;;  %v7756_v41 = vld [vmem:[#allocation2 + $0x1400] ss:$16 sps:$4 sm:$0xff]  }
 0x188   :  { %5222 = vmatprep.subr.bf16.mxu1 %v7713_v42  ;;  %v7759_v42 = vld [vmem:[#allocation2 + $0x1600] ss:$16 sps:$4 sm:$0xff]  }
 0x18a   :  { %5180 = vmatpush2.bf16.msra.mxu0 %v7708_v43  ;;  %v7764_v43 = vld [vmem:[#allocation2 + $0x15e4] ss:$16 sps:$4 sm:$0xff]  }
 0x18b   :  { %5223 = vmatpush2.bf16.msra.mxu1 %v7711_v44  ;;  %5235 = vmatprep.subr.bf16.mxu0 %v7716_v52  ;;  %v7767_v44 = vld [vmem:[#allocation2 + $0x17e4] ss:$16 sps:$4 sm:$0xff]   ;;  %v7768_v52 = vld [vmem:[#allocation2 + $0x15c0] ss:$16 sps:$4 sm:$0xff]  }
 0x18c   :  { %5278 = vmatprep.subr.bf16.mxu1 %v7719_v55  ;;  %v7771_v55 = vld [vmem:[#allocation2 + $0x17c0] ss:$16 sps:$4 sm:$0xff]  }
 0x18d   :  { %5182 = vmatmul.mubr.bf16.vlgmr.msra.gmra.mxu0 %v8818_v2 }
 0x18e   :  { %5225 = vmatmul.mubr.bf16.vlgmr.msra.gmra.mxu1 %v8820_v3  ;;  %5236 = vmatpush1.bf16.msra.mxu0 %v7714_v62  ;;  %v7782_v62 = vld [vmem:[#allocation2 + $0x1584] ss:$16 sps:$4 sm:$0xff]  }
 0x18f   :  { %5279 = vmatpush1.bf16.msra.mxu1 %v7717_v63  ;;  %5237 = vmatprep.subr.bf16.mxu0 %v7722_v4  ;;  %v7785_v63 = vld [vmem:[#allocation2 + $0x1784] ss:$16 sps:$4 sm:$0xff]   ;;  %v7780_v4 = vld [vmem:[#allocation2 + $0x1580] ss:$16 sps:$4 sm:$0xff]  }
 0x190   :  { %5280 = vmatprep.subr.bf16.mxu1 %v7725_v5  ;;  %5267 = vmatprep.mubr.bf16.mxu0 %v8822_v8  ;;  %v7783_v5 = vld [vmem:[#allocation2 + $0x1780] ss:$16 sps:$4 sm:$0xff]  }
 0x191   :  { %5310 = vmatprep.mubr.bf16.mxu1 %v8824_v9 }
 0x192   :  { %5238 = vmatpush1.bf16.msra.mxu0 %v7720_v6  ;;  %v7788_v6 = vld [vmem:[#allocation2 + $0x1564] ss:$16 sps:$4 sm:$0xff]  }
 0x193   :  { %5281 = vmatpush1.bf16.msra.mxu1 %v7723_v7  ;;  %5239 = vmatprep.subr.bf16.mxu0 %v7728_v10  ;;  %v7791_v7 = vld [vmem:[#allocation2 + $0x1764] ss:$16 sps:$4 sm:$0xff]   ;;  %v7786_v10 = vld [vmem:[#allocation2 + $0x1560] ss:$16 sps:$4 sm:$0xff]  }
 0x194   :  { %5282 = vmatprep.subr.bf16.mxu1 %v7731_v11  ;;  %v7789_v11 = vld [vmem:[#allocation2 + $0x1760] ss:$16 sps:$4 sm:$0xff]  }
 0x196   :  { %5240 = vmatpush1.bf16.msra.mxu0 %v7726_v14  ;;  %v7794_v14 = vld [vmem:[#allocation2 + $0x1544] ss:$16 sps:$4 sm:$0xff]  }
 0x197   :  { %5283 = vmatpush1.bf16.msra.mxu1 %v7729_v15  ;;  %5241 = vmatprep.subr.bf16.mxu0 %v7734_v16  ;;  %v7797_v15 = vld [vmem:[#allocation2 + $0x1744] ss:$16 sps:$4 sm:$0xff]   ;;  %v7792_v16 = vld [vmem:[#allocation2 + $0x1540] ss:$16 sps:$4 sm:$0xff]  }
 0x198   :  { %5284 = vmatprep.subr.bf16.mxu1 %v7737_v17  ;;  %v7795_v17 = vld [vmem:[#allocation2 + $0x1740] ss:$16 sps:$4 sm:$0xff]  }
 0x19a   :  { %5242 = vmatpush1.bf16.msra.mxu0 %v7732_v18  ;;  %v7800_v18 = vld [vmem:[#allocation2 + $0x1524] ss:$16 sps:$4 sm:$0xff]  }
 0x19b   :  { %5285 = vmatpush1.bf16.msra.mxu1 %v7735_v19  ;;  %5243 = vmatprep.subr.bf16.mxu0 %v7740_v20  ;;  %v7803_v19 = vld [vmem:[#allocation2 + $0x1724] ss:$16 sps:$4 sm:$0xff]   ;;  %v7798_v20 = vld [vmem:[#allocation2 + $0x1520] ss:$16 sps:$4 sm:$0xff]  }
 0x19c   :  { %5286 = vmatprep.subr.bf16.mxu1 %v7743_v21  ;;  %v7801_v21 = vld [vmem:[#allocation2 + $0x1720] ss:$16 sps:$4 sm:$0xff]  }
 0x19e   :  { %5244 = vmatpush1.bf16.msra.mxu0 %v7738_v24  ;;  %v7806_v24 = vld [vmem:[#allocation2 + $0x1504] ss:$16 sps:$4 sm:$0xff]  }
 0x19f   :  { %5287 = vmatpush1.bf16.msra.mxu1 %v7741_v25  ;;  %5245 = vmatprep.subr.bf16.mxu0 %v7746_v26  ;;  %v7809_v25 = vld [vmem:[#allocation2 + $0x1704] ss:$16 sps:$4 sm:$0xff]   ;;  %v7804_v26 = vld [vmem:[#allocation2 + $0x1500] ss:$16 sps:$4 sm:$0xff]  }
 0x1a0   :  { %5288 = vmatprep.subr.bf16.mxu1 %v7749_v27  ;;  %v7807_v27 = vld [vmem:[#allocation2 + $0x1700] ss:$16 sps:$4 sm:$0xff]  }
 0x1a2   :  { %5246 = vmatpush1.bf16.msra.mxu0 %v7744_v32  ;;  %v123_v32 = vld [vmem:[%s9022_s0 + $0xa0] sm:$0xff] }
 0x1a3   :  { %5289 = vmatpush1.bf16.msra.mxu1 %v7747_v33  ;;  %5247 = vmatprep.subr.bf16.mxu0 %v7752_v34  ;;  %v147_v33 = vld [vmem:[%s9022_s0 + $0x160] sm:$0xff]  ;;  %v125_v34 = vld [vmem:[%s9022_s0 + $0xb0] sm:$0xff] }
 0x1a4   :  { %5290 = vmatprep.subr.bf16.mxu1 %v7755_v35  ;;  %v149_v35 = vld [vmem:[%s9022_s0 + $0x170] sm:$0xff] }
 0x1a6   :  { %5248 = vmatpush1.bf16.msra.mxu0 %v7750_v36  ;;  %v7812_v36 = vld [vmem:[#allocation2 + $0xec] ss:$16 sps:$4 sm:$0xff]  }
 0x1a7   :  { %5291 = vmatpush1.bf16.msra.mxu1 %v7753_v37  ;;  %5249 = vmatprep.subr.bf16.mxu0 %v7758_v38  ;;  %v7815_v37 = vld [vmem:[#allocation2 + $0x2ec] ss:$16 sps:$4 sm:$0xff]   ;;  %v7810_v38 = vld [vmem:[#allocation2 + $0xe8] ss:$16 sps:$4 sm:$0xff]  }
 0x1a8   :  { %5292 = vmatprep.subr.bf16.mxu1 %v7761_v39  ;;  %v7813_v39 = vld [vmem:[#allocation2 + $0x2e8] ss:$16 sps:$4 sm:$0xff]  }
 0x1aa   :  { %5250 = vmatpush1.bf16.msra.mxu0 %v7756_v41  ;;  %v8842_v41 = vpack.c.bf16 %v147_v33, %v123_v32  ;;  %v7864_v32 = vld [vmem:[#allocation2 + $0x1c8] ss:$16 sps:$4 sm:$0xff]  }
 0x1ab   :  { %5293 = vmatpush1.bf16.msra.mxu1 %v7759_v42  ;;  %5251 = vmatprep.subr.bf16.mxu0 %v7764_v43  ;;  %v8844_v42 = vpack.c.bf16 %v149_v35, %v125_v34  ;;  %v7818_v43 = vld [vmem:[#allocation2 + $0xcc] ss:$16 sps:$4 sm:$0xff]   ;;  %v7867_v33 = vld [vmem:[#allocation2 + $0x3c8] ss:$16 sps:$4 sm:$0xff]  }
 0x1ac   :  { %5294 = vmatprep.subr.bf16.mxu1 %v7767_v44  ;;  %v7821_v44 = vld [vmem:[#allocation2 + $0x2cc] ss:$16 sps:$4 sm:$0xff]  }
 0x1ad   :  { %v7872_v34 = vld [vmem:[#allocation2 + $0x1ac] ss:$16 sps:$4 sm:$0xff]  }
 0x1ae   :  { %5252 = vmatpush2.bf16.msra.mxu0 %v7762_v48  ;;  %v7816_v48 = vld [vmem:[#allocation2 + $0xc8] ss:$16 sps:$4 sm:$0xff]   ;;  %v7875_v35 = vld [vmem:[#allocation2 + $0x3ac] ss:$16 sps:$4 sm:$0xff]  }
 0x1af   :  { %5295 = vmatpush2.bf16.msra.mxu1 %v7765_v49  ;;  %5253 = vmatprep.subr.bf16.mxu0 %v7770_v50  ;;  %v7819_v49 = vld [vmem:[#allocation2 + $0x2c8] ss:$16 sps:$4 sm:$0xff]   ;;  %v7824_v50 = vld [vmem:[#allocation2 + $0xac] ss:$16 sps:$4 sm:$0xff]  }
 0x1b0   :  { %5296 = vmatprep.subr.bf16.mxu1 %v7773_v51  ;;  %v7827_v51 = vld [vmem:[#allocation2 + $0x2ac] ss:$16 sps:$4 sm:$0xff]  }
 0x1b2   :  { %5254 = vmatpush2.bf16.msra.mxu0 %v7768_v52  ;;  %v7822_v52 = vld [vmem:[#allocation2 + $0xa8] ss:$16 sps:$4 sm:$0xff]  }
 0x1b3   :  { %5297 = vmatpush2.bf16.msra.mxu1 %v7771_v55  ;;  %5255 = vmatprep.subr.bf16.mxu0 %v7776_v56  ;;  %v7825_v55 = vld [vmem:[#allocation2 + $0x2a8] ss:$16 sps:$4 sm:$0xff]   ;;  %v7830_v56 = vld [vmem:[#allocation2 + $0x8c] ss:$16 sps:$4 sm:$0xff]  }
 0x1b4   :  { %5298 = vmatprep.subr.bf16.mxu1 %v7779_v57  ;;  %v7833_v57 = vld [vmem:[#allocation2 + $0x28c] ss:$16 sps:$4 sm:$0xff]  }
 0x1b6   :  { %5256 = vmatpush2.bf16.msra.mxu0 %v7774_v60  ;;  %v7828_v60 = vld [vmem:[#allocation2 + $0x88] ss:$16 sps:$4 sm:$0xff]  }
 0x1b7   :  { %5299 = vmatpush2.bf16.msra.mxu1 %v7777_v61  ;;  %5257 = vmatprep.subr.bf16.mxu0 %v7782_v62  ;;  %v7831_v61 = vld [vmem:[#allocation2 + $0x288] ss:$16 sps:$4 sm:$0xff]   ;;  %v7836_v62 = vld [vmem:[#allocation2 + $0x6c] ss:$16 sps:$4 sm:$0xff]  }
 0x1b8   :  { %5300 = vmatprep.subr.bf16.mxu1 %v7785_v63  ;;  %v7839_v63 = vld [vmem:[#allocation2 + $0x26c] ss:$16 sps:$4 sm:$0xff]  }
 0x1ba   :  { %5258 = vmatpush2.bf16.msra.mxu0 %v7780_v4  ;;  %v7834_v4 = vld [vmem:[#allocation2 + $0x68] ss:$16 sps:$4 sm:$0xff]  }
 0x1bb   :  { %5301 = vmatpush2.bf16.msra.mxu1 %v7783_v5  ;;  %5259 = vmatprep.subr.bf16.mxu0 %v7788_v6  ;;  %v7845_v5 = vld [vmem:[#allocation2 + $0x24c] ss:$16 sps:$4 sm:$0xff]   ;;  %v7840_v6 = vld [vmem:[#allocation2 + $0x48] ss:$16 sps:$4 sm:$0xff]  }
 0x1bc   :  { %5302 = vmatprep.subr.bf16.mxu1 %v7791_v7  ;;  %v7843_v7 = vld [vmem:[#allocation2 + $0x248] ss:$16 sps:$4 sm:$0xff]  }
 0x1be   :  { %5260 = vmatpush2.bf16.msra.mxu0 %v7786_v10  ;;  %v7848_v10 = vld [vmem:[#allocation2 + $0x2c] ss:$16 sps:$4 sm:$0xff]  }
 0x1bf   :  { %5303 = vmatpush2.bf16.msra.mxu1 %v7789_v11  ;;  %5261 = vmatprep.subr.bf16.mxu0 %v7794_v14  ;;  %v7851_v11 = vld [vmem:[#allocation2 + $0x22c] ss:$16 sps:$4 sm:$0xff]   ;;  %v7846_v14 = vld [vmem:[#allocation2 + $0x28] ss:$16 sps:$4 sm:$0xff]  }
 0x1c0   :  { %5304 = vmatprep.subr.bf16.mxu1 %v7797_v15  ;;  %v7849_v15 = vld [vmem:[#allocation2 + $0x228] ss:$16 sps:$4 sm:$0xff]  }
 0x1c2   :  { %5262 = vmatpush2.bf16.msra.mxu0 %v7792_v16  ;;  %v7854_v16 = vld [vmem:[#allocation2 + $0xc] ss:$16 sps:$4 sm:$0xff]  }
 0x1c3   :  { %5305 = vmatpush2.bf16.msra.mxu1 %v7795_v17  ;;  %5263 = vmatprep.subr.bf16.mxu0 %v7800_v18  ;;  %v7857_v17 = vld [vmem:[#allocation2 + $0x20c] ss:$16 sps:$4 sm:$0xff]   ;;  %v7852_v18 = vld [vmem:[#allocation2 + $0x8] ss:$16 sps:$4 sm:$0xff]  }
 0x1c4   :  { %5306 = vmatprep.subr.bf16.mxu1 %v7803_v19  ;;  %v7855_v19 = vld [vmem:[#allocation2 + $0x208] ss:$16 sps:$4 sm:$0xff]  }
 0x1c6   :  { %5264 = vmatpush2.bf16.msra.mxu0 %v7798_v20  ;;  %v7860_v20 = vld [vmem:[#allocation2 + $0x1ec] ss:$16 sps:$4 sm:$0xff]  }
 0x1c7   :  { %5307 = vmatpush2.bf16.msra.mxu1 %v7801_v21  ;;  %5265 = vmatprep.subr.bf16.mxu0 %v7806_v24  ;;  %v7863_v21 = vld [vmem:[#allocation2 + $0x3ec] ss:$16 sps:$4 sm:$0xff]   ;;  %v7858_v24 = vld [vmem:[#allocation2 + $0x1e8] ss:$16 sps:$4 sm:$0xff]  }
 0x1c8   :  { %5308 = vmatprep.subr.bf16.mxu1 %v7809_v25  ;;  %v7861_v25 = vld [vmem:[#allocation2 + $0x3e8] ss:$16 sps:$4 sm:$0xff]  }
 0x1ca   :  { %5266 = vmatpush2.bf16.msra.mxu0 %v7804_v26  ;;  %v7866_v26 = vld [vmem:[#allocation2 + $0x1cc] ss:$16 sps:$4 sm:$0xff]  }
 0x1cb   :  { %5309 = vmatpush2.bf16.msra.mxu1 %v7807_v27  ;;  %5321 = vmatprep.subr.bf16.mxu0 %v7812_v36  ;;  %v7869_v27 = vld [vmem:[#allocation2 + $0x3cc] ss:$16 sps:$4 sm:$0xff]   ;;  %v7870_v36 = vld [vmem:[#allocation2 + $0x1a8] ss:$16 sps:$4 sm:$0xff]  }
 0x1cc   :  { %5364 = vmatprep.subr.bf16.mxu1 %v7815_v37  ;;  %v7873_v37 = vld [vmem:[#allocation2 + $0x3a8] ss:$16 sps:$4 sm:$0xff]  }
 0x1cd   :  { %5268 = vmatmul.mubr.bf16.vlgmr.msra.gmra.mxu0 %v8842_v41 }
 0x1ce   :  { %5311 = vmatmul.mubr.bf16.vlgmr.msra.gmra.mxu1 %v8844_v42  ;;  %5322 = vmatpush1.bf16.msra.mxu0 %v7810_v38  ;;  %v7878_v38 = vld [vmem:[#allocation2 + $0x18c] ss:$16 sps:$4 sm:$0xff]  }
 0x1cf   :  { %5365 = vmatpush1.bf16.msra.mxu1 %v7813_v39  ;;  %5323 = vmatprep.subr.bf16.mxu0 %v7818_v43  ;;  %v7881_v39 = vld [vmem:[#allocation2 + $0x38c] ss:$16 sps:$4 sm:$0xff]   ;;  %v7876_v43 = vld [vmem:[#allocation2 + $0x188] ss:$16 sps:$4 sm:$0xff]  }
 0x1d0   :  { %5366 = vmatprep.subr.bf16.mxu1 %v7821_v44  ;;  %5353 = vmatprep.mubr.bf16.mxu0 %v8644_v53  ;;  %v7837_v53 = vld [vmem:[#allocation2 + $0x268] ss:$16 sps:$4 sm:$0xff]  }
 0x1d1   :  { %5396 = vmatprep.mubr.bf16.mxu1 %v8646_v54  ;;  %v7842_v54 = vld [vmem:[#allocation2 + $0x4c] ss:$16 sps:$4 sm:$0xff]   ;;  %v7879_v44 = vld [vmem:[#allocation2 + $0x388] ss:$16 sps:$4 sm:$0xff]  }
 0x1d2   :  { %5324 = vmatpush1.bf16.msra.mxu0 %v7816_v48  ;;  %v7884_v48 = vld [vmem:[#allocation2 + $0x16c] ss:$16 sps:$4 sm:$0xff]  }
 0x1d3   :  { %5367 = vmatpush1.bf16.msra.mxu1 %v7819_v49  ;;  %5325 = vmatprep.subr.bf16.mxu0 %v7824_v50  ;;  %v7887_v49 = vld [vmem:[#allocation2 + $0x36c] ss:$16 sps:$4 sm:$0xff]   ;;  %v7882_v50 = vld [vmem:[#allocation2 + $0x168] ss:$16 sps:$4 sm:$0xff]  }
 0x1d4   :  { %5368 = vmatprep.subr.bf16.mxu1 %v7827_v51  ;;  %v7885_v51 = vld [vmem:[#allocation2 + $0x368] ss:$16 sps:$4 sm:$0xff]  }
 0x1d6   :  { %5326 = vmatpush1.bf16.msra.mxu0 %v7822_v52  ;;  %v7890_v52 = vld [vmem:[#allocation2 + $0x14c] ss:$16 sps:$4 sm:$0xff]  }
 0x1d7   :  { %5369 = vmatpush1.bf16.msra.mxu1 %v7825_v55  ;;  %5327 = vmatprep.subr.bf16.mxu0 %v7830_v56  ;;  %v7893_v55 = vld [vmem:[#allocation2 + $0x34c] ss:$16 sps:$4 sm:$0xff]   ;;  %v7888_v56 = vld [vmem:[#allocation2 + $0x148] ss:$16 sps:$4 sm:$0xff]  }
 0x1d8   :  { %5370 = vmatprep.subr.bf16.mxu1 %v7833_v57  ;;  %v7891_v57 = vld [vmem:[#allocation2 + $0x348] ss:$16 sps:$4 sm:$0xff]  }
 0x1da   :  { %5328 = vmatpush1.bf16.msra.mxu0 %v7828_v60  ;;  %v7896_v60 = vld [vmem:[#allocation2 + $0x12c] ss:$16 sps:$4 sm:$0xff]  }
 0x1db   :  { %5371 = vmatpush1.bf16.msra.mxu1 %v7831_v61  ;;  %5329 = vmatprep.subr.bf16.mxu0 %v7836_v62  ;;  %v7899_v61 = vld [vmem:[#allocation2 + $0x32c] ss:$16 sps:$4 sm:$0xff]   ;;  %v7894_v62 = vld [vmem:[#allocation2 + $0x128] ss:$16 sps:$4 sm:$0xff]  }
 0x1dc   :  { %5372 = vmatprep.subr.bf16.mxu1 %v7839_v63  ;;  %v7897_v63 = vld [vmem:[#allocation2 + $0x328] ss:$16 sps:$4 sm:$0xff]  }
 0x1de   :  { %5330 = vmatpush1.bf16.msra.mxu0 %v7834_v4  ;;  %v7902_v4 = vld [vmem:[#allocation2 + $0x10c] ss:$16 sps:$4 sm:$0xff]  }
 0x1df   :  { %5373 = vmatpush1.bf16.msra.mxu1 %v7837_v53  ;;  %5331 = vmatprep.subr.bf16.mxu0 %v7842_v54  ;;  %v7905_v53 = vld [vmem:[#allocation2 + $0x30c] ss:$16 sps:$4 sm:$0xff]   ;;  %v7900_v54 = vld [vmem:[#allocation2 + $0x108] ss:$16 sps:$4 sm:$0xff]  }
 0x1e0   :  { %5374 = vmatprep.subr.bf16.mxu1 %v7845_v5  ;;  %v7903_v5 = vld [vmem:[#allocation2 + $0x308] ss:$16 sps:$4 sm:$0xff]  }
 0x1e2   :  { %5332 = vmatpush1.bf16.msra.mxu0 %v7840_v6  ;;  %v7908_v6 = vld [vmem:[#allocation2 + $0x4ec] ss:$16 sps:$4 sm:$0xff]  }
 0x1e3   :  { %5375 = vmatpush1.bf16.msra.mxu1 %v7843_v7  ;;  %5333 = vmatprep.subr.bf16.mxu0 %v7848_v10  ;;  %v7911_v7 = vld [vmem:[#allocation2 + $0x6ec] ss:$16 sps:$4 sm:$0xff]   ;;  %v7906_v10 = vld [vmem:[#allocation2 + $0x4e8] ss:$16 sps:$4 sm:$0xff]  }
 0x1e4   :  { %5376 = vmatprep.subr.bf16.mxu1 %v7851_v11  ;;  %v7909_v11 = vld [vmem:[#allocation2 + $0x6e8] ss:$16 sps:$4 sm:$0xff]  }
 0x1e6   :  { %5334 = vmatpush1.bf16.msra.mxu0 %v7846_v14  ;;  %v7914_v14 = vld [vmem:[#allocation2 + $0x4cc] ss:$16 sps:$4 sm:$0xff]  }
 0x1e7   :  { %5377 = vmatpush1.bf16.msra.mxu1 %v7849_v15  ;;  %5335 = vmatprep.subr.bf16.mxu0 %v7854_v16  ;;  %v7917_v15 = vld [vmem:[#allocation2 + $0x6cc] ss:$16 sps:$4 sm:$0xff]   ;;  %v7912_v16 = vld [vmem:[#allocation2 + $0x4c8] ss:$16 sps:$4 sm:$0xff]  }
 0x1e8   :  { %5378 = vmatprep.subr.bf16.mxu1 %v7857_v17  ;;  %v7915_v17 = vld [vmem:[#allocation2 + $0x6c8] ss:$16 sps:$4 sm:$0xff]  }
 0x1ea   :  { %5336 = vmatpush1.bf16.msra.mxu0 %v7852_v18  ;;  %v7920_v18 = vld [vmem:[#allocation2 + $0x4ac] ss:$16 sps:$4 sm:$0xff]  }
 0x1eb   :  { %5379 = vmatpush1.bf16.msra.mxu1 %v7855_v19  ;;  %5337 = vmatprep.subr.bf16.mxu0 %v7860_v20  ;;  %v7923_v19 = vld [vmem:[#allocation2 + $0x6ac] ss:$16 sps:$4 sm:$0xff]   ;;  %v7918_v20 = vld [vmem:[#allocation2 + $0x4a8] ss:$16 sps:$4 sm:$0xff]  }
 0x1ec   :  { %5380 = vmatprep.subr.bf16.mxu1 %v7863_v21  ;;  %v7921_v21 = vld [vmem:[#allocation2 + $0x6a8] ss:$16 sps:$4 sm:$0xff]  }
 0x1ee   :  { %5338 = vmatpush2.bf16.msra.mxu0 %v7858_v24  ;;  %v7926_v24 = vld [vmem:[#allocation2 + $0x48c] ss:$16 sps:$4 sm:$0xff]  }
 0x1ef   :  { %5381 = vmatpush2.bf16.msra.mxu1 %v7861_v25  ;;  %5339 = vmatprep.subr.bf16.mxu0 %v7866_v26  ;;  %v7924_v25 = vld [vmem:[#allocation2 + $0x488] ss:$16 sps:$4 sm:$0xff]   ;;  %v7932_v26 = vld [vmem:[#allocation2 + $0x46c] ss:$16 sps:$4 sm:$0xff]  }
 0x1f0   :  { %5382 = vmatprep.subr.bf16.mxu1 %v7869_v27  ;;  %v7935_v27 = vld [vmem:[#allocation2 + $0x66c] ss:$16 sps:$4 sm:$0xff]  }
 0x1f2   :  { %5340 = vmatpush2.bf16.msra.mxu0 %v7864_v32  ;;  %v7930_v32 = vld [vmem:[#allocation2 + $0x468] ss:$16 sps:$4 sm:$0xff]  }
 0x1f3   :  { %5383 = vmatpush2.bf16.msra.mxu1 %v7867_v33  ;;  %5341 = vmatprep.subr.bf16.mxu0 %v7872_v34  ;;  %v7941_v33 = vld [vmem:[#allocation2 + $0x64c] ss:$16 sps:$4 sm:$0xff]   ;;  %v7936_v34 = vld [vmem:[#allocation2 + $0x448] ss:$16 sps:$4 sm:$0xff]  }
 0x1f4   :  { %5384 = vmatprep.subr.bf16.mxu1 %v7875_v35  ;;  %v7939_v35 = vld [vmem:[#allocation2 + $0x648] ss:$16 sps:$4 sm:$0xff]  }
 0x1f6   :  { %5342 = vmatpush2.bf16.msra.mxu0 %v7870_v36  ;;  %v7944_v36 = vld [vmem:[#allocation2 + $0x42c] ss:$16 sps:$4 sm:$0xff]  }
 0x1f7   :  { %5385 = vmatpush2.bf16.msra.mxu1 %v7873_v37  ;;  %5343 = vmatprep.subr.bf16.mxu0 %v7878_v38  ;;  %v7947_v37 = vld [vmem:[#allocation2 + $0x62c] ss:$16 sps:$4 sm:$0xff]   ;;  %v7942_v38 = vld [vmem:[#allocation2 + $0x428] ss:$16 sps:$4 sm:$0xff]  }
 0x1f8   :  { %5386 = vmatprep.subr.bf16.mxu1 %v7881_v39  ;;  %v7945_v39 = vld [vmem:[#allocation2 + $0x628] ss:$16 sps:$4 sm:$0xff]  }
 0x1fa   :  { %5344 = vmatpush2.bf16.msra.mxu0 %v7876_v43  ;;  %v7950_v43 = vld [vmem:[#allocation2 + $0x40c] ss:$16 sps:$4 sm:$0xff]  }
 0x1fb   :  { %5387 = vmatpush2.bf16.msra.mxu1 %v7879_v44  ;;  %5345 = vmatprep.subr.bf16.mxu0 %v7884_v48  ;;  %v7953_v44 = vld [vmem:[#allocation2 + $0x60c] ss:$16 sps:$4 sm:$0xff]   ;;  %v7948_v48 = vld [vmem:[#allocation2 + $0x408] ss:$16 sps:$4 sm:$0xff]  }
 0x1fc   :  { %5388 = vmatprep.subr.bf16.mxu1 %v7887_v49  ;;  %v7951_v49 = vld [vmem:[#allocation2 + $0x608] ss:$16 sps:$4 sm:$0xff]  }
 0x1fe   :  { %5346 = vmatpush2.bf16.msra.mxu0 %v7882_v50  ;;  %v7956_v50 = vld [vmem:[#allocation2 + $0x5ec] ss:$16 sps:$4 sm:$0xff]  }
 0x1ff   :  { %5389 = vmatpush2.bf16.msra.mxu1 %v7885_v51  ;;  %5347 = vmatprep.subr.bf16.mxu0 %v7890_v52  ;;  %v7959_v51 = vld [vmem:[#allocation2 + $0x7ec] ss:$16 sps:$4 sm:$0xff]   ;;  %v7954_v52 = vld [vmem:[#allocation2 + $0x5e8] ss:$16 sps:$4 sm:$0xff]  }
 0x200   :  { %5390 = vmatprep.subr.bf16.mxu1 %v7893_v55  ;;  %v7957_v55 = vld [vmem:[#allocation2 + $0x7e8] ss:$16 sps:$4 sm:$0xff]  }
 0x202   :  { %5348 = vmatpush2.bf16.msra.mxu0 %v7888_v56  ;;  %v7962_v56 = vld [vmem:[#allocation2 + $0x5cc] ss:$16 sps:$4 sm:$0xff]  }
 0x203   :  { %5391 = vmatpush2.bf16.msra.mxu1 %v7891_v57  ;;  %5349 = vmatprep.subr.bf16.mxu0 %v7896_v60  ;;  %v7965_v57 = vld [vmem:[#allocation2 + $0x7cc] ss:$16 sps:$4 sm:$0xff]   ;;  %v7960_v60 = vld [vmem:[#allocation2 + $0x5c8] ss:$16 sps:$4 sm:$0xff]  }
 0x204   :  { %5392 = vmatprep.subr.bf16.mxu1 %v7899_v61  ;;  %v7963_v61 = vld [vmem:[#allocation2 + $0x7c8] ss:$16 sps:$4 sm:$0xff]  }
 0x206   :  { %5350 = vmatpush2.bf16.msra.mxu0 %v7894_v62  ;;  %v7968_v62 = vld [vmem:[#allocation2 + $0x5ac] ss:$16 sps:$4 sm:$0xff]  }
 0x207   :  { %5393 = vmatpush2.bf16.msra.mxu1 %v7897_v63  ;;  %5351 = vmatprep.subr.bf16.mxu0 %v7902_v4  ;;  %v7971_v63 = vld [vmem:[#allocation2 + $0x7ac] ss:$16 sps:$4 sm:$0xff]   ;;  %v7966_v4 = vld [vmem:[#allocation2 + $0x5a8] ss:$16 sps:$4 sm:$0xff]  }
 0x208   :  { %5394 = vmatprep.subr.bf16.mxu1 %v7905_v53  ;;  %v7969_v53 = vld [vmem:[#allocation2 + $0x7a8] ss:$16 sps:$4 sm:$0xff]  }
 0x20a   :  { %5352 = vmatpush2.bf16.msra.mxu0 %v7900_v54  ;;  %v7974_v54 = vld [vmem:[#allocation2 + $0x58c] ss:$16 sps:$4 sm:$0xff]  }
 0x20b   :  { %5395 = vmatpush2.bf16.msra.mxu1 %v7903_v5  ;;  %5407 = vmatprep.subr.bf16.mxu0 %v7908_v6  ;;  %v7977_v5 = vld [vmem:[#allocation2 + $0x78c] ss:$16 sps:$4 sm:$0xff]   ;;  %v7972_v6 = vld [vmem:[#allocation2 + $0x588] ss:$16 sps:$4 sm:$0xff]  }
 0x20c   :  { %5450 = vmatprep.subr.bf16.mxu1 %v7911_v7  ;;  %v7975_v7 = vld [vmem:[#allocation2 + $0x788] ss:$16 sps:$4 sm:$0xff]  }
 0x20d   :  { %5354 = vmatmul.mubr.bf16.vlgmr.msra.gmra.mxu0 %v8662_v12  ;;  %v7929_v12 = vld [vmem:[#allocation2 + $0x68c] ss:$16 sps:$4 sm:$0xff]  }
 0x20e   :  { %5397 = vmatmul.mubr.bf16.vlgmr.msra.gmra.mxu1 %v8664_v13  ;;  %5408 = vmatpush1.bf16.msra.mxu0 %v7906_v10  ;;  %v7927_v13 = vld [vmem:[#allocation2 + $0x688] ss:$16 sps:$4 sm:$0xff]   ;;  %v7980_v10 = vld [vmem:[#allocation2 + $0x56c] ss:$16 sps:$4 sm:$0xff]  }
 0x20f   :  { %5451 = vmatpush1.bf16.msra.mxu1 %v7909_v11  ;;  %5409 = vmatprep.subr.bf16.mxu0 %v7914_v14  ;;  %v7983_v11 = vld [vmem:[#allocation2 + $0x76c] ss:$16 sps:$4 sm:$0xff]   ;;  %v7978_v14 = vld [vmem:[#allocation2 + $0x568] ss:$16 sps:$4 sm:$0xff]  }
 0x210   :  { %5452 = vmatprep.subr.bf16.mxu1 %v7917_v15  ;;  %5439 = vmatprep.mubr.bf16.mxu0 %v8677_v45  ;;  %v7933_v45 = vld [vmem:[#allocation2 + $0x668] ss:$16 sps:$4 sm:$0xff]  }
 0x211   :  { %5482 = vmatprep.mubr.bf16.mxu1 %v8682_v47  ;;  %v7938_v47 = vld [vmem:[#allocation2 + $0x44c] ss:$16 sps:$4 sm:$0xff]   ;;  %v7981_v15 = vld [vmem:[#allocation2 + $0x768] ss:$16 sps:$4 sm:$0xff]  }
 0x212   :  { %5410 = vmatpush1.bf16.msra.mxu0 %v7912_v16  ;;  %v7986_v16 = vld [vmem:[#allocation2 + $0x54c] ss:$16 sps:$4 sm:$0xff]  }
 0x213   :  { %5453 = vmatpush1.bf16.msra.mxu1 %v7915_v17  ;;  %5411 = vmatprep.subr.bf16.mxu0 %v7920_v18  ;;  %v7989_v17 = vld [vmem:[#allocation2 + $0x74c] ss:$16 sps:$4 sm:$0xff]   ;;  %v7984_v18 = vld [vmem:[#allocation2 + $0x548] ss:$16 sps:$4 sm:$0xff]  }
 0x214   :  { %5454 = vmatprep.subr.bf16.mxu1 %v7923_v19  ;;  %v7987_v19 = vld [vmem:[#allocation2 + $0x748] ss:$16 sps:$4 sm:$0xff]  }
 0x216   :  { %5412 = vmatpush1.bf16.msra.mxu0 %v7918_v20  ;;  %v7992_v20 = vld [vmem:[#allocation2 + $0x52c] ss:$16 sps:$4 sm:$0xff]  }
 0x217   :  { %5455 = vmatpush1.bf16.msra.mxu1 %v7921_v21  ;;  %5413 = vmatprep.subr.bf16.mxu0 %v7926_v24  ;;  %v7995_v21 = vld [vmem:[#allocation2 + $0x72c] ss:$16 sps:$4 sm:$0xff]   ;;  %v7990_v24 = vld [vmem:[#allocation2 + $0x528] ss:$16 sps:$4 sm:$0xff]  }
 0x218   :  { %5456 = vmatprep.subr.bf16.mxu1 %v7929_v12  ;;  %v7993_v12 = vld [vmem:[#allocation2 + $0x728] ss:$16 sps:$4 sm:$0xff]  }
 0x21a   :  { %5414 = vmatpush1.bf16.msra.mxu0 %v7924_v25  ;;  %v7998_v25 = vld [vmem:[#allocation2 + $0x50c] ss:$16 sps:$4 sm:$0xff]  }
 0x21b   :  { %5457 = vmatpush1.bf16.msra.mxu1 %v7927_v13  ;;  %5415 = vmatprep.subr.bf16.mxu0 %v7932_v26  ;;  %v8001_v13 = vld [vmem:[#allocation2 + $0x70c] ss:$16 sps:$4 sm:$0xff]   ;;  %v7996_v26 = vld [vmem:[#allocation2 + $0x508] ss:$16 sps:$4 sm:$0xff]  }
 0x21c   :  { %5458 = vmatprep.subr.bf16.mxu1 %v7935_v27  ;;  %v7999_v27 = vld [vmem:[#allocation2 + $0x708] ss:$16 sps:$4 sm:$0xff]  }
 0x21e   :  { %5416 = vmatpush1.bf16.msra.mxu0 %v7930_v32  ;;  %v8004_v32 = vld [vmem:[#allocation2 + $0x8ec] ss:$16 sps:$4 sm:$0xff]  }
 0x21f   :  { %5459 = vmatpush1.bf16.msra.mxu1 %v7933_v45  ;;  %5417 = vmatprep.subr.bf16.mxu0 %v7938_v47  ;;  %v8007_v45 = vld [vmem:[#allocation2 + $0xaec] ss:$16 sps:$4 sm:$0xff]   ;;  %v8002_v47 = vld [vmem:[#allocation2 + $0x8e8] ss:$16 sps:$4 sm:$0xff]  }
 0x220   :  { %5460 = vmatprep.subr.bf16.mxu1 %v7941_v33  ;;  %v8005_v33 = vld [vmem:[#allocation2 + $0xae8] ss:$16 sps:$4 sm:$0xff]  }
 0x222   :  { %5418 = vmatpush1.bf16.msra.mxu0 %v7936_v34  ;;  %v8010_v34 = vld [vmem:[#allocation2 + $0x8cc] ss:$16 sps:$4 sm:$0xff]  }
 0x223   :  { %5461 = vmatpush1.bf16.msra.mxu1 %v7939_v35  ;;  %5419 = vmatprep.subr.bf16.mxu0 %v7944_v36  ;;  %v8013_v35 = vld [vmem:[#allocation2 + $0xacc] ss:$16 sps:$4 sm:$0xff]   ;;  %v8008_v36 = vld [vmem:[#allocation2 + $0x8c8] ss:$16 sps:$4 sm:$0xff]  }
 0x224   :  { %5462 = vmatprep.subr.bf16.mxu1 %v7947_v37  ;;  %v8011_v37 = vld [vmem:[#allocation2 + $0xac8] ss:$16 sps:$4 sm:$0xff]  }
 0x226   :  { %5420 = vmatpush1.bf16.msra.mxu0 %v7942_v38  ;;  %v8016_v38 = vld [vmem:[#allocation2 + $0x8ac] ss:$16 sps:$4 sm:$0xff]  }
 0x227   :  { %5463 = vmatpush1.bf16.msra.mxu1 %v7945_v39  ;;  %5421 = vmatprep.subr.bf16.mxu0 %v7950_v43  ;;  %v8019_v39 = vld [vmem:[#allocation2 + $0xaac] ss:$16 sps:$4 sm:$0xff]   ;;  %v8014_v43 = vld [vmem:[#allocation2 + $0x8a8] ss:$16 sps:$4 sm:$0xff]  }
 0x228   :  { %5464 = vmatprep.subr.bf16.mxu1 %v7953_v44  ;;  %v8017_v44 = vld [vmem:[#allocation2 + $0xaa8] ss:$16 sps:$4 sm:$0xff]  }
 0x22a   :  { %5422 = vmatpush1.bf16.msra.mxu0 %v7948_v48  ;;  %v8020_v48 = vld [vmem:[#allocation2 + $0x888] ss:$16 sps:$4 sm:$0xff]  }
 0x22b   :  { %5465 = vmatpush1.bf16.msra.mxu1 %v7951_v49  ;;  %5423 = vmatprep.subr.bf16.mxu0 %v7956_v50  ;;  %v8023_v49 = vld [vmem:[#allocation2 + $0xa88] ss:$16 sps:$4 sm:$0xff]   ;;  %v8028_v50 = vld [vmem:[#allocation2 + $0x86c] ss:$16 sps:$4 sm:$0xff]  }
 0x22c   :  { %5466 = vmatprep.subr.bf16.mxu1 %v7959_v51  ;;  %v8031_v51 = vld [vmem:[#allocation2 + $0xa6c] ss:$16 sps:$4 sm:$0xff]  }
 0x22e   :  { %5424 = vmatpush2.bf16.msra.mxu0 %v7954_v52  ;;  %v8034_v52 = vld [vmem:[#allocation2 + $0x84c] ss:$16 sps:$4 sm:$0xff]  }
 0x22f   :  { %5467 = vmatpush2.bf16.msra.mxu1 %v7957_v55  ;;  %5425 = vmatprep.subr.bf16.mxu0 %v7962_v56  ;;  %v8037_v55 = vld [vmem:[#allocation2 + $0xa4c] ss:$16 sps:$4 sm:$0xff]   ;;  %v8032_v56 = vld [vmem:[#allocation2 + $0x848] ss:$16 sps:$4 sm:$0xff]  }
 0x230   :  { %5468 = vmatprep.subr.bf16.mxu1 %v7965_v57  ;;  %v8035_v57 = vld [vmem:[#allocation2 + $0xa48] ss:$16 sps:$4 sm:$0xff]  }
 0x232   :  { %5426 = vmatpush2.bf16.msra.mxu0 %v7960_v60  ;;  %v8040_v60 = vld [vmem:[#allocation2 + $0x82c] ss:$16 sps:$4 sm:$0xff]  }
 0x233   :  { %5469 = vmatpush2.bf16.msra.mxu1 %v7963_v61  ;;  %5427 = vmatprep.subr.bf16.mxu0 %v7968_v62  ;;  %v8043_v61 = vld [vmem:[#allocation2 + $0xa2c] ss:$16 sps:$4 sm:$0xff]   ;;  %v8038_v62 = vld [vmem:[#allocation2 + $0x828] ss:$16 sps:$4 sm:$0xff]  }
 0x234   :  { %5470 = vmatprep.subr.bf16.mxu1 %v7971_v63  ;;  %v8041_v63 = vld [vmem:[#allocation2 + $0xa28] ss:$16 sps:$4 sm:$0xff]  }
 0x236   :  { %5428 = vmatpush2.bf16.msra.mxu0 %v7966_v4  ;;  %v8046_v4 = vld [vmem:[#allocation2 + $0x80c] ss:$16 sps:$4 sm:$0xff]  }
 0x237   :  { %5471 = vmatpush2.bf16.msra.mxu1 %v7969_v53  ;;  %5429 = vmatprep.subr.bf16.mxu0 %v7974_v54  ;;  %v8049_v53 = vld [vmem:[#allocation2 + $0xa0c] ss:$16 sps:$4 sm:$0xff]   ;;  %v8044_v54 = vld [vmem:[#allocation2 + $0x808] ss:$16 sps:$4 sm:$0xff]  }
 0x238   :  { %5472 = vmatprep.subr.bf16.mxu1 %v7977_v5  ;;  %v8047_v5 = vld [vmem:[#allocation2 + $0xa08] ss:$16 sps:$4 sm:$0xff]  }
 0x23a   :  { %5430 = vmatpush2.bf16.msra.mxu0 %v7972_v6  ;;  %v8052_v6 = vld [vmem:[#allocation2 + $0x9ec] ss:$16 sps:$4 sm:$0xff]  }
 0x23b   :  { %5473 = vmatpush2.bf16.msra.mxu1 %v7975_v7  ;;  %5431 = vmatprep.subr.bf16.mxu0 %v7980_v10  ;;  %v8055_v7 = vld [vmem:[#allocation2 + $0xbec] ss:$16 sps:$4 sm:$0xff]   ;;  %v8050_v10 = vld [vmem:[#allocation2 + $0x9e8] ss:$16 sps:$4 sm:$0xff]  }
 0x23c   :  { %5474 = vmatprep.subr.bf16.mxu1 %v7983_v11  ;;  %v8053_v11 = vld [vmem:[#allocation2 + $0xbe8] ss:$16 sps:$4 sm:$0xff]  }
 0x23e   :  { %5432 = vmatpush2.bf16.msra.mxu0 %v7978_v14  ;;  %v8058_v14 = vld [vmem:[#allocation2 + $0x9cc] ss:$16 sps:$4 sm:$0xff]  }
 0x23f   :  { %5475 = vmatpush2.bf16.msra.mxu1 %v7981_v15  ;;  %5433 = vmatprep.subr.bf16.mxu0 %v7986_v16  ;;  %v8061_v15 = vld [vmem:[#allocation2 + $0xbcc] ss:$16 sps:$4 sm:$0xff]   ;;  %v8056_v16 = vld [vmem:[#allocation2 + $0x9c8] ss:$16 sps:$4 sm:$0xff]  }
 0x240   :  { %5476 = vmatprep.subr.bf16.mxu1 %v7989_v17  ;;  %v8059_v17 = vld [vmem:[#allocation2 + $0xbc8] ss:$16 sps:$4 sm:$0xff]  }
 0x242   :  { %5434 = vmatpush2.bf16.msra.mxu0 %v7984_v18  ;;  %v8064_v18 = vld [vmem:[#allocation2 + $0x9ac] ss:$16 sps:$4 sm:$0xff]  }
 0x243   :  { %5477 = vmatpush2.bf16.msra.mxu1 %v7987_v19  ;;  %5435 = vmatprep.subr.bf16.mxu0 %v7992_v20  ;;  %v8067_v19 = vld [vmem:[#allocation2 + $0xbac] ss:$16 sps:$4 sm:$0xff]   ;;  %v8062_v20 = vld [vmem:[#allocation2 + $0x9a8] ss:$16 sps:$4 sm:$0xff]  }
 0x244   :  { %5478 = vmatprep.subr.bf16.mxu1 %v7995_v21  ;;  %v8065_v21 = vld [vmem:[#allocation2 + $0xba8] ss:$16 sps:$4 sm:$0xff]  }
 0x246   :  { %5436 = vmatpush2.bf16.msra.mxu0 %v7990_v24  ;;  %v8070_v24 = vld [vmem:[#allocation2 + $0x98c] ss:$16 sps:$4 sm:$0xff]  }
 0x247   :  { %5479 = vmatpush2.bf16.msra.mxu1 %v7993_v12  ;;  %5437 = vmatprep.subr.bf16.mxu0 %v7998_v25  ;;  %v8073_v12 = vld [vmem:[#allocation2 + $0xb8c] ss:$16 sps:$4 sm:$0xff]   ;;  %v8068_v25 = vld [vmem:[#allocation2 + $0x988] ss:$16 sps:$4 sm:$0xff]  }
 0x248   :  { %5480 = vmatprep.subr.bf16.mxu1 %v8001_v13  ;;  %v8071_v13 = vld [vmem:[#allocation2 + $0xb88] ss:$16 sps:$4 sm:$0xff]  }
 0x24a   :  { %5438 = vmatpush2.bf16.msra.mxu0 %v7996_v26  ;;  %v8076_v26 = vld [vmem:[#allocation2 + $0x96c] ss:$16 sps:$4 sm:$0xff]  }
 0x24b   :  { %5481 = vmatpush2.bf16.msra.mxu1 %v7999_v27  ;;  %5493 = vmatprep.subr.bf16.mxu0 %v8004_v32  ;;  %v8079_v27 = vld [vmem:[#allocation2 + $0xb6c] ss:$16 sps:$4 sm:$0xff]   ;;  %v8074_v32 = vld [vmem:[#allocation2 + $0x968] ss:$16 sps:$4 sm:$0xff]  }
 0x24c   :  { %5536 = vmatprep.subr.bf16.mxu1 %v8007_v45  ;;  %v8077_v45 = vld [vmem:[#allocation2 + $0xb68] ss:$16 sps:$4 sm:$0xff]  }
 0x24d   :  { %5440 = vmatmul.mubr.bf16.vlgmr.msra.gmra.mxu0 %v8698_v28  ;;  %v8022_v28 = vld [vmem:[#allocation2 + $0x88c] ss:$16 sps:$4 sm:$0xff]  }
 0x24e   :  { %5483 = vmatmul.mubr.bf16.vlgmr.msra.gmra.mxu1 %v8700_v29  ;;  %5494 = vmatpush1.bf16.msra.mxu0 %v8002_v47  ;;  %v8025_v29 = vld [vmem:[#allocation2 + $0xa8c] ss:$16 sps:$4 sm:$0xff]  }
 0x24f   :  { %5537 = vmatpush1.bf16.msra.mxu1 %v8005_v33  ;;  %5495 = vmatprep.subr.bf16.mxu0 %v8010_v34  ;;  %v8082_v47 = vld [vmem:[#allocation2 + $0x94c] ss:$16 sps:$4 sm:$0xff]   ;;  %v8080_v34 = vld [vmem:[#allocation2 + $0x948] ss:$16 sps:$4 sm:$0xff]  }
 0x250   :  { %5538 = vmatprep.subr.bf16.mxu1 %v8013_v35  ;;  %5525 = vmatprep.mubr.bf16.mxu0 %v8710_v40  ;;  %v8026_v40 = vld [vmem:[#allocation2 + $0x868] ss:$16 sps:$4 sm:$0xff]   ;;  %v8085_v33 = vld [vmem:[#allocation2 + $0xb4c] ss:$16 sps:$4 sm:$0xff]  }
 0x251   :  { %5568 = vmatprep.mubr.bf16.mxu1 %v8718_v46  ;;  %v8029_v46 = vld [vmem:[#allocation2 + $0xa68] ss:$16 sps:$4 sm:$0xff]  }
 0x252   :  { %5496 = vmatpush1.bf16.msra.mxu0 %v8008_v36  ;;  %v8083_v35 = vld [vmem:[#allocation2 + $0xb48] ss:$16 sps:$4 sm:$0xff]   ;;  %v8088_v36 = vld [vmem:[#allocation2 + $0x92c] ss:$16 sps:$4 sm:$0xff]  }
 0x253   :  { %5539 = vmatpush1.bf16.msra.mxu1 %v8011_v37  ;;  %5497 = vmatprep.subr.bf16.mxu0 %v8016_v38  ;;  %v8091_v37 = vld [vmem:[#allocation2 + $0xb2c] ss:$16 sps:$4 sm:$0xff]   ;;  %v8086_v38 = vld [vmem:[#allocation2 + $0x928] ss:$16 sps:$4 sm:$0xff]  }
 0x254   :  { %5540 = vmatprep.subr.bf16.mxu1 %v8019_v39  ;;  %v8089_v39 = vld [vmem:[#allocation2 + $0xb28] ss:$16 sps:$4 sm:$0xff]  }
 0x256   :  { %5498 = vmatpush1.bf16.msra.mxu0 %v8014_v43  ;;  %v8094_v43 = vld [vmem:[#allocation2 + $0x90c] ss:$16 sps:$4 sm:$0xff]  }
 0x257   :  { %5541 = vmatpush1.bf16.msra.mxu1 %v8017_v44  ;;  %5499 = vmatprep.subr.bf16.mxu0 %v8022_v28  ;;  %v8097_v44 = vld [vmem:[#allocation2 + $0xb0c] ss:$16 sps:$4 sm:$0xff]   ;;  %v8092_v28 = vld [vmem:[#allocation2 + $0x908] ss:$16 sps:$4 sm:$0xff]  }
 0x258   :  { %5542 = vmatprep.subr.bf16.mxu1 %v8025_v29  ;;  %v8095_v29 = vld [vmem:[#allocation2 + $0xb08] ss:$16 sps:$4 sm:$0xff]  }
 0x25a   :  { %5500 = vmatpush1.bf16.msra.mxu0 %v8020_v48  ;;  %v8100_v48 = vld [vmem:[#allocation2 + $0xcec] ss:$16 sps:$4 sm:$0xff]  }
 0x25b   :  { %5543 = vmatpush1.bf16.msra.mxu1 %v8023_v49  ;;  %5501 = vmatprep.subr.bf16.mxu0 %v8028_v50  ;;  %v8103_v49 = vld [vmem:[#allocation2 + $0xeec] ss:$16 sps:$4 sm:$0xff]   ;;  %v8098_v50 = vld [vmem:[#allocation2 + $0xce8] ss:$16 sps:$4 sm:$0xff]  }
 0x25c   :  { %5544 = vmatprep.subr.bf16.mxu1 %v8031_v51  ;;  %v8101_v51 = vld [vmem:[#allocation2 + $0xee8] ss:$16 sps:$4 sm:$0xff]  }
 0x25e   :  { %5502 = vmatpush1.bf16.msra.mxu0 %v8026_v40  ;;  %v8106_v40 = vld [vmem:[#allocation2 + $0xccc] ss:$16 sps:$4 sm:$0xff]  }
 0x25f   :  { %5545 = vmatpush1.bf16.msra.mxu1 %v8029_v46  ;;  %5503 = vmatprep.subr.bf16.mxu0 %v8034_v52  ;;  %v8109_v46 = vld [vmem:[#allocation2 + $0xecc] ss:$16 sps:$4 sm:$0xff]   ;;  %v8104_v52 = vld [vmem:[#allocation2 + $0xcc8] ss:$16 sps:$4 sm:$0xff]  }
 0x260   :  { %5546 = vmatprep.subr.bf16.mxu1 %v8037_v55  ;;  %v8107_v55 = vld [vmem:[#allocation2 + $0xec8] ss:$16 sps:$4 sm:$0xff]  }
 0x262   :  { %5504 = vmatpush1.bf16.msra.mxu0 %v8032_v56  ;;  %v8112_v56 = vld [vmem:[#allocation2 + $0xcac] ss:$16 sps:$4 sm:$0xff]  }
 0x263   :  { %5547 = vmatpush1.bf16.msra.mxu1 %v8035_v57  ;;  %5505 = vmatprep.subr.bf16.mxu0 %v8040_v60  ;;  %v8115_v57 = vld [vmem:[#allocation2 + $0xeac] ss:$16 sps:$4 sm:$0xff]   ;;  %v8110_v60 = vld [vmem:[#allocation2 + $0xca8] ss:$16 sps:$4 sm:$0xff]  }
 0x264   :  { %5548 = vmatprep.subr.bf16.mxu1 %v8043_v61  ;;  %v8113_v61 = vld [vmem:[#allocation2 + $0xea8] ss:$16 sps:$4 sm:$0xff]  }
 0x266   :  { %5506 = vmatpush1.bf16.msra.mxu0 %v8038_v62  ;;  %v8116_v62 = vld [vmem:[#allocation2 + $0xc88] ss:$16 sps:$4 sm:$0xff]  }
 0x267   :  { %5549 = vmatpush1.bf16.msra.mxu1 %v8041_v63  ;;  %5507 = vmatprep.subr.bf16.mxu0 %v8046_v4  ;;  %v8119_v63 = vld [vmem:[#allocation2 + $0xe88] ss:$16 sps:$4 sm:$0xff]   ;;  %v8124_v4 = vld [vmem:[#allocation2 + $0xc6c] ss:$16 sps:$4 sm:$0xff]  }
 0x268   :  { %5550 = vmatprep.subr.bf16.mxu1 %v8049_v53  ;;  %v8127_v53 = vld [vmem:[#allocation2 + $0xe6c] ss:$16 sps:$4 sm:$0xff]  }
 0x26a   :  { %5508 = vmatpush1.bf16.msra.mxu0 %v8044_v54  ;;  %v8130_v54 = vld [vmem:[#allocation2 + $0xc4c] ss:$16 sps:$4 sm:$0xff]  }
 0x26b   :  { %5551 = vmatpush1.bf16.msra.mxu1 %v8047_v5  ;;  %5509 = vmatprep.subr.bf16.mxu0 %v8052_v6  ;;  %v8133_v5 = vld [vmem:[#allocation2 + $0xe4c] ss:$16 sps:$4 sm:$0xff]   ;;  %v8128_v6 = vld [vmem:[#allocation2 + $0xc48] ss:$16 sps:$4 sm:$0xff]  }
 0x26c   :  { %5552 = vmatprep.subr.bf16.mxu1 %v8055_v7  ;;  %v8131_v7 = vld [vmem:[#allocation2 + $0xe48] ss:$16 sps:$4 sm:$0xff]  }
 0x26e   :  { %5510 = vmatpush2.bf16.msra.mxu0 %v8050_v10  ;;  %v8136_v10 = vld [vmem:[#allocation2 + $0xc2c] ss:$16 sps:$4 sm:$0xff]  }
 0x26f   :  { %5553 = vmatpush2.bf16.msra.mxu1 %v8053_v11  ;;  %5511 = vmatprep.subr.bf16.mxu0 %v8058_v14  ;;  %v8139_v11 = vld [vmem:[#allocation2 + $0xe2c] ss:$16 sps:$4 sm:$0xff]   ;;  %v8134_v14 = vld [vmem:[#allocation2 + $0xc28] ss:$16 sps:$4 sm:$0xff]  }
 0x270   :  { %5554 = vmatprep.subr.bf16.mxu1 %v8061_v15  ;;  %v8137_v15 = vld [vmem:[#allocation2 + $0xe28] ss:$16 sps:$4 sm:$0xff]  }
 0x272   :  { %5512 = vmatpush2.bf16.msra.mxu0 %v8056_v16  ;;  %v8142_v16 = vld [vmem:[#allocation2 + $0xc0c] ss:$16 sps:$4 sm:$0xff]  }
 0x273   :  { %5555 = vmatpush2.bf16.msra.mxu1 %v8059_v17  ;;  %5513 = vmatprep.subr.bf16.mxu0 %v8064_v18  ;;  %v8145_v17 = vld [vmem:[#allocation2 + $0xe0c] ss:$16 sps:$4 sm:$0xff]   ;;  %v8140_v18 = vld [vmem:[#allocation2 + $0xc08] ss:$16 sps:$4 sm:$0xff]  }
 0x274   :  { %5556 = vmatprep.subr.bf16.mxu1 %v8067_v19  ;;  %v8143_v19 = vld [vmem:[#allocation2 + $0xe08] ss:$16 sps:$4 sm:$0xff]  }
 0x276   :  { %5514 = vmatpush2.bf16.msra.mxu0 %v8062_v20  ;;  %v8148_v20 = vld [vmem:[#allocation2 + $0xdec] ss:$16 sps:$4 sm:$0xff]  }
 0x277   :  { %5557 = vmatpush2.bf16.msra.mxu1 %v8065_v21  ;;  %5515 = vmatprep.subr.bf16.mxu0 %v8070_v24  ;;  %v8151_v21 = vld [vmem:[#allocation2 + $0xfec] ss:$16 sps:$4 sm:$0xff]   ;;  %v8146_v24 = vld [vmem:[#allocation2 + $0xde8] ss:$16 sps:$4 sm:$0xff]  }
 0x278   :  { %5558 = vmatprep.subr.bf16.mxu1 %v8073_v12  ;;  %v8149_v12 = vld [vmem:[#allocation2 + $0xfe8] ss:$16 sps:$4 sm:$0xff]  }
 0x27a   :  { %5516 = vmatpush2.bf16.msra.mxu0 %v8068_v25  ;;  %v8154_v25 = vld [vmem:[#allocation2 + $0xdcc] ss:$16 sps:$4 sm:$0xff]  }
 0x27b   :  { %5559 = vmatpush2.bf16.msra.mxu1 %v8071_v13  ;;  %5517 = vmatprep.subr.bf16.mxu0 %v8076_v26  ;;  %v8157_v13 = vld [vmem:[#allocation2 + $0xfcc] ss:$16 sps:$4 sm:$0xff]   ;;  %v8152_v26 = vld [vmem:[#allocation2 + $0xdc8] ss:$16 sps:$4 sm:$0xff]  }
 0x27c   :  { %5560 = vmatprep.subr.bf16.mxu1 %v8079_v27  ;;  %v8155_v27 = vld [vmem:[#allocation2 + $0xfc8] ss:$16 sps:$4 sm:$0xff]  }
 0x27e   :  { %5518 = vmatpush2.bf16.msra.mxu0 %v8074_v32  ;;  %v8160_v32 = vld [vmem:[#allocation2 + $0xdac] ss:$16 sps:$4 sm:$0xff]  }
 0x27f   :  { %5561 = vmatpush2.bf16.msra.mxu1 %v8077_v45  ;;  %5519 = vmatprep.subr.bf16.mxu0 %v8082_v47  ;;  %v8163_v45 = vld [vmem:[#allocation2 + $0xfac] ss:$16 sps:$4 sm:$0xff]   ;;  %v8158_v47 = vld [vmem:[#allocation2 + $0xda8] ss:$16 sps:$4 sm:$0xff]  }
 0x280   :  { %5562 = vmatprep.subr.bf16.mxu1 %v8085_v33  ;;  %v8161_v33 = vld [vmem:[#allocation2 + $0xfa8] ss:$16 sps:$4 sm:$0xff]  }
 0x282   :  { %5520 = vmatpush2.bf16.msra.mxu0 %v8080_v34  ;;  %v8166_v34 = vld [vmem:[#allocation2 + $0xd8c] ss:$16 sps:$4 sm:$0xff]  }
 0x283   :  { %5563 = vmatpush2.bf16.msra.mxu1 %v8083_v35  ;;  %5521 = vmatprep.subr.bf16.mxu0 %v8088_v36  ;;  %v8169_v35 = vld [vmem:[#allocation2 + $0xf8c] ss:$16 sps:$4 sm:$0xff]   ;;  %v8164_v36 = vld [vmem:[#allocation2 + $0xd88] ss:$16 sps:$4 sm:$0xff]  }
 0x284   :  { %5564 = vmatprep.subr.bf16.mxu1 %v8091_v37  ;;  %v8167_v37 = vld [vmem:[#allocation2 + $0xf88] ss:$16 sps:$4 sm:$0xff]  }
 0x286   :  { %5522 = vmatpush2.bf16.msra.mxu0 %v8086_v38  ;;  %v8172_v38 = vld [vmem:[#allocation2 + $0xd6c] ss:$16 sps:$4 sm:$0xff]  }
 0x287   :  { %5565 = vmatpush2.bf16.msra.mxu1 %v8089_v39  ;;  %5523 = vmatprep.subr.bf16.mxu0 %v8094_v43  ;;  %v8175_v39 = vld [vmem:[#allocation2 + $0xf6c] ss:$16 sps:$4 sm:$0xff]   ;;  %v8170_v43 = vld [vmem:[#allocation2 + $0xd68] ss:$16 sps:$4 sm:$0xff]  }
 0x288   :  { %5566 = vmatprep.subr.bf16.mxu1 %v8097_v44  ;;  %v8173_v44 = vld [vmem:[#allocation2 + $0xf68] ss:$16 sps:$4 sm:$0xff]  }
 0x28a   :  { %5524 = vmatpush2.bf16.msra.mxu0 %v8092_v28  ;;  %v8178_v28 = vld [vmem:[#allocation2 + $0xd4c] ss:$16 sps:$4 sm:$0xff]  }
 0x28b   :  { %5567 = vmatpush2.bf16.msra.mxu1 %v8095_v29  ;;  %5579 = vmatprep.subr.bf16.mxu0 %v8100_v48  ;;  %v8181_v29 = vld [vmem:[#allocation2 + $0xf4c] ss:$16 sps:$4 sm:$0xff]   ;;  %v8176_v48 = vld [vmem:[#allocation2 + $0xd48] ss:$16 sps:$4 sm:$0xff]  }
 0x28c   :  { %5622 = vmatprep.subr.bf16.mxu1 %v8103_v49  ;;  %v8179_v49 = vld [vmem:[#allocation2 + $0xf48] ss:$16 sps:$4 sm:$0xff]  }
 0x28d   :  { %5526 = vmatmul.mubr.bf16.vlgmr.msra.gmra.mxu0 %v8743_v58  ;;  %v8118_v58 = vld [vmem:[#allocation2 + $0xc8c] ss:$16 sps:$4 sm:$0xff]  }
 0x28e   :  { %5569 = vmatmul.mubr.bf16.vlgmr.msra.gmra.mxu1 %v8745_v59  ;;  %5580 = vmatpush1.bf16.msra.mxu0 %v8098_v50  ;;  %v8121_v59 = vld [vmem:[#allocation2 + $0xe8c] ss:$16 sps:$4 sm:$0xff]  }
 0x28f   :  { %5623 = vmatpush1.bf16.msra.mxu1 %v8101_v51  ;;  %5581 = vmatprep.subr.bf16.mxu0 %v8106_v40  ;;  %v8184_v50 = vld [vmem:[#allocation2 + $0xd2c] ss:$16 sps:$4 sm:$0xff]   ;;  %v8182_v40 = vld [vmem:[#allocation2 + $0xd28] ss:$16 sps:$4 sm:$0xff]  }
 0x290   :  { %5624 = vmatprep.subr.bf16.mxu1 %v8109_v46  ;;  %5611 = vmatprep.mubr.bf16.mxu0 %v8750_v0  ;;  %v8122_v0 = vld [vmem:[#allocation2 + $0xc68] ss:$16 sps:$4 sm:$0xff]   ;;  %v8187_v51 = vld [vmem:[#allocation2 + $0xf2c] ss:$16 sps:$4 sm:$0xff]  }
 0x291   :  { %5654 = vmatprep.mubr.bf16.mxu1 %v8752_v1  ;;  %v8125_v1 = vld [vmem:[#allocation2 + $0xe68] ss:$16 sps:$4 sm:$0xff]  }
 0x292   :  { %5582 = vmatpush1.bf16.msra.mxu0 %v8104_v52  ;;  %v8185_v46 = vld [vmem:[#allocation2 + $0xf28] ss:$16 sps:$4 sm:$0xff]   ;;  %v8190_v52 = vld [vmem:[#allocation2 + $0xd0c] ss:$16 sps:$4 sm:$0xff]  }
 0x293   :  { %5625 = vmatpush1.bf16.msra.mxu1 %v8107_v55  ;;  %5583 = vmatprep.subr.bf16.mxu0 %v8112_v56  ;;  %v8193_v55 = vld [vmem:[#allocation2 + $0xf0c] ss:$16 sps:$4 sm:$0xff]   ;;  %v8188_v56 = vld [vmem:[#allocation2 + $0xd08] ss:$16 sps:$4 sm:$0xff]  }
 0x294   :  { %5626 = vmatprep.subr.bf16.mxu1 %v8115_v57  ;;  %v8191_v57 = vld [vmem:[#allocation2 + $0xf08] ss:$16 sps:$4 sm:$0xff]  }
 0x296   :  { %5584 = vmatpush1.bf16.msra.mxu0 %v8110_v60  ;;  %v8196_v60 = vld [vmem:[#allocation2 + $0x10ec] ss:$16 sps:$4 sm:$0xff]  }
 0x297   :  { %5627 = vmatpush1.bf16.msra.mxu1 %v8113_v61  ;;  %5585 = vmatprep.subr.bf16.mxu0 %v8118_v58  ;;  %v8199_v61 = vld [vmem:[#allocation2 + $0x12ec] ss:$16 sps:$4 sm:$0xff]   ;;  %v8194_v58 = vld [vmem:[#allocation2 + $0x10e8] ss:$16 sps:$4 sm:$0xff]  }
 0x298   :  { %5628 = vmatprep.subr.bf16.mxu1 %v8121_v59  ;;  %v8197_v59 = vld [vmem:[#allocation2 + $0x12e8] ss:$16 sps:$4 sm:$0xff]  }
 0x29a   :  { %5586 = vmatpush1.bf16.msra.mxu0 %v8116_v62  ;;  %v8202_v62 = vld [vmem:[#allocation2 + $0x10cc] ss:$16 sps:$4 sm:$0xff]  }
 0x29b   :  { %5629 = vmatpush1.bf16.msra.mxu1 %v8119_v63  ;;  %5587 = vmatprep.subr.bf16.mxu0 %v8124_v4  ;;  %v8205_v63 = vld [vmem:[#allocation2 + $0x12cc] ss:$16 sps:$4 sm:$0xff]   ;;  %v8200_v4 = vld [vmem:[#allocation2 + $0x10c8] ss:$16 sps:$4 sm:$0xff]  }
 0x29c   :  { %5630 = vmatprep.subr.bf16.mxu1 %v8127_v53  ;;  %v8203_v53 = vld [vmem:[#allocation2 + $0x12c8] ss:$16 sps:$4 sm:$0xff]  }
 0x29e   :  { %5588 = vmatpush1.bf16.msra.mxu0 %v8122_v0  ;;  %v8208_v0 = vld [vmem:[#allocation2 + $0x10ac] ss:$16 sps:$4 sm:$0xff]  }
 0x29f   :  { %5631 = vmatpush1.bf16.msra.mxu1 %v8125_v1  ;;  %5589 = vmatprep.subr.bf16.mxu0 %v8130_v54  ;;  %v8211_v1 = vld [vmem:[#allocation2 + $0x12ac] ss:$16 sps:$4 sm:$0xff]   ;;  %v8206_v54 = vld [vmem:[#allocation2 + $0x10a8] ss:$16 sps:$4 sm:$0xff]  }
 0x2a0   :  { %5632 = vmatprep.subr.bf16.mxu1 %v8133_v5  ;;  %v8209_v5 = vld [vmem:[#allocation2 + $0x12a8] ss:$16 sps:$4 sm:$0xff]  }
 0x2a2   :  { %5590 = vmatpush1.bf16.msra.mxu0 %v8128_v6  ;;  %v8212_v6 = vld [vmem:[#allocation2 + $0x1088] ss:$16 sps:$4 sm:$0xff]  }
 0x2a3   :  { %5633 = vmatpush1.bf16.msra.mxu1 %v8131_v7  ;;  %5591 = vmatprep.subr.bf16.mxu0 %v8136_v10  ;;  %v8215_v7 = vld [vmem:[#allocation2 + $0x1288] ss:$16 sps:$4 sm:$0xff]   ;;  %v8220_v10 = vld [vmem:[#allocation2 + $0x106c] ss:$16 sps:$4 sm:$0xff]  }
 0x2a4   :  { %5634 = vmatprep.subr.bf16.mxu1 %v8139_v11  ;;  %v8223_v11 = vld [vmem:[#allocation2 + $0x126c] ss:$16 sps:$4 sm:$0xff]  }
 0x2a6   :  { %5592 = vmatpush1.bf16.msra.mxu0 %v8134_v14  ;;  %v8226_v14 = vld [vmem:[#allocation2 + $0x104c] ss:$16 sps:$4 sm:$0xff]  }
 0x2a7   :  { %5635 = vmatpush1.bf16.msra.mxu1 %v8137_v15  ;;  %5593 = vmatprep.subr.bf16.mxu0 %v8142_v16  ;;  %v8229_v15 = vld [vmem:[#allocation2 + $0x124c] ss:$16 sps:$4 sm:$0xff]   ;;  %v8224_v16 = vld [vmem:[#allocation2 + $0x1048] ss:$16 sps:$4 sm:$0xff]  }
 0x2a8   :  { %5636 = vmatprep.subr.bf16.mxu1 %v8145_v17  ;;  %v8227_v17 = vld [vmem:[#allocation2 + $0x1248] ss:$16 sps:$4 sm:$0xff]  }
 0x2aa   :  { %5594 = vmatpush1.bf16.msra.mxu0 %v8140_v18  ;;  %v8232_v18 = vld [vmem:[#allocation2 + $0x102c] ss:$16 sps:$4 sm:$0xff]  }
 0x2ab   :  { %5637 = vmatpush1.bf16.msra.mxu1 %v8143_v19  ;;  %5595 = vmatprep.subr.bf16.mxu0 %v8148_v20  ;;  %v8235_v19 = vld [vmem:[#allocation2 + $0x122c] ss:$16 sps:$4 sm:$0xff]   ;;  %v8230_v20 = vld [vmem:[#allocation2 + $0x1028] ss:$16 sps:$4 sm:$0xff]  }
 0x2ac   :  { %5638 = vmatprep.subr.bf16.mxu1 %v8151_v21  ;;  %v8233_v21 = vld [vmem:[#allocation2 + $0x1228] ss:$16 sps:$4 sm:$0xff]  }
 0x2ae   :  { %5596 = vmatpush2.bf16.msra.mxu0 %v8146_v24  ;;  %v8238_v24 = vld [vmem:[#allocation2 + $0x100c] ss:$16 sps:$4 sm:$0xff]  }
 0x2af   :  { %5639 = vmatpush2.bf16.msra.mxu1 %v8149_v12  ;;  %5597 = vmatprep.subr.bf16.mxu0 %v8154_v25  ;;  %v8241_v12 = vld [vmem:[#allocation2 + $0x120c] ss:$16 sps:$4 sm:$0xff]   ;;  %v8236_v25 = vld [vmem:[#allocation2 + $0x1008] ss:$16 sps:$4 sm:$0xff]  }
 0x2b0   :  { %5640 = vmatprep.subr.bf16.mxu1 %v8157_v13  ;;  %v8239_v13 = vld [vmem:[#allocation2 + $0x1208] ss:$16 sps:$4 sm:$0xff]  }
 0x2b2   :  { %5598 = vmatpush2.bf16.msra.mxu0 %v8152_v26  ;;  %v8244_v26 = vld [vmem:[#allocation2 + $0x11ec] ss:$16 sps:$4 sm:$0xff]  }
 0x2b3   :  { %5641 = vmatpush2.bf16.msra.mxu1 %v8155_v27  ;;  %5599 = vmatprep.subr.bf16.mxu0 %v8160_v32  ;;  %v8247_v27 = vld [vmem:[#allocation2 + $0x13ec] ss:$16 sps:$4 sm:$0xff]   ;;  %v8242_v32 = vld [vmem:[#allocation2 + $0x11e8] ss:$16 sps:$4 sm:$0xff]  }
 0x2b4   :  { %5642 = vmatprep.subr.bf16.mxu1 %v8163_v45  ;;  %v8245_v45 = vld [vmem:[#allocation2 + $0x13e8] ss:$16 sps:$4 sm:$0xff]  }
 0x2b6   :  { %5600 = vmatpush2.bf16.msra.mxu0 %v8158_v47  ;;  %v8866_v47 = vpop.f32.mrf.mxu0 }
 0x2b7   :  { %5643 = vmatpush2.bf16.msra.mxu1 %v8161_v33  ;;  %5601 = vmatprep.subr.bf16.mxu0 %v8166_v34  ;;  %v8250_v33 = vld [vmem:[#allocation2 + $0x11cc] ss:$16 sps:$4 sm:$0xff]  }
 0x2b8   :  { %5644 = vmatprep.subr.bf16.mxu1 %v8169_v35  ;;  %v8253_v34 = vld [vmem:[#allocation2 + $0x13cc] ss:$16 sps:$4 sm:$0xff]   ;;  %v8248_v35 = vld [vmem:[#allocation2 + $0x11c8] ss:$16 sps:$4 sm:$0xff]  }
 0x2ba   :  { %5602 = vmatpush2.bf16.msra.mxu0 %v8164_v36  ;;  %v8251_v36 = vld [vmem:[#allocation2 + $0x13c8] ss:$16 sps:$4 sm:$0xff]  }
 0x2bb   :  { %5645 = vmatpush2.bf16.msra.mxu1 %v8167_v37  ;;  %5603 = vmatprep.subr.bf16.mxu0 %v8172_v38  ;;  %v8868_v37 = vpop.f32.mrf.mxu0  ;;  %v8256_v38 = vld [vmem:[#allocation2 + $0x11ac] ss:$16 sps:$4 sm:$0xff]  }
 0x2bc   :  { %5646 = vmatprep.subr.bf16.mxu1 %v8175_v39  ;;  %v8259_v39 = vld [vmem:[#allocation2 + $0x13ac] ss:$16 sps:$4 sm:$0xff]  }
 0x2be   :  { %5604 = vmatpush2.bf16.msra.mxu0 %v8170_v43  ;;  %v8870_v43 = vpop.f32.mrf.mxu1 }
 0x2bf   :  { %5647 = vmatpush2.bf16.msra.mxu1 %v8173_v44  ;;  %5605 = vmatprep.subr.bf16.mxu0 %v8178_v28  ;;  %v8254_v44 = vld [vmem:[#allocation2 + $0x11a8] ss:$16 sps:$4 sm:$0xff]  }
 0x2c0   :  { %5648 = vmatprep.subr.bf16.mxu1 %v8181_v29  ;;  %v8257_v28 = vld [vmem:[#allocation2 + $0x13a8] ss:$16 sps:$4 sm:$0xff]   ;;  %v8872_v29 = vpop.f32.mrf.mxu0 }
 0x2c2   :  { %5606 = vmatpush2.bf16.msra.mxu0 %v8176_v48  ;;  %v8262_v48 = vld [vmem:[#allocation2 + $0x118c] ss:$16 sps:$4 sm:$0xff]  }
 0x2c3   :  { %5649 = vmatpush2.bf16.msra.mxu1 %v8179_v49  ;;  %5607 = vmatprep.subr.bf16.mxu0 %v8184_v50  ;;  %v8265_v49 = vld [vmem:[#allocation2 + $0x138c] ss:$16 sps:$4 sm:$0xff]   ;;  %v8874_v50 = vpop.f32.mrf.mxu1 }
 0x2c4   :  { %5650 = vmatprep.subr.bf16.mxu1 %v8187_v51  ;;  %v8260_v51 = vld [vmem:[#allocation2 + $0x1188] ss:$16 sps:$4 sm:$0xff]  }
 0x2c6   :  { %5608 = vmatpush2.bf16.msra.mxu0 %v8182_v40  ;;  %v8263_v40 = vld [vmem:[#allocation2 + $0x1388] ss:$16 sps:$4 sm:$0xff]  }
 0x2c7   :  { %5651 = vmatpush2.bf16.msra.mxu1 %v8185_v46  ;;  %5609 = vmatprep.subr.bf16.mxu0 %v8190_v52  ;;  %v8876_v46 = vpop.f32.mrf.mxu0  ;;  %v8268_v52 = vld [vmem:[#allocation2 + $0x116c] ss:$16 sps:$4 sm:$0xff]  }
 0x2c8   :  { %5652 = vmatprep.subr.bf16.mxu1 %v8193_v55  ;;  %v8271_v55 = vld [vmem:[#allocation2 + $0x136c] ss:$16 sps:$4 sm:$0xff]  }
 0x2ca   :  { %5610 = vmatpush2.bf16.msra.mxu0 %v8188_v56  ;;  %v8878_v56 = vpop.f32.mrf.mxu1 }
 0x2cb   :  { %5653 = vmatpush2.bf16.msra.mxu1 %v8191_v57  ;;  %5665 = vmatprep.subr.bf16.mxu0 %v8196_v60  ;;  %v8880_v57 = vpop.f32.mrf.mxu0  ;;  %v8266_v60 = vld [vmem:[#allocation2 + $0x1168] ss:$16 sps:$4 sm:$0xff]  }
 0x2cc   :  { %5708 = vmatprep.subr.bf16.mxu1 %v8199_v61  ;;  %v8269_v61 = vld [vmem:[#allocation2 + $0x1368] ss:$16 sps:$4 sm:$0xff]  }
 0x2cd   :  { %5612 = vmatmul.mubr.bf16.vlgmr.msra.gmra.mxu0 %v8779_v22  ;;  %v8214_v22 = vld [vmem:[#allocation2 + $0x108c] ss:$16 sps:$4 sm:$0xff]  }
 0x2ce   :  { %5655 = vmatmul.mubr.bf16.vlgmr.msra.gmra.mxu1 %v8781_v23  ;;  %5666 = vmatpush1.bf16.msra.mxu0 %v8194_v58  ;;  %v8217_v23 = vld [vmem:[#allocation2 + $0x128c] ss:$16 sps:$4 sm:$0xff]  }
 0x2cf   :  { %5709 = vmatpush1.bf16.msra.mxu1 %v8197_v59  ;;  %5667 = vmatprep.subr.bf16.mxu0 %v8202_v62  ;;  %v8274_v58 = vld [vmem:[#allocation2 + $0x114c] ss:$16 sps:$4 sm:$0xff]   ;;  %v8882_v62 = vpop.f32.mrf.mxu1 }
 0x2d0   :  { %5710 = vmatprep.subr.bf16.mxu1 %v8205_v63  ;;  %5697 = vmatprep.mubr.bf16.mxu0 %v8786_v30  ;;  %v8218_v30 = vld [vmem:[#allocation2 + $0x1068] ss:$16 sps:$4 sm:$0xff]   ;;  %v8277_v59 = vld [vmem:[#allocation2 + $0x134c] ss:$16 sps:$4 sm:$0xff]   ;;  %v8884_v63 = vpop.f32.mrf.mxu0 }
 0x2d1   :  { %5740 = vmatprep.mubr.bf16.mxu1 %v8788_v31  ;;  %v8221_v31 = vld [vmem:[#allocation2 + $0x1268] ss:$16 sps:$4 sm:$0xff]  }
 0x2d2   :  { %5668 = vmatpush1.bf16.msra.mxu0 %v8200_v4  ;;  %v8272_v4 = vld [vmem:[#allocation2 + $0x1148] ss:$16 sps:$4 sm:$0xff]  }
 0x2d3   :  { %5711 = vmatpush1.bf16.msra.mxu1 %v8203_v53  ;;  %5669 = vmatprep.subr.bf16.mxu0 %v8208_v0  ;;  %v8275_v53 = vld [vmem:[#allocation2 + $0x1348] ss:$16 sps:$4 sm:$0xff]   ;;  %v8886_v0 = vpop.f32.mrf.mxu1 }
 0x2d4   :  { %5712 = vmatprep.subr.bf16.mxu1 %v8211_v1  ;;  %v8280_v1 = vld [vmem:[#allocation2 + $0x112c] ss:$16 sps:$4 sm:$0xff]  }
 0x2d6   :  { %5670 = vmatpush1.bf16.msra.mxu0 %v8206_v54  ;;  %v8283_v54 = vld [vmem:[#allocation2 + $0x132c] ss:$16 sps:$4 sm:$0xff]  }
 0x2d7   :  { %5713 = vmatpush1.bf16.msra.mxu1 %v8209_v5  ;;  %5671 = vmatprep.subr.bf16.mxu0 %v8214_v22  ;;  %v8888_v5 = vpop.f32.mrf.mxu0  ;;  %v8278_v22 = vld [vmem:[#allocation2 + $0x1128] ss:$16 sps:$4 sm:$0xff]  }
 0x2d8   :  { %5714 = vmatprep.subr.bf16.mxu1 %v8217_v23  ;;  %v8281_v23 = vld [vmem:[#allocation2 + $0x1328] ss:$16 sps:$4 sm:$0xff]  }
 0x2da   :  { %5672 = vmatpush1.bf16.msra.mxu0 %v8212_v6  ;;  %v8890_v6 = vpop.f32.mrf.mxu1 }
 0x2db   :  { %5715 = vmatpush1.bf16.msra.mxu1 %v8215_v7  ;;  %5673 = vmatprep.subr.bf16.mxu0 %v8220_v10  ;;  %v8286_v7 = vld [vmem:[#allocation2 + $0x110c] ss:$16 sps:$4 sm:$0xff]  }
 0x2dc   :  { %5716 = vmatprep.subr.bf16.mxu1 %v8223_v11  ;;  %v8289_v10 = vld [vmem:[#allocation2 + $0x130c] ss:$16 sps:$4 sm:$0xff]   ;;  %v8892_v11 = vpop.f32.mrf.mxu0 }
 0x2de   :  { %5674 = vmatpush1.bf16.msra.mxu0 %v8218_v30  ;;  %v8284_v30 = vld [vmem:[#allocation2 + $0x1108] ss:$16 sps:$4 sm:$0xff]  }
 0x2df   :  { %5717 = vmatpush1.bf16.msra.mxu1 %v8221_v31  ;;  %5675 = vmatprep.subr.bf16.mxu0 %v8226_v14  ;;  %v8287_v31 = vld [vmem:[#allocation2 + $0x1308] ss:$16 sps:$4 sm:$0xff]   ;;  %v8894_v14 = vpop.f32.mrf.mxu1 }
 0x2e0   :  { %5718 = vmatprep.subr.bf16.mxu1 %v8229_v15  ;;  %v8896_v15 = vpop.f32.mrf.mxu0 }
 0x2e2   :  { %5676 = vmatpush1.bf16.msra.mxu0 %v8224_v16  ;;  %v8292_v16 = vld [vmem:[#allocation2 + $0x14ec] ss:$16 sps:$4 sm:$0xff]  }
 0x2e3   :  { %5719 = vmatpush1.bf16.msra.mxu1 %v8227_v17  ;;  %5677 = vmatprep.subr.bf16.mxu0 %v8232_v18  ;;  %v8295_v17 = vld [vmem:[#allocation2 + $0x16ec] ss:$16 sps:$4 sm:$0xff]   ;;  %v8290_v18 = vld [vmem:[#allocation2 + $0x14e8] ss:$16 sps:$4 sm:$0xff]  }
 0x2e4   :  { %5720 = vmatprep.subr.bf16.mxu1 %v8235_v19  ;;  %v8293_v19 = vld [vmem:[#allocation2 + $0x16e8] ss:$16 sps:$4 sm:$0xff]  }
 0x2e6   :  { %5678 = vmatpush1.bf16.msra.mxu0 %v8230_v20  ;;  %v8898_v20 = vpop.f32.mrf.mxu1 }
 0x2e7   :  { %5721 = vmatpush1.bf16.msra.mxu1 %v8233_v21  ;;  %5679 = vmatprep.subr.bf16.mxu0 %v8238_v24  ;;  %v8900_v21 = vpop.f32.mrf.mxu0  ;;  %v8298_v24 = vld [vmem:[#allocation2 + $0x14cc] ss:$16 sps:$4 sm:$0xff]  }
 0x2e8   :  { %5722 = vmatprep.subr.bf16.mxu1 %v8241_v12  ;;  %v8301_v12 = vld [vmem:[#allocation2 + $0x16cc] ss:$16 sps:$4 sm:$0xff]  }
 0x2ea   :  { %5680 = vmatpush1.bf16.msra.mxu0 %v8236_v25  ;;  %v8902_v25 = vpop.f32.mrf.mxu1 }
 0x2eb   :  { %5723 = vmatpush1.bf16.msra.mxu1 %v8239_v13  ;;  %5681 = vmatprep.subr.bf16.mxu0 %v8244_v26  ;;  %v8296_v13 = vld [vmem:[#allocation2 + $0x14c8] ss:$16 sps:$4 sm:$0xff]  }
 0x2ec   :  { %5724 = vmatprep.subr.bf16.mxu1 %v8247_v27  ;;  %v8299_v26 = vld [vmem:[#allocation2 + $0x16c8] ss:$16 sps:$4 sm:$0xff]   ;;  %v8906_v27 = vpop.f32.mrf.mxu0 }
 0x2ee   :  { %5682 = vmatpush2.bf16.msra.mxu0 %v8242_v32  ;;  %v8304_v32 = vld [vmem:[#allocation2 + $0x14ac] ss:$16 sps:$4 sm:$0xff]  }
 0x2ef   :  { %5725 = vmatpush2.bf16.msra.mxu1 %v8245_v45  ;;  %5683 = vmatprep.subr.bf16.mxu0 %v8250_v33  ;;  %v8307_v45 = vld [vmem:[#allocation2 + $0x16ac] ss:$16 sps:$4 sm:$0xff]   ;;  %v8910_v33 = vpop.f32.mrf.mxu1 }
 0x2f0   :  { %5726 = vmatprep.subr.bf16.mxu1 %v8253_v34  ;;  %v8912_v34 = vpop.f32.mrf.mxu0 }
 0x2f2   :  { %5684 = vmatpush2.bf16.msra.mxu0 %v8248_v35  ;;  %v8310_v35 = vld [vmem:[#allocation2 + $0x148c] ss:$16 sps:$4 sm:$0xff]  }
 0x2f3   :  { %5727 = vmatpush2.bf16.msra.mxu1 %v8251_v36  ;;  %5685 = vmatprep.subr.bf16.mxu0 %v8256_v38  ;;  %v8313_v36 = vld [vmem:[#allocation2 + $0x168c] ss:$16 sps:$4 sm:$0xff]   ;;  %v945_v38 = vlaneseq }
 0x2f4   :  { %5728 = vmatprep.subr.bf16.mxu1 %v8259_v39  ;;  %v8914_v39 = vpop.f32.mrf.mxu1 }
 0x2f6   :  { %5686 = vmatpush2.bf16.msra.mxu0 %v8254_v44  ;;  %v8916_v44 = vpop.f32.mrf.mxu0 }
 0x2f7   :  { %5729 = vmatpush2.bf16.msra.mxu1 %v8257_v28  ;;  %5687 = vmatprep.subr.bf16.mxu0 %v8262_v48  ;;  %v8316_v28 = vld [vmem:[#allocation2 + $0x146c] ss:$16 sps:$4 sm:$0xff]  }
 0x2f8   :  { %5730 = vmatprep.subr.bf16.mxu1 %v8265_v49  ;;  %v8319_v48 = vld [vmem:[#allocation2 + $0x166c] ss:$16 sps:$4 sm:$0xff]   ;;  %v8918_v49 = vshrl.u32 %v945_v38, 7 }
 0x2fa   :  { %5688 = vmatpush2.bf16.msra.mxu0 %v8260_v51  ;;  %v8920_v51 = vpop.f32.mrf.mxu1 }
 0x2fb   :  { %5731 = vmatpush2.bf16.msra.mxu1 %v8263_v40  ;;  %5689 = vmatprep.subr.bf16.mxu0 %v8268_v52  ;;  %v8922_v40 = vpop.f32.mrf.mxu0  ;;  %v8314_v52 = vld [vmem:[#allocation2 + $0x1468] ss:$16 sps:$4 sm:$0xff]  }
 0x2fc   :  { %5732 = vmatprep.subr.bf16.mxu1 %v8271_v55  ;;  %v8317_v55 = vld [vmem:[#allocation2 + $0x1668] ss:$16 sps:$4 sm:$0xff]  }
 0x2fe   :  { %5690 = vmatpush2.bf16.msra.mxu0 %v8266_v60  ;;  %v8924_v60 = vpop.f32.mrf.mxu1 }
 0x2ff   :  { %5733 = vmatpush2.bf16.msra.mxu1 %v8269_v61  ;;  %5691 = vmatprep.subr.bf16.mxu0 %v8274_v58  ;;  %v8322_v61 = vld [vmem:[#allocation2 + $0x144c] ss:$16 sps:$4 sm:$0xff]  }
 0x300   :  { %5734 = vmatprep.subr.bf16.mxu1 %v8277_v59  ;;  %v8325_v58 = vld [vmem:[#allocation2 + $0x164c] ss:$16 sps:$4 sm:$0xff]   ;;  %v951_v59 = vsub.s32 1, %v8918_v49 }
 0x302   :  { %5692 = vmatpush2.bf16.msra.mxu0 %v8272_v4  ;;  %v8927_v4 = vld [vmem:[#allocation4] sm:$0xf] }
 0x303   :  { %5735 = vmatpush2.bf16.msra.mxu1 %v8275_v53  ;;  %5693 = vmatprep.subr.bf16.mxu0 %v8280_v1  ;;  %v8929_v53 = vpop.f32.mrf.mxu0  ;;  %v8320_v1 = vld [vmem:[#allocation2 + $0x1448] ss:$16 sps:$4 sm:$0xff]  }
 0x304   :  { %5736 = vmatprep.subr.bf16.mxu1 %v8283_v54  ;;  %v8323_v54 = vld [vmem:[#allocation2 + $0x1648] ss:$16 sps:$4 sm:$0xff]  }
 0x306   :  { %5694 = vmatpush2.bf16.msra.mxu0 %v8278_v22  ;;  %v8931_v22 = vpop.f32.mrf.mxu1 }
 0x307   :  { %5737 = vmatpush2.bf16.msra.mxu1 %v8281_v23  ;;  %5695 = vmatprep.subr.bf16.mxu0 %v8286_v7  ;;  %v8328_v23 = vld [vmem:[#allocation2 + $0x142c] ss:$16 sps:$4 sm:$0xff]  }
 0x308   :  { %5738 = vmatprep.subr.bf16.mxu1 %v8289_v10  ;;  %v8331_v7 = vld [vmem:[#allocation2 + $0x162c] ss:$16 sps:$4 sm:$0xff]   ;;  %v952_v10 = vrot.slane %v8927_v4, %v951_v59 }
 0x30a   :  { %5696 = vmatpush2.bf16.msra.mxu0 %v8284_v30  ;;  %v8934_v30 = vpop.f32.mrf.mxu0 }
 0x30b   :  { %5739 = vmatpush2.bf16.msra.mxu1 %v8287_v31  ;;  %5751 = vmatprep.subr.bf16.mxu0 %v8292_v16  ;;  %v4846_v31 = vadd.f32 %v8876_v46, %v952_v10  ;;  %v8326_v16 = vld [vmem:[#allocation2 + $0x1428] ss:$16 sps:$4 sm:$0xff]  }
 0x30c   :  { %5794 = vmatprep.subr.bf16.mxu1 %v8295_v17  ;;  %v8329_v17 = vld [vmem:[#allocation2 + $0x1628] ss:$16 sps:$4 sm:$0xff]  }
 0x30d   :  { %5698 = vmatmul.mubr.bf16.vlgmr.msra.gmra.mxu0 %v8818_v2  ;;  %v8302_v2 = vld [vmem:[#allocation2 + $0x14a8] ss:$16 sps:$4 sm:$0xff]  }
 0x30e   :  { %5741 = vmatmul.mubr.bf16.vlgmr.msra.gmra.mxu1 %v8820_v3  ;;  %5752 = vmatpush1.bf16.msra.mxu0 %v8290_v18  ;;  %v8305_v3 = vld [vmem:[#allocation2 + $0x16a8] ss:$16 sps:$4 sm:$0xff]   ;;  %v8937_v18 = vpop.f32.mrf.mxu1 }
 0x30f   :  { %5795 = vmatpush1.bf16.msra.mxu1 %v8293_v19  ;;  %5753 = vmatprep.subr.bf16.mxu0 %v8298_v24  ;;  %v8939_v19 = vpop.f32.mrf.mxu0  ;;  %v8334_v24 = vld [vmem:[#allocation2 + $0x140c] ss:$16 sps:$4 sm:$0xff]   ;;  %v8335_v46 = vld [vmem:[#allocation2 + $0x1608] ss:$16 sps:$4 sm:$0xff]  }
 0x310   :  { %5796 = vmatprep.subr.bf16.mxu1 %v8301_v12  ;;  %5783 = vmatprep.mubr.bf16.mxu0 %v8822_v8  ;;  %v8308_v8 = vld [vmem:[#allocation2 + $0x1488] ss:$16 sps:$4 sm:$0xff]   ;;  %v8337_v12 = vld [vmem:[#allocation2 + $0x160c] ss:$16 sps:$4 sm:$0xff]  }
 0x311   :  { %5826 = vmatprep.mubr.bf16.mxu1 %v8824_v9  ;;  %v8311_v9 = vld [vmem:[#allocation2 + $0x1688] ss:$16 sps:$4 sm:$0xff]  }
 0x312   :  { %5754 = vmatpush1.bf16.msra.mxu0 %v8296_v13  ;;  %v4842_v13 = vadd.f32 %v8868_v37, %v952_v10 }
 0x313   :  { %5797 = vmatpush1.bf16.msra.mxu1 %v8299_v26  ;;  %5755 = vmatprep.subr.bf16.mxu0 %v8304_v32  ;;  %v4889_v26 = vadd.f32 %v8882_v62, %v4846_v31  ;;  %v8332_v32 = vld [vmem:[#allocation2 + $0x1408] ss:$16 sps:$4 sm:$0xff]   ;;  %v8358_v31 = vld [vmem:[#allocation2 + $0x158c] ss:$16 sps:$4 sm:$0xff]  }
 0x314   :  { %5798 = vmatprep.subr.bf16.mxu1 %v8307_v45  ;;  %v5146_v45 = vpop.f32.mrf.mxu1  ;;  %v8338_v62 = vld [vmem:[#allocation2 + $0x15e8] ss:$16 sps:$4 sm:$0xff]  }
 0x315   :  { %v4932_v38 = vadd.f32 %v8892_v11, %v4889_v26  ;;  %v8356_v26 = vld [vmem:[#allocation2 + $0x1588] ss:$16 sps:$4 sm:$0xff]  }
 0x316   :  { %5756 = vmatpush1.bf16.msra.mxu0 %v8302_v2  ;;  %v8943_v2 = vpop.f32.mrf.mxu0 }
 0x317   :  { %5799 = vmatpush1.bf16.msra.mxu1 %v8305_v3  ;;  %5757 = vmatprep.subr.bf16.mxu0 %v8310_v35  ;;  %v8340_v3 = vld [vmem:[#allocation2 + $0x15ec] ss:$16 sps:$4 sm:$0xff]  }
 0x318   :  { %5800 = vmatprep.subr.bf16.mxu1 %v8313_v36  ;;  %v8343_v35 = vld [vmem:[#allocation2 + $0x17ec] ss:$16 sps:$4 sm:$0xff]   ;;  %v4885_v36 = vadd.f32 %v8874_v50, %v4842_v13 }
 0x31a   :  { %5758 = vmatpush1.bf16.msra.mxu0 %v8308_v8  ;;  %v8947_v8 = vpop.f32.mrf.mxu1  ;;  %v4928_v37 = vadd.f32 %v8884_v63, %v4885_v36  ;;  %v8344_v63 = vld [vmem:[#allocation2 + $0x15c8] ss:$16 sps:$4 sm:$0xff]  }
 0x31b   :  { %5801 = vmatpush1.bf16.msra.mxu1 %v8311_v9  ;;  %5759 = vmatprep.subr.bf16.mxu0 %v8316_v28  ;;  %v8341_v9 = vld [vmem:[#allocation2 + $0x17e8] ss:$16 sps:$4 sm:$0xff]   ;;  %v8950_v28 = vpop.f32.mrf.mxu0 }
 0x31c   :  { %5802 = vmatprep.subr.bf16.mxu1 %v8319_v48  ;;  %v8346_v48 = vld [vmem:[#allocation2 + $0x15cc] ss:$16 sps:$4 sm:$0xff]   ;;  %v4971_v50 = vadd.f32 %v8890_v6, %v4928_v37  ;;  %v8350_v6 = vld [vmem:[#allocation2 + $0x15a8] ss:$16 sps:$4 sm:$0xff]   ;;  %v947_v37 = vsub.s32 0, %v8918_v49 }
 0x31d   :  { %v5189_v59 = vpop.f32.mrf.mxu0 }
 0x31e   :  { %5760 = vmatpush1.bf16.msra.mxu0 %v8314_v52  ;;  %v8349_v52 = vld [vmem:[#allocation2 + $0x17cc] ss:$16 sps:$4 sm:$0xff]  }
 0x31f   :  { %5803 = vmatpush1.bf16.msra.mxu1 %v8317_v55  ;;  %5761 = vmatprep.subr.bf16.mxu0 %v8322_v61  ;;  %v4975_v55 = vadd.f32 %v8898_v20, %v4932_v38  ;;  %v8953_v61 = vpop.f32.mrf.mxu1  ;;  %v8960_v20 = vpop.f32.mrf.mxu0  ;;  %v8362_v38 = vld [vmem:[#allocation2 + $0x1568] ss:$16 sps:$4 sm:$0xff]  }
 0x320   :  { %5804 = vmatprep.subr.bf16.mxu1 %v8325_v58  ;;  %v8347_v58 = vld [vmem:[#allocation2 + $0x17c8] ss:$16 sps:$4 sm:$0xff]  }
 0x321   :  { %v5018_v11 = vadd.f32 %v8912_v34, %v4975_v55  ;;  %v8353_v34 = vld [vmem:[#allocation2 + $0x17a8] ss:$16 sps:$4 sm:$0xff]  }
 0x322   :  { %5762 = vmatpush1.bf16.msra.mxu0 %v8320_v1  ;;  %v8352_v1 = vld [vmem:[#allocation2 + $0x15ac] ss:$16 sps:$4 sm:$0xff]  }
 0x323   :  { %5805 = vmatpush1.bf16.msra.mxu1 %v8323_v54  ;;  %5763 = vmatprep.subr.bf16.mxu0 %v8328_v23  ;;  %v8355_v54 = vld [vmem:[#allocation2 + $0x17ac] ss:$16 sps:$4 sm:$0xff]   ;;  %v5014_v23 = vadd.f32 %v8900_v21, %v4971_v50  ;;  %v5061_v10 = vadd.f32 %v8920_v51, %v5018_v11  ;;  %v5271_v21 = vpop.f32.mrf.mxu0  ;;  %v8359_v51 = vld [vmem:[#allocation2 + $0x1788] ss:$16 sps:$4 sm:$0xff]   ;;  %v948_v11 = vrot.slane %v8927_v4, %v947_v37 }
 0x324   :  { %5806 = vmatprep.subr.bf16.mxu1 %v8331_v7  ;;  %v8958_v7 = vpop.f32.mrf.mxu1  ;;  %v8368_v50 = vld [vmem:[#allocation2 + $0x1548] ss:$16 sps:$4 sm:$0xff]   ;;  %v8391_v37 = vld [vmem:[#allocation6 + $0x28] sm:$0xff]  }
 0x325   :  { %v8968_v36 = vpop.f32.mrf.mxu0 }
 0x326   :  { %5764 = vmatpush1.bf16.msra.mxu0 %v8326_v16  ;;  %v8361_v16 = vld [vmem:[#allocation2 + $0x178c] ss:$16 sps:$4 sm:$0xff]  }
 0x327   :  { %5807 = vmatpush1.bf16.msra.mxu1 %v8329_v17  ;;  %5765 = vmatprep.subr.bf16.mxu0 %v8334_v24  ;;  %v5057_v17 = vadd.f32 %v8910_v33, %v5014_v23  ;;  %v5104_v24 = vadd.f32 %v8934_v30, %v5061_v10  ;;  %v5275_v55 = vpop.f32.mrf.mxu0  ;;  %v4844_v23 = vadd.f32 %v8872_v29, %v948_v11  ;;  %v8374_v10 = vld [vmem:[#allocation2 + $0x1528] ss:$16 sps:$4 sm:$0xff]  }
 0x328   :  { %5808 = vmatprep.subr.bf16.mxu1 %v8337_v12  ;;  %v5232_v12 = vpop.f32.mrf.mxu1  ;;  %v8383_v29 = vld [vmem:[#allocation2 + $0x1708] ss:$16 sps:$4 sm:$0xff]  }
 0x329   :  { %v5100_v13 = vadd.f32 %v8922_v40, %v5057_v17  ;;  %v8365_v40 = vld [vmem:[#allocation2 + $0x1768] ss:$16 sps:$4 sm:$0xff]   ;;  %v8385_v17 = vld [vmem:[#allocation2 + $0x170c] ss:$16 sps:$4 sm:$0xff]  }
 0x32a   :  { %5766 = vmatpush1.bf16.msra.mxu0 %v8332_v32  ;;  %v8966_v32 = vpop.f32.mrf.mxu1 }
 0x32b   :  { %5809 = vmatpush1.bf16.msra.mxu1 %v8335_v46  ;;  %5767 = vmatprep.subr.bf16.mxu0 %v8340_v3  ;;  %v8364_v46 = vld [vmem:[#allocation2 + $0x156c] ss:$16 sps:$4 sm:$0xff]   ;;  %v5143_v33 = vadd.f32 %v8931_v22, %v5100_v13  ;;  %v8371_v22 = vld [vmem:[#allocation2 + $0x1748] ss:$16 sps:$4 sm:$0xff]  }
 0x32c   :  { %5810 = vmatprep.subr.bf16.mxu1 %v8343_v35  ;;  %v8367_v3 = vld [vmem:[#allocation2 + $0x176c] ss:$16 sps:$4 sm:$0xff]   ;;  %v5147_v35 = vadd.f32 %v5146_v45, %v5104_v24 }
 0x32e   :  { %5768 = vmatpush2.bf16.msra.mxu0 %v8338_v62  ;;  %v5190_v30 = vadd.f32 %v5189_v59, %v5147_v35  ;;  %v5314_v62 = vpop.f32.mrf.mxu1  ;;  %v8379_v59 = vld [vmem:[#allocation2 + $0x172c] ss:$16 sps:$4 sm:$0xff]  }
 0x32f   :  { %5811 = vmatpush2.bf16.msra.mxu1 %v8341_v9  ;;  %5769 = vmatprep.subr.bf16.mxu0 %v8346_v48  ;;  %v8370_v9 = vld [vmem:[#allocation2 + $0x154c] ss:$16 sps:$4 sm:$0xff]  }
 0x330   :  { %5812 = vmatprep.subr.bf16.mxu1 %v8349_v52  ;;  %v8373_v48 = vld [vmem:[#allocation2 + $0x174c] ss:$16 sps:$4 sm:$0xff]   ;;  %v5186_v52 = vadd.f32 %v8943_v2, %v5143_v33  ;;  %v5233_v45 = vadd.f32 %v5232_v12, %v5190_v30  ;;  %v4887_v12 = vadd.f32 %v8878_v56, %v4844_v23  ;;  %v8388_v33 = vld [vmem:[#allocation6 + $0x70] sm:$0xff]  }
 0x331   :  { %v8387_v35 = vld [vmem:[#allocation6 + $0x38] sm:$0xff]   ;;  %v8399_v23 = vld [vmem:[#allocation6 + $0x8] sm:$0xff]  }
 0x332   :  { %5770 = vmatpush2.bf16.msra.mxu0 %v8344_v63  ;;  %v8974_v63 = vpop.f32.mrf.mxu1 }
 0x333   :  { %5813 = vmatpush2.bf16.msra.mxu1 %v8347_v58  ;;  %5771 = vmatprep.subr.bf16.mxu0 %v8352_v1  ;;  %v8376_v58 = vld [vmem:[#allocation2 + $0x152c] ss:$16 sps:$4 sm:$0xff]   ;;  %v5229_v1 = vadd.f32 %v8953_v61, %v5186_v52  ;;  %v8380_v61 = vld [vmem:[#allocation2 + $0x1508] ss:$16 sps:$4 sm:$0xff]  }
 0x334   :  { %5814 = vmatprep.subr.bf16.mxu1 %v8355_v54  ;;  %v5276_v54 = vadd.f32 %v5275_v55, %v5233_v45  ;;  %v8404_v52 = vld [vmem:[#allocation6 + $0xf0] sm:$0xff]   ;;  %v8394_v55 = vld [vmem:[#allocation6 + $0x58] sm:$0xff]  }
 0x335   :  { %v5272_v2 = vadd.f32 %v5271_v21, %v5229_v1  ;;  %v8395_v45 = vld [vmem:[#allocation6 + $0x18] sm:$0xff]   ;;  %v8398_v1 = vld [vmem:[#allocation6 + $0x48] sm:$0xff]  }
 0x336   :  { %5772 = vmatpush2.bf16.msra.mxu0 %v8350_v6  ;;  %v8377_v6 = vld [vmem:[#allocation2 + $0x1728] ss:$16 sps:$4 sm:$0xff]  }
 0x337   :  { %5815 = vmatpush2.bf16.msra.mxu1 %v8353_v34  ;;  %5773 = vmatprep.subr.bf16.mxu0 %v8358_v31  ;;  %v4840_v34 = vadd.f32 %v8866_v47, %v948_v11  ;;  %v5318_v31 = vpop.f32.mrf.mxu1  ;;  %v5315_v13 = vadd.f32 %v5314_v62, %v5272_v2  ;;  %v8386_v47 = vld [vmem:[#allocation6 + $0x78] sm:$0xff]   ;;  %v8400_v2 = vld [vmem:[#allocation6 + $0x40] sm:$0xff]  }
 0x338   :  { %5816 = vmatprep.subr.bf16.mxu1 %v8361_v16  ;;  %v8382_v16 = vld [vmem:[#allocation2 + $0x150c] ss:$16 sps:$4 sm:$0xff]   ;;  %v5319_v24 = vadd.f32 %v5318_v31, %v5276_v54 }
 0x339   :  { %v4883_v21 = vadd.f32 %v8870_v43, %v4840_v34  ;;  %v8411_v31 = vld [vmem:[#allocation6 + $0x98] sm:$0xff]  }
 0x33a   :  { %5774 = vmatpush2.bf16.msra.mxu0 %v8356_v26  ;;  %v4930_v26 = vadd.f32 %v8888_v5, %v4887_v12  ;;  %v8417_v12 = vld [vmem:[#allocation6 + $0x80] sm:$0xff]  }
 0x33b   :  { %5817 = vmatpush2.bf16.msra.mxu1 %v8359_v51  ;;  %5775 = vmatprep.subr.bf16.mxu0 %v8364_v46  ;;  %v5842_v51 = vmax.f32 %v5319_v24, 0.0  ;;  %v4926_v46 = vadd.f32 %v8880_v57, %v4883_v21  ;;  %v8389_v57 = vld [vmem:[#allocation6 + $0x30] sm:$0xff]   ;;  %v8415_v24 = vld [vmem:[#allocation6 + $0x88] sm:$0xff]  }
 0x33c   :  { %5818 = vmatprep.subr.bf16.mxu1 %v8367_v3  ;;  %v5838_v3 = vmax.f32 %v5315_v13, 0.0  ;;  %v4973_v56 = vadd.f32 %v8894_v14, %v4930_v26  ;;  %v8418_v13 = vld [vmem:[#allocation9 + $0x38] sm:$0xff]   ;;  %v8420_v21 = vld [vmem:[#allocation9 + $0x28] sm:$0xff]   ;;  %v8421_v26 = vld [vmem:[#allocation9 + $0x20] sm:$0xff]  }
 0x33e   :  { %5776 = vmatpush2.bf16.msra.mxu0 %v8362_v38  ;;  %v5846_v30 = vpack.c.bf16 %v5842_v51, %v5838_v3  ;;  %v4969_v38 = vadd.f32 %v8886_v0, %v4926_v46  ;;  %v5016_v43 = vadd.f32 %v8906_v27, %v4973_v56  ;;  %v8392_v27 = vld [vmem:[#allocation6 + $0x60] sm:$0xff]   ;;  %v5398_v51 = vpop.f32.mrf.mxu1 }
 0x33f   :  { %5819 = vmatpush2.bf16.msra.mxu1 %v8365_v40  ;;  %5777 = vmatprep.subr.bf16.mxu0 %v8370_v9  ;;  %v8390_v40 = vld [vmem:[#allocation6 + $0x68] sm:$0xff]   ;;  %v8402_v9 = vld [vmem:[#allocation6 + $0xf8] sm:$0xff]  }
 0x340   :  { %5820 = vmatprep.subr.bf16.mxu1 %v8373_v48  ;;  %v5012_v5 = vadd.f32 %v8896_v15, %v4969_v38  ;;  %v5059_v14 = vadd.f32 %v8914_v39, %v5016_v43  ;;  %v8403_v48 = vld [vmem:[#allocation6 + $0xb8] sm:$0xff]   ;;  %v5400_v3 = vpop.f32.mrf.mxu1 }
 0x342   :  { %5778 = vmatpush2.bf16.msra.mxu0 %v8368_v50  ;;  %v5055_v62 = vadd.f32 %v8902_v25, %v5012_v5  ;;  %v5102_v0 = vadd.f32 %v8929_v53, %v5059_v14  ;;  %v8405_v53 = vld [vmem:[#allocation6 + $0xb0] sm:$0xff]   ;;  %v5402_v56 = vpop.f32.mrf.mxu1 }
 0x343   :  { %5821 = vmatpush2.bf16.msra.mxu1 %v8371_v22  ;;  %5779 = vmatprep.subr.bf16.mxu0 %v8376_v58  ;;  %v8396_v22 = vld [vmem:[#allocation6 + $0x50] sm:$0xff]  }
 0x344   :  { %5822 = vmatprep.subr.bf16.mxu1 %v8379_v59  ;;  %v5145_v15 = vadd.f32 %v8937_v18, %v5102_v0  ;;  %v8407_v18 = vld [vmem:[#allocation6 + $0xa8] sm:$0xff]   ;;  %v8397_v58 = vld [vmem:[#allocation6 + $0x10] sm:$0xff]  }
 0x346   :  { %5780 = vmatpush2.bf16.msra.mxu0 %v8374_v10  ;;  %v5188_v25 = vadd.f32 %v8950_v28, %v5145_v15 }
 0x347   :  { %5823 = vmatpush2.bf16.msra.mxu1 %v8377_v6  ;;  %5781 = vmatprep.subr.bf16.mxu0 %v8382_v16  ;;  %v8412_v16 = vld [vmem:[#allocation6 + $0xd0] sm:$0xff]  }
 0x348   :  { %5824 = vmatprep.subr.bf16.mxu1 %v8385_v17  ;;  %v5231_v11 = vadd.f32 %v8958_v7, %v5188_v25  ;;  %v8413_v17 = vld [vmem:[#allocation6 + $0x90] sm:$0xff]  }
 0x34a   :  { %5782 = vmatpush2.bf16.msra.mxu0 %v8380_v61  ;;  %v5274_v59 = vadd.f32 %v8968_v36, %v5231_v11  ;;  %v8572_v61 = vmov 0.0  }
 0x34b   :  { %5825 = vmatpush2.bf16.msra.mxu1 %v8383_v29  ;;  %7149 = vmatprep.subr.bf16.mxu0 %v8386_v47  ;;  %v8419_v29 = vld [vmem:[#allocation9 + $0x30] sm:$0xff]   ;;  %v5355_v47 = vpop.f32.mrf.mxu0 }
 0x34c   :  { %7171 = vmatprep.subr.bf16.mxu1 %v8402_v9  ;;  %v5317_v7 = vadd.f32 %v8974_v63, %v5274_v59  ;;  %v8414_v63 = vld [vmem:[#allocation6 + $0xc8] sm:$0xff]   ;;  %v959_v9 = vsub.s32 3, %v8918_v49 }
 0x34d   :  { %5784 = vmatmul.mubr.bf16.vlgmr.msra.gmra.mxu0 %v8842_v41  ;;  %v5098_v41 = vadd.f32 %v8916_v44, %v5055_v62  ;;  %v8406_v44 = vld [vmem:[#allocation6 + $0xe8] sm:$0xff]   ;;  %v5357_v46 = vpop.f32.mrf.mxu0 }
 0x34e   :  { %5827 = vmatmul.mubr.bf16.vlgmr.msra.gmra.mxu1 %v8844_v42  ;;  %7150 = vmatpush3.bf16.msra.mxu0 %v8387_v35  ;;  %v8393_v42 = vld [vmem:[#allocation6 + $0x20] sm:$0xff]   ;;  %v5841_v6 = vmax.f32 %v5317_v7, 0.0 }
 0x34f   :  { %6144 = vmatprep.mubr.bf16.mxu0 %v5846_v30  ;;  %7151 = vmatprep.subr.bf16.mxu0 %v8388_v33  ;;  %v5141_v39 = vadd.f32 %v8924_v60, %v5098_v41  ;;  %v8408_v60 = vld [vmem:[#allocation6 + $0xe0] sm:$0xff]   ;;  %v5359_v35 = vpop.f32.mrf.mxu0  ;;  %v5404_v30 = vpop.f32.mrf.mxu1 }
 0x350   :  { %7172 = vmatpush3.bf16.msra.mxu1 %v8403_v48  ;;  %v955_v48 = vsub.s32 2, %v8918_v49 }
 0x351   :  { %7173 = vmatprep.subr.bf16.mxu1 %v8404_v52  ;;  %v5184_v50 = vadd.f32 %v8939_v19, %v5141_v39  ;;  %v8409_v19 = vld [vmem:[#allocation6 + $0xa0] sm:$0xff]   ;;  %v5361_v33 = vpop.f32.mrf.mxu0  ;;  %v5484_v43 = vpop.f32.mrf.mxu1 }
 0x352   :  { %7152 = vmatpush3.bf16.msra.mxu0 %v8389_v57  ;;  %v956_v39 = vrot.slane %v8927_v4, %v955_v48 }
 0x353   :  { %7153 = vmatprep.subr.bf16.mxu0 %v8390_v40  ;;  %v5227_v28 = vadd.f32 %v8947_v8, %v5184_v50  ;;  %v8401_v8 = vld [vmem:[#allocation6] sm:$0xff]   ;;  %v5441_v38 = vpop.f32.mrf.mxu0  ;;  %v5486_v5 = vpop.f32.mrf.mxu1 }
 0x354   :  { %7174 = vmatpush3.bf16.msra.mxu1 %v8405_v53  ;;  %v5360_v11 = vadd.f32 %v5359_v35, %v956_v39 }
 0x355   :  { %7175 = vmatprep.subr.bf16.mxu1 %v8406_v44  ;;  %v5270_v54 = vadd.f32 %v8960_v20, %v5227_v28  ;;  %v8410_v20 = vld [vmem:[#allocation6 + $0xd8] sm:$0xff]   ;;  %v5443_v57 = vpop.f32.mrf.mxu0  ;;  %v5488_v14 = vpop.f32.mrf.mxu1 }
 0x356   :  { %7154 = vmatpush3.bf16.msra.mxu0 %v8391_v37 }
 0x357   :  { %7155 = vmatprep.subr.bf16.mxu0 %v8392_v27  ;;  %v5313_v10 = vadd.f32 %v8966_v32, %v5270_v54  ;;  %v8416_v32 = vld [vmem:[#allocation6 + $0xc0] sm:$0xff]   ;;  %v5445_v40 = vpop.f32.mrf.mxu0  ;;  %v5490_v62 = vpop.f32.mrf.mxu1 }
 0x358   :  { %7176 = vmatpush3.bf16.msra.mxu1 %v8407_v18 }
 0x359   :  { %7177 = vmatprep.subr.bf16.mxu1 %v8408_v60  ;;  %v5837_v36 = vmax.f32 %v5313_v10, 0.0  ;;  %v5447_v37 = vpop.f32.mrf.mxu0  ;;  %v5570_v27 = vpop.f32.mrf.mxu1 }
 0x35a   :  { %7156 = vmatpush3.bf16.msra.mxu0 %v8393_v42 }
 0x35b   :  { %7157 = vmatprep.subr.bf16.mxu0 %v8394_v55  ;;  %v5845_v34 = vpack.c.bf16 %v5841_v6, %v5837_v36  ;;  %v5527_v0 = vpop.f32.mrf.mxu0  ;;  %v5572_v42 = vpop.f32.mrf.mxu1  ;;  %v960_v55 = vrot.slane %v8927_v4, %v959_v9 }
 0x35c   :  { %7178 = vmatpush3.bf16.msra.mxu1 %v8409_v19 }
 0x35d   :  { %7179 = vmatprep.subr.bf16.mxu1 %v8410_v20  ;;  %v5529_v41 = vpop.f32.mrf.mxu0  ;;  %v5574_v15 = vpop.f32.mrf.mxu1  ;;  %v5358_v50 = vadd.f32 %v5357_v46, %v960_v55  ;;  %v5362_v28 = vadd.f32 %v5361_v33, %v960_v55 }
 0x35e   :  { %7158 = vmatpush3.bf16.msra.mxu0 %v8395_v45 }
 0x35f   :  { %7159 = vmatprep.subr.bf16.mxu0 %v8396_v22  ;;  %v5531_v52 = vpop.f32.mrf.mxu0  ;;  %v5576_v53 = vpop.f32.mrf.mxu1  ;;  %v5356_v22 = vadd.f32 %v5355_v47, %v956_v39  ;;  %v5401_v60 = vadd.f32 %v5400_v3, %v5358_v50  ;;  %v5405_v7 = vadd.f32 %v5404_v30, %v5362_v28 }
 0x360   :  { %7180 = vmatpush3.bf16.msra.mxu1 %v8411_v31 }
 0x361   :  { %7181 = vmatprep.subr.bf16.mxu1 %v8412_v16  ;;  %v5533_v25 = vpop.f32.mrf.mxu0  ;;  %v5399_v59 = vadd.f32 %v5398_v51, %v5356_v22  ;;  %v5444_v49 = vadd.f32 %v5443_v57, %v5401_v60  ;;  %v5448_v10 = vadd.f32 %v5447_v37, %v5405_v7  ;;  %v8422_v7 = vld [vmem:[#allocation9 + $0x18] sm:$0xff]  }
 0x362   :  { %7160 = vmatpush3.bf16.msra.mxu0 %v8397_v58 }
 0x363   :  { %7161 = vmatprep.subr.bf16.mxu0 %v8398_v1  ;;  %v5403_v1 = vadd.f32 %v5402_v56, %v5360_v11  ;;  %v5442_v54 = vadd.f32 %v5441_v38, %v5399_v59  ;;  %v5487_v4 = vadd.f32 %v5486_v5, %v5444_v49 }
 0x364   :  { %7182 = vmatpush3.bf16.msra.mxu1 %v8413_v17 }
 0x365   :  { %7183 = vmatprep.subr.bf16.mxu1 %v8414_v63  ;;  %v5530_v20 = vadd.f32 %v5529_v41, %v5487_v4  ;;  %v5491_v63 = vadd.f32 %v5490_v62, %v5448_v10  ;;  %v8424_v4 = vld [vmem:[#allocation9 + $0x8] sm:$0xff]   ;;  %v8425_v10 = vld [vmem:[#allocation9] sm:$0xff]  }
 0x366   :  { %7162 = vmatpush3.bf16.msra.mxu0 %v8399_v23 }
 0x367   :  { %7163 = vmatprep.subr.bf16.mxu0 %v8400_v2  ;;  %v5446_v2 = vadd.f32 %v5445_v40, %v5403_v1 }
 0x368   :  { %7184 = vmatpush3.bf16.msra.mxu1 %v8415_v24 }
 0x369   :  { %7185 = vmatprep.subr.bf16.mxu1 %v8416_v32  ;;  %v5573_v32 = vadd.f32 %v5572_v42, %v5530_v20 }
 0x36a   :  { %7164 = vmatpush3.bf16.msra.mxu0 %v8401_v8  ;;  %v5485_v8 = vadd.f32 %v5484_v43, %v5442_v54 }
 0x36b   :  { %7202 = vmatprep.subr.bf16.mxu0 %v8572_v61 }
 0x36c   :  { %7186 = vmatpush3.bf16.msra.mxu1 %v8417_v12  ;;  %v5528_v31 = vadd.f32 %v5527_v0, %v5485_v8  ;;  %v5534_v12 = vadd.f32 %v5533_v25, %v5491_v63 }
 0x36d   :  { %6145 = vmatmul.mubr.bf16.vlgmr.msra.gmra.mxu0 %v5845_v34  ;;  %v5489_v34 = vadd.f32 %v5488_v14, %v5446_v2  ;;  %v8423_v2 = vld [vmem:[#allocation9 + $0x10] sm:$0xff]  }
 0x36e   :  { %7203 = vmatpush3.bf16.msra.mxu0 %v8418_v13  ;;  %v5571_v13 = vadd.f32 %v5570_v27, %v5528_v31  ;;  %v5577_v46 = vadd.f32 %v5576_v53, %v5534_v12  ;;  %7218 = vmatprep.mubr.msk.bf16.mxu0 %vm8573_vm0, %v8572_v61 }
 0x36f   :  { %7204 = vmatprep.subr.bf16.mxu0 %v8572_v61  ;;  %v5532_v24 = vadd.f32 %v5531_v52, %v5489_v34 }
 0x372   :  { %7205 = vmatpush3.bf16.msra.mxu0 %v8419_v29 }
 0x373   :  { %7206 = vmatprep.subr.bf16.mxu0 %v8572_v61 }
 0x376   :  { %7207 = vmatpush3.bf16.msra.mxu0 %v8420_v21 }
 0x377   :  { %7208 = vmatprep.subr.bf16.mxu0 %v8572_v61 }
 0x37a   :  { %7209 = vmatpush3.bf16.msra.mxu0 %v8421_v26  ;;  %v5575_v26 = vadd.f32 %v5574_v15, %v5532_v24 }
 0x37b   :  { %7210 = vmatprep.subr.bf16.mxu0 %v8572_v61 }
 0x37e   :  { %7211 = vmatpush3.bf16.msra.mxu0 %v8422_v7 }
 0x37f   :  { %7212 = vmatprep.subr.bf16.mxu0 %v8572_v61 }
 0x382   :  { %7213 = vmatpush3.bf16.msra.mxu0 %v8423_v2 }
 0x383   :  { %7214 = vmatprep.subr.bf16.mxu0 %v8572_v61 }
 0x386   :  { %7215 = vmatpush3.bf16.msra.mxu0 %v8424_v4 }
 0x387   :  { %7216 = vmatprep.subr.bf16.mxu0 %v8572_v61 }
 0x38a   :  { %7217 = vmatpush3.bf16.msra.mxu0 %v8425_v10 }
 0x38d   :  { %v5613_v45 = vpop.f32.mrf.mxu0 }
 0x38e   :  { %v5656_v44 = vpop.f32.mrf.mxu1  ;;  %v5614_v51 = vadd.f32 %v5613_v45, %v5571_v13 }
 0x38f   :  { %v5615_v18 = vpop.f32.mrf.mxu0 }
 0x390   :  { %v5658_v58 = vpop.f32.mrf.mxu1  ;;  %v5616_v47 = vadd.f32 %v5615_v18, %v5573_v32  ;;  %v5657_v38 = vadd.f32 %v5656_v44, %v5614_v51 }
 0x391   :  { %v5617_v19 = vpop.f32.mrf.mxu0 }
 0x392   :  { %v5660_v23 = vpop.f32.mrf.mxu1  ;;  %v5618_v3 = vadd.f32 %v5617_v19, %v5575_v26  ;;  %v5659_v33 = vadd.f32 %v5658_v58, %v5616_v47 }
 0x393   :  { %v5619_v6 = vpop.f32.mrf.mxu0 }
 0x394   :  { %v5662_v36 = vpop.f32.mrf.mxu1  ;;  %v5620_v30 = vadd.f32 %v5619_v6, %v5577_v46  ;;  %v5661_v43 = vadd.f32 %v5660_v23, %v5618_v3  ;;  %v7140_v3 = vld [vmem:[#allocation10] ss:$0 sm:$0xff] }
 0x396   :  { %v5663_v37 = vadd.f32 %v5662_v36, %v5620_v30 }
 0x3cd   :  { %v5699_v16 = vpop.f32.mrf.mxu0 }
 0x3ce   :  { %v5742_v17 = vpop.f32.mrf.mxu1  ;;  %v5700_v5 = vadd.f32 %v5699_v16, %v5657_v38  ;;  %v7107_v16 = vld [vmem:[#allocation7] ss:$0 sm:$0xff] }
 0x3cf   :  { %v5701_v29 = vpop.f32.mrf.mxu0 }
 0x3d0   :  { %v5744_v21 = vpop.f32.mrf.mxu1  ;;  %v5702_v57 = vadd.f32 %v5701_v29, %v5659_v33  ;;  %v5743_v9 = vadd.f32 %v5742_v17, %v5700_v5 }
 0x3d1   :  { %v5703_v35 = vpop.f32.mrf.mxu0 }
 0x3d2   :  { %v5746_v56 = vpop.f32.mrf.mxu1  ;;  %v5704_v62 = vadd.f32 %v5703_v35, %v5661_v43  ;;  %v5745_v41 = vadd.f32 %v5744_v21, %v5702_v57 }
 0x3d3   :  { %v5705_v40 = vpop.f32.mrf.mxu0 }
 0x3d4   :  { %v5748_v14 = vpop.f32.mrf.mxu1  ;;  %v5706_v42 = vadd.f32 %v5705_v40, %v5663_v37  ;;  %v5747_v15 = vadd.f32 %v5746_v56, %v5704_v62 }
 0x3d6   :  { %v5749_v45 = vadd.f32 %v5748_v14, %v5706_v42 }
 0x40d   :  { %v5785_v0 = vpop.f32.mrf.mxu0 }
 0x40e   :  { %v5828_v27 = vpop.f32.mrf.mxu1  ;;  %v5786_v39 = vadd.f32 %v5785_v0, %v5743_v9 }
 0x40f   :  { %v5787_v48 = vpop.f32.mrf.mxu0 }
 0x410   :  { %v5830_v52 = vpop.f32.mrf.mxu1  ;;  %v5788_v55 = vadd.f32 %v5787_v48, %v5745_v41  ;;  %v5829_v58 = vadd.f32 %v5828_v27, %v5786_v39 }
 0x411   :  { %v5789_v25 = vpop.f32.mrf.mxu0 }
 0x412   :  { %v5832_v53 = vpop.f32.mrf.mxu1  ;;  %v5790_v44 = vadd.f32 %v5789_v25, %v5747_v15  ;;  %v5831_v22 = vadd.f32 %v5830_v52, %v5788_v55  ;;  %v5839_v54 = vmax.f32 %v5829_v58, 0.0 }
 0x413   :  { %v5791_v50 = vpop.f32.mrf.mxu0 }
 0x414   :  { %v5833_v11 = vadd.f32 %v5832_v53, %v5790_v44  ;;  %v5792_v18 = vadd.f32 %v5791_v50, %v5749_v45  ;;  %v5834_v60 = vpop.f32.mrf.mxu1  ;;  %v5840_v1 = vmax.f32 %v5831_v22, 0.0 }
 0x416   :  { %v5835_v28 = vadd.f32 %v5834_v60, %v5792_v18  ;;  %v5843_v59 = vmax.f32 %v5833_v11, 0.0 }
 0x418   :  { %v5844_v49 = vmax.f32 %v5835_v28, 0.0  ;;  %v5847_v23 = vpack.c.bf16 %v5843_v59, %v5839_v54 }
 0x41a   :  { %v5848_v19 = vpack.c.bf16 %v5844_v49, %v5840_v1 }
 0x41c   :  { %6185 = vmatprep.mubr.bf16.mxu1 %v5848_v19 }
 0x41d   :  { %6186 = vmatmul.mubr.bf16.vlgmr.msra.gmra.mxu1 %v5847_v23 }
 0x42d   :  { %v7165_v8 = vpop.f32.mrf.mxu0 }
 0x42f   :  { %v7166_v6 = vpop.f32.mrf.mxu0 }
 0x430   :  { %v7167_v31 = vadd.f32 %v7166_v6, %v7165_v8 }
 0x431   :  { %v7168_v36 = vpop.f32.mrf.mxu0 }
 0x432   :  { %v6147_v12 = vadd.f32 %v7167_v31, %v7107_v16 }
 0x433   :  { %v7169_v34 = vpop.f32.mrf.mxu0 }
 0x434   :  { %v7170_v63 = vadd.f32 %v7169_v34, %v7168_v36 }
 0x436   :  { %v6150_v29 = vadd.f32 %v7170_v63, %v7107_v16 }
 0x4dd   :  { %v7187_v20 = vpop.f32.mrf.mxu1 }
 0x4df   :  { %v7188_v17 = vpop.f32.mrf.mxu1 }
 0x4e0   :  { %v7189_v24 = vadd.f32 %v7188_v17, %v7187_v20 }
 0x4e1   :  { %v7190_v32 = vpop.f32.mrf.mxu1 }
 0x4e2   :  { %v6188_v21 = vadd.f32 %v7189_v24, %v6147_v12 }
 0x4e3   :  { %v7191_v13 = vpop.f32.mrf.mxu1 }
 0x4e4   :  { %v7192_v26 = vadd.f32 %v7191_v13, %v7190_v32  ;;  %v6194_v51 = vmax.f32 %v6188_v21, 0.0 }
 0x4e6   :  { %v6191_v47 = vadd.f32 %v7192_v26, %v6150_v29 }
 0x4e8   :  { %v6195_v46 = vmax.f32 %v6191_v47, 0.0 }
 0x4ea   :  { %v6196_v61 = vpack.c.bf16 %v6195_v46, %v6194_v51 }
 0x4ec   :  { %7219 = vmatmul.mubr.bf16.vlgmr.msra.gmra.mxu0 %v6196_v61 }
 0x5ac   :  { %v6302_v35 = vpop.f32.mrf.mxu0 }
 0x5ad   :  { %v6303_v56 = vadd.f32 %v7140_v3, %v6302_v35 }
 0x5ae   :  { %v7220_v33 = vpop.f32.mrf.mxu0 }
 0x5af   :  { %6309 = vmax.xlane.f32.xlu0 %v6303_v56 }
 0x5b0   :  { %v6305_v30 = vpop.f32.mrf.mxu0 }
 0x5b1   :  { %v6306_v38 = vadd.f32 %v7140_v3, %v6305_v30 }
 0x5b2   :  { %v7221_v43 = vpop.f32.mrf.mxu0 }
 0x5b3   :  { %6311 = vmax.xlane.f32.xlu0 %v6306_v38 }
 0x638   :  { %v6310_v57 = vpop.xlane.xlu0 %6309 }
 0x639   :  { %v6313_v5 = vsub.f32 %v6303_v56, %v6310_v57 }
 0x63b   :  { %v6315_v40 = vmul.f32 1.442695, %v6313_v5 }
 0x63c   :  { %v6312_v14 = vpop.xlane.xlu0 %6311 }
 0x63d   :  { %v6314_v37 = vsub.f32 %v6306_v38, %v6312_v14  ;;  %8426 = vpow2.f32 %v6315_v40 }
 0x63f   :  { %v6317_v62 = vmul.f32 1.442695, %v6314_v37 }
 0x641   :  { %8428 = vpow2.f32 %v6317_v62 }
 0x64a   :  { %v8427_v0 = vpop.eup %8426 }
 0x64b   :  { %6319 = vadd.xlane.f32.xlu1 %v8427_v0 }
 0x64e   :  { %v8429_v27 = vpop.eup %8428 }
 0x64f   :  { %6321 = vadd.xlane.f32.xlu1 %v8429_v27 }
 0x6d4   :  { %v6320_v41 = vpop.xlane.xlu1 %6319 }
 0x6d5   :  { %8430 = vlog2.f32 %v6320_v41 }
 0x6d8   :  { %v6322_v42 = vpop.xlane.xlu1 %6321 }
 0x6d9   :  { %8432 = vlog2.f32 %v6322_v42 }
 0x6e2   :  { %v8431_v9 = vpop.eup %8430 }
 0x6e3   :  { %v6324_v48 = vmul.f32 0.6931472, %v8431_v9 }
 0x6e5   :  { %v6327_v52 = vsub.f32 %v6313_v5, %v6324_v48 }
 0x6e6   :  { %v8433_v15 = vpop.eup %8432 }
 0x6e7   :  { %6329 = vst [vmem:[%s9029_s7] sm:$0xff] %v6327_v52  ;;  %v6326_v55 = vmul.f32 0.6931472, %v8433_v15 }
 0x6e9   :  { %v6328_v39 = vsub.f32 %v6314_v37, %v6326_v55 }
 0x6eb   :  { %6330 = vst [vmem:[%s9029_s7 + $0x8] sm:$0xff] %v6328_v39 }
 0x6ec   :  { %6335 = vsyncpa [#allocation3], 1 }
 0x6ed   :  { %6336 = vsyncpa [#allocation5], 1 }
 0x6ee   :  { %6337 = vsyncpa [#allocation8], 1 }
 0x6ef   :  { %6338 = vsyncpa [#allocation11], 1 }

</bundles_post_ra>
